<compile_context>
chip_gen: v6e
topology: v6e:2x2x1
jax: 0.10.0
libtpu: 0.0.40
codegen_flags: <defaults>
</compile_context>

<pallas_src>
import functools
import math

import jax
import jax.numpy as jnp
from jax.experimental import pallas as pl
from jax.experimental.pallas import tpu as pltpu

LN_EPS = 1e-6
NEG_INF = -1e9
_MiB = 1024 * 1024

_PACKED_ORDER = ("wq", "bq", "wkv", "bkv", "wo", "bo", "ln1_g", "ln1_b",
                 "w1", "b1", "w2", "b2", "ln2_g", "ln2_b")


# ----------------------------- in-kernel helpers -----------------------------

def _layer_norm(v, gamma, beta):
    # Annotated-Transformer LayerNorm: unbiased std (ddof=1), eps added to std.
    # Stats in f32; 1/(std+eps) via EUP approximate reciprocal (within bf16 tolerance;
    # switch to an exact reciprocal if tolerance is ever tightened).
    mean = jnp.mean(v, axis=-1, keepdims=True)
    diff = v - mean
    n = v.shape[-1]
    var = jnp.sum(diff * diff, axis=-1, keepdims=True) * (1.0 / (n - 1))
    std = jnp.sqrt(var)
    inv = pl.reciprocal(std + LN_EPS, approx=True)
    return gamma * (diff * inv) + beta


def _gelu(x):
    # BERT-pytorch GELU (tanh approximation). Kept in f32 (v5e EUP has no bf16 path).
    c = math.sqrt(2.0 / math.pi)
    return 0.5 * x * (1.0 + jnp.tanh(c * (x + 0.044715 * x * x * x)))


def _split_heads(t, n_heads, dk):
    # (N, nh*dk) -> (nh, N, dk): head-major so attention is a leading-batch einsum.
    n = t.shape[0]
    t3 = t.reshape(n, n_heads, dk)
    if hasattr(pltpu, "einshape"):
        return pltpu.einshape("nhd->hnd", t3)
    return jnp.transpose(t3, (1, 0, 2))


def _merge_heads(t):
    # (nh, N, dk) -> (N, nh*dk)
    nh, n, dk = t.shape
    if hasattr(pltpu, "einshape"):
        t3 = pltpu.einshape("hnd->nhd", t)
    else:
        t3 = jnp.transpose(t, (1, 0, 2))
    return t3.reshape(n, nh * dk)


# --------------------------------- kernel ------------------------------------

def _transformer_block_kernel(n_heads, d_k,
                              x_ref, meta_ref, mask_ref,
                              wq_ref, bq_ref, wkv_ref, bkv_ref, wo_ref, bo_ref,
                              ln1_g_ref, ln1_b_ref,
                              w1_ref, b1_ref, w2_ref, b2_ref,
                              ln2_g_ref, ln2_b_ref,
                              out_ref,
                              kh_s, vh_s, x1n_s, acc_s):
    bf16 = jnp.bfloat16
    si = pl.program_id(1)
    ff = pl.program_id(2)
    n_ff = pl.num_programs(2)

    Hp = wq_ref.shape[1]          # nh * dk_pad (lane-aligned per-head width)
    dk_pad = Hp // n_heads
    scale = 1.0 / math.sqrt(d_k)  # reference scale uses the ORIGINAL d_k

    # ---- K/V projection: depends only on meta (per batch) -> compute once per batch ----
    @pl.when(jnp.logical_and(si == 0, ff == 0))
    def _project_kv():
        meta_b = meta_ref[0]                                       # (Sm, H) bf16
        kv = jnp.dot(meta_b, wkv_ref[...],
                     preferred_element_type=jnp.float32) + bkv_ref[0]   # (Sm, 2*Hp) f32
        kh_s[...] = _split_heads(kv[:, :Hp].astype(bf16), n_heads, dk_pad)
        vh_s[...] = _split_heads(kv[:, Hp:].astype(bf16), n_heads, dk_pad)

    # ---- attention + residual: once per (batch, S-tile) ----
    @pl.when(ff == 0)
    def _attention():
        x = x_ref[0].astype(jnp.float32)                           # residual path in f32
        # additive attention bias (f32), shared by all heads: 0 keep / -1e9 masked
        bias = (mask_ref[0].astype(jnp.float32) - 1.0) * 1e9       # (TS, Sm)

        xn = _layer_norm(x, ln1_g_ref[0], ln1_b_ref[0]).astype(bf16)
        q = jnp.dot(xn, wq_ref[...], preferred_element_type=jnp.float32) + bq_ref[0]
        q = q * scale                                              # fold 1/sqrt(d_k) into Q
        qh = _split_heads(q.astype(bf16), n_heads, dk_pad)         # (nh, TS, dk_pad)

        s = jnp.einsum("hqd,hkd->hqk", qh, kh_s[...],
                       preferred_element_type=jnp.float32)         # (nh, TS, Sm) f32
        s = s + bias[None, :, :]
        s = s - jnp.max(s, axis=-1, keepdims=True)
        p = jnp.exp(s)
        p = p * pl.reciprocal(jnp.sum(p, axis=-1, keepdims=True), approx=True)

        ctx = jnp.einsum("hqk,hkd->hqd", p.astype(bf16), vh_s[...],
                         preferred_element_type=jnp.float32)       # (nh, TS, dk_pad)
        ctx = _merge_heads(ctx.astype(bf16))                       # (TS, Hp) bf16

        attn = jnp.dot(ctx, wo_ref[...], preferred_element_type=jnp.float32) + bo_ref[0]
        x1 = x + attn                                              # residual in f32
        acc_s[...] = x1                                            # FFN accumulator = residual
        x1n_s[...] = _layer_norm(x1, ln2_g_ref[0], ln2_b_ref[0]).astype(bf16)

    # ---- FFN: accumulate one d_ff chunk per ff grid step ----
    x1n = x1n_s[...]                                               # (TS, H) bf16
    h1 = jnp.dot(x1n, w1_ref[...], preferred_element_type=jnp.float32) + b1_ref[0]
    h1 = _gelu(h1)
    acc_s[...] += jnp.dot(h1.astype(bf16), w2_ref[...],
                          preferred_element_type=jnp.float32)

    @pl.when(ff == n_ff - 1)
    def _write():
        out_ref[0] = (acc_s[...] + b2_ref[0]).astype(out_ref.dtype)


# ------------------------------ param packing --------------------------------

def pack_params(params, n_heads):
    """One-time repack (do this OUTSIDE the hot path): matmul weights -> bf16,
    per-head d_k zero-padded to a multiple of 128 lanes, Wk|Wv fused into one matmul."""
    bf16, f32 = jnp.bfloat16, jnp.float32
    H = params["wq"].shape[0]
    d_k = H // n_heads
    dk_pad = ((d_k + 127) // 128) * 128
    Hp = n_heads * dk_pad
    pad = dk_pad - d_k

    def head_cols(w):   # (H, H) -> (H, Hp): output columns grouped per head, zero-padded
        w3 = w.reshape(H, n_heads, d_k)
        return jnp.pad(w3, ((0, 0), (0, 0), (0, pad))).reshape(H, Hp)

    def head_bias(b):   # (1, H) -> (1, Hp)
        b3 = b.reshape(1, n_heads, d_k)
        return jnp.pad(b3, ((0, 0), (0, 0), (0, pad))).reshape(1, Hp)

    def head_rows(w):   # (H, H) -> (Hp, H): input rows grouped per head, zero-padded
        w3 = w.reshape(n_heads, d_k, H)
        return jnp.pad(w3, ((0, 0), (0, pad), (0, 0))).reshape(Hp, H)

    return {
        "wq": head_cols(params["wq"]).astype(bf16),
        "bq": head_bias(params["bq"]).astype(f32),
        "wkv": jnp.concatenate([head_cols(params["wk"]), head_cols(params["wv"])],
                               axis=1).astype(bf16),
        "bkv": jnp.concatenate([head_bias(params["bk"]), head_bias(params["bv"])],
                               axis=1).astype(f32),
        "wo": head_rows(params["wo"]).astype(bf16),
        "bo": params["bo"].astype(f32),
        "ln1_g": params["ln1_g"].astype(f32),
        "ln1_b": params["ln1_b"].astype(f32),
        "w1": params["w1"].astype(bf16),
        "b1": params["b1"].astype(f32),
        "w2": params["w2"].astype(bf16),
        "b2": params["b2"].astype(f32),
        "ln2_g": params["ln2_g"].astype(f32),
        "ln2_b": params["ln2_b"].astype(f32),
    }


# -------------------------------- wrapper ------------------------------------

def _vmem_capacity_bytes():
    cap = 128 * _MiB
    try:
        info = pltpu.get_tpu_info()
        cap = int(getattr(info, "vmem_capacity_bytes", cap) or cap)
    except Exception:
        cap = 128 * _MiB
    return cap


def nova_transformer_block(x, meta, mask, packed, n_heads, *, tile_s=None, tile_ff=None):
    B, S, H = x.shape
    Sm = meta.shape[1]
    bf16 = jnp.bfloat16

    Hp = packed["wq"].shape[1]
    dk_pad = Hp // n_heads
    d_k = H // n_heads
    d_ff = packed["w1"].shape[1]

    # generation-aware VMEM budget / tile defaults (v7x: 64 MiB physical; v5e/v6e: 128 MiB)
    cap = _vmem_capacity_bytes()
    small_vmem = cap <= 64 * _MiB
    vmem_limit = (48 * _MiB) if small_vmem else (100 * _MiB)

    if tile_s is None:
        tile_s = 256 if small_vmem else 512
    tile_s = min(tile_s, S)
    if tile_s < S and tile_s % 8 != 0:
        tile_s = max(8, (tile_s // 8) * 8)

    # pad ragged S up to a tile multiple (mask pad rows attend everything; pad rows of the
    # output are sliced off below) instead of collapsing to one giant tile.
    n_s = -(-S // tile_s)
    S_pad = n_s * tile_s
    x_in, mask_in = x, mask
    if S_pad != S:
        x_in = jnp.pad(x, ((0, 0), (0, S_pad - S), (0, 0)))
        mask_in = jnp.pad(mask, ((0, 0), (0, S_pad - S), (0, 0)), constant_values=1)

    meta_in = meta if meta.dtype == bf16 else meta.astype(bf16)
    mask_in = mask_in if mask_in.dtype == bf16 else mask_in.astype(bf16)

    # d_ff chunking: keep full d_ff resident when it is small; chunk on small-VMEM chips.
    if tile_ff is None:
        tile_ff = d_ff
        ff_threshold = 2048 if small_vmem else 8192
        if d_ff > ff_threshold:
            for cand in (2048, 1024, 512, 256, 128):
                if d_ff % cand == 0:
                    tile_ff = cand
                    break
            # TODO(synk): pad d_ff up to a 128-aligned tile when no aligned divisor exists.
    assert d_ff % tile_ff == 0
    n_ff = d_ff // tile_ff

    param_arrays = [packed[k] for k in _PACKED_ORDER]
    kernel = functools.partial(_transformer_block_kernel, n_heads, d_k)

    def _call(single_buffer_weights):
        def _const_spec(arr):
            nd = arr.ndim
            idx = lambda b, si, ff, _nd=nd: (0,) * _nd
            if single_buffer_weights and hasattr(pl, "Buffered"):
                # constant index map -> DMA'd once; double buffering would only waste VMEM
                return pl.BlockSpec(arr.shape, idx, pipeline_mode=pl.Buffered(1))
            return pl.BlockSpec(arr.shape, idx)

        def _ff_spec(shape, idx):
            if n_ff == 1 and single_buffer_weights and hasattr(pl, "Buffered"):
                return pl.BlockSpec(shape, idx, pipeline_mode=pl.Buffered(1))
            return pl.BlockSpec(shape, idx)

        specs = []
        for name, arr in zip(_PACKED_ORDER, param_arrays):
            if name == "w1":
                specs.append(_ff_spec((H, tile_ff), lambda b, si, ff: (0, ff)))
            elif name == "b1":
                specs.append(_ff_spec((1, tile_ff), lambda b, si, ff: (0, ff)))
            elif name == "w2":
                specs.append(_ff_spec((tile_ff, H), lambda b, si, ff: (ff, 0)))
            else:
                specs.append(_const_spec(arr))

        in_specs = [
            pl.BlockSpec((1, tile_s, H), lambda b, si, ff: (b, si, 0)),    # x    (S-tiled)
            pl.BlockSpec((1, Sm, H), lambda b, si, ff: (b, 0, 0)),         # meta (per batch)
            pl.BlockSpec((1, tile_s, Sm), lambda b, si, ff: (b, si, 0)),   # mask (S-tiled)
        ] + specs

        out = pl.pallas_call(
            kernel,
            out_shape=jax.ShapeDtypeStruct((B, S_pad, H), x.dtype),
            grid=(B, n_s, n_ff),
            in_specs=in_specs,
            out_specs=pl.BlockSpec((1, tile_s, H), lambda b, si, ff: (b, si, 0)),
            scratch_shapes=[
                pltpu.VMEM((n_heads, Sm, dk_pad), bf16),   # cached K heads (per batch)
                pltpu.VMEM((n_heads, Sm, dk_pad), bf16),   # cached V heads (per batch)
                pltpu.VMEM((tile_s, H), bf16),             # LN2(x1)
                pltpu.VMEM((tile_s, H), jnp.float32),      # FFN accumulator (init = x1)
            ],
            compiler_params=pltpu.CompilerParams(
                dimension_semantics=("parallel", "arbitrary", "arbitrary"),
                vmem_limit_bytes=vmem_limit,
            ),
        )(x_in, meta_in, mask_in, *param_arrays)
        return jax.block_until_ready(out)

    try:
        out_pad = _call(True)
    except Exception:
        # runtime rejected single-buffered weight specs -> fall back to default buffering
        out_pad = _call(False)

    return out_pad if S_pad == S else out_pad[:, :S]


# ------------------------- params / pure-JAX reference -----------------------

def init_params(key, hidden, d_ff):
    ks = jax.random.split(key, 12)
    s = 0.05
    return {
        "wq": s * jax.random.normal(ks[0], (hidden, hidden), jnp.float32),
        "bq": s * jax.random.normal(ks[1], (1, hidden), jnp.float32),
        "wk": s * jax.random.normal(ks[2], (hidden, hidden), jnp.float32),
        "bk": s * jax.random.normal(ks[3], (1, hidden), jnp.float32),
        "wv": s * jax.random.normal(ks[4], (hidden, hidden), jnp.float32),
        "bv": s * jax.random.normal(ks[5], (1, hidden), jnp.float32),
        "wo": s * jax.random.normal(ks[6], (hidden, hidden), jnp.float32),
        "bo": s * jax.random.normal(ks[7], (1, hidden), jnp.float32),
        "ln1_g": jnp.ones((1, hidden), jnp.float32),
        "ln1_b": jnp.zeros((1, hidden), jnp.float32),
        "w1": s * jax.random.normal(ks[8], (hidden, d_ff), jnp.float32),
        "b1": s * jax.random.normal(ks[9], (1, d_ff), jnp.float32),
        "w2": s * jax.random.normal(ks[10], (d_ff, hidden), jnp.float32),
        "b2": s * jax.random.normal(ks[11], (1, hidden), jnp.float32),
        "ln2_g": jnp.ones((1, hidden), jnp.float32),
        "ln2_b": jnp.zeros((1, hidden), jnp.float32),
    }


def _layer_norm_ref(v, gamma, beta):
    mean = jnp.mean(v, axis=-1, keepdims=True)
    diff = v - mean
    n = v.shape[-1]
    var = jnp.sum(diff * diff, axis=-1, keepdims=True) / (n - 1)
    std = jnp.sqrt(var)
    return gamma * diff / (std + LN_EPS) + beta


def reference(x, meta, mask, p, n_heads):
    # Pure f32 reference with the original module's math (per-batch / per-head loops).
    outs = []
    H = x.shape[-1]
    d_k = H // n_heads
    for b in range(x.shape[0]):
        xb, mb, kb = x[b], meta[b], mask[b]
        xn = _layer_norm_ref(xb, p["ln1_g"][0], p["ln1_b"][0])
        q = xn @ p["wq"] + p["bq"][0]
        k = mb @ p["wk"] + p["bk"][0]
        v = mb @ p["wv"] + p["bv"][0]
        heads = []
        for h in range(n_heads):
            sl = slice(h * d_k, (h + 1) * d_k)
            sc = (q[:, sl] @ k[:, sl].T) / math.sqrt(d_k)
            sc = jnp.where(kb == 0, NEG_INF, sc)
            pr = jax.nn.softmax(sc, axis=-1)
            heads.append(pr @ v[:, sl])
        ctx = jnp.concatenate(heads, axis=-1)
        x1 = xb + (ctx @ p["wo"] + p["bo"][0])
        x1n = _layer_norm_ref(x1, p["ln2_g"][0], p["ln2_b"][0])
        ff = _gelu(x1n @ p["w1"] + p["b1"][0]) @ p["w2"] + p["b2"][0]
        outs.append(x1 + ff)
    return jnp.stack(outs, axis=0)


if __name__ == "__main__":
    # p_dropout = 0.0 (inference): all dropouts are identities.
    B, S, Sm, H, N_HEADS, D_FF = 2, 12, 16, 32, 4, 256
    key = jax.random.PRNGKey(0)
    kx, km, kp = jax.random.split(key, 3)

    x = jax.random.normal(kx, (B, S, H), jnp.float32)
    meta = jax.random.normal(km, (B, Sm, H), jnp.float32)
    # mask: batch 0 attends to everything; batch 1 has the last 5 key positions masked.
    mask = jnp.ones((B, S, Sm), jnp.float32)
    mask = mask.at[1, :, Sm - 5:].set(0.0)

    params = init_params(kp, H, D_FF)
    packed = pack_params(params, N_HEADS)   # one-time bf16 / head-padded / fused-KV repack

    ref = reference(x, meta, mask, params, N_HEADS)

    # default tiling (single S tile and single d_ff chunk at these small shapes)
    out = jax.block_until_ready(nova_transformer_block(x, meta, mask, packed, N_HEADS))
    assert out.shape == (B, S, H)
    assert jnp.allclose(out, ref, rtol=2e-2, atol=2e-2), "mismatch (default tiles)"

    # force the multi-tile paths: ragged-S padding, cached K/V reuse across S tiles,
    # and the d_ff-chunked FFN accumulator.
    out2 = jax.block_until_ready(
        nova_transformer_block(x, meta, mask, packed, N_HEADS, tile_s=8, tile_ff=128))
    assert jnp.allclose(out2, ref, rtol=2e-2, atol=2e-2), "mismatch (tiled)"

    print("KERNEL_OK")
</pallas_src>

<mosaic_0001>
module attributes {stable_mosaic.version = 11 : i64} {
  func.func @_transformer_block_kernel(%arg0: i32, %arg1: i32, %arg2: i32, %arg3: memref<1x12x32xf32, #tpu.memory_space<vmem>>, %arg4: memref<1x16x32xbf16, #tpu.memory_space<vmem>>, %arg5: memref<1x12x16xbf16, #tpu.memory_space<vmem>>, %arg6: memref<32x512xbf16, #tpu.memory_space<vmem>>, %arg7: memref<1x512xf32, #tpu.memory_space<vmem>>, %arg8: memref<32x1024xbf16, #tpu.memory_space<vmem>>, %arg9: memref<1x1024xf32, #tpu.memory_space<vmem>>, %arg10: memref<512x32xbf16, #tpu.memory_space<vmem>>, %arg11: memref<1x32xf32, #tpu.memory_space<vmem>>, %arg12: memref<1x32xf32, #tpu.memory_space<vmem>>, %arg13: memref<1x32xf32, #tpu.memory_space<vmem>>, %arg14: memref<32x256xbf16, #tpu.memory_space<vmem>>, %arg15: memref<1x256xf32, #tpu.memory_space<vmem>>, %arg16: memref<256x32xbf16, #tpu.memory_space<vmem>>, %arg17: memref<1x32xf32, #tpu.memory_space<vmem>>, %arg18: memref<1x32xf32, #tpu.memory_space<vmem>>, %arg19: memref<1x32xf32, #tpu.memory_space<vmem>>, %arg20: memref<1x12x32xf32, #tpu.memory_space<vmem>>, %arg21: memref<4x16x128xbf16, #tpu.memory_space<vmem>>, %arg22: memref<4x16x128xbf16, #tpu.memory_space<vmem>>, %arg23: memref<12x32xbf16, #tpu.memory_space<vmem>>, %arg24: memref<12x32xf32, #tpu.memory_space<vmem>>) attributes {dimension_semantics = [#tpu.dimension_semantics<parallel>, #tpu.dimension_semantics<arbitrary>, #tpu.dimension_semantics<arbitrary>], iteration_bounds = array<i64: 2, 1, 1>, scalar_prefetch = 0 : i64, scratch_operands = 4 : i64, tpu.core_type = #tpu.core_type<tc>, window_params = [{transform_indices = @transform_0, window_bounds = array<i64: 1, 12, 32>}, {transform_indices = @transform_1, window_bounds = array<i64: 1, 16, 32>}, {transform_indices = @transform_2, window_bounds = array<i64: 1, 12, 16>}, {pipeline_mode = #tpu.pipeline_mode<synchronous>, transform_indices = @transform_3, window_bounds = array<i64: 32, 512>}, {pipeline_mode = #tpu.pipeline_mode<synchronous>, transform_indices = @transform_4, window_bounds = array<i64: 1, 512>}, {pipeline_mode = #tpu.pipeline_mode<synchronous>, transform_indices = @transform_5, window_bounds = array<i64: 32, 1024>}, {pipeline_mode = #tpu.pipeline_mode<synchronous>, transform_indices = @transform_6, window_bounds = array<i64: 1, 1024>}, {pipeline_mode = #tpu.pipeline_mode<synchronous>, transform_indices = @transform_7, window_bounds = array<i64: 512, 32>}, {pipeline_mode = #tpu.pipeline_mode<synchronous>, transform_indices = @transform_8, window_bounds = array<i64: 1, 32>}, {pipeline_mode = #tpu.pipeline_mode<synchronous>, transform_indices = @transform_9, window_bounds = array<i64: 1, 32>}, {pipeline_mode = #tpu.pipeline_mode<synchronous>, transform_indices = @transform_10, window_bounds = array<i64: 1, 32>}, {pipeline_mode = #tpu.pipeline_mode<synchronous>, transform_indices = @transform_11, window_bounds = array<i64: 32, 256>}, {pipeline_mode = #tpu.pipeline_mode<synchronous>, transform_indices = @transform_12, window_bounds = array<i64: 1, 256>}, {pipeline_mode = #tpu.pipeline_mode<synchronous>, transform_indices = @transform_13, window_bounds = array<i64: 256, 32>}, {pipeline_mode = #tpu.pipeline_mode<synchronous>, transform_indices = @transform_14, window_bounds = array<i64: 1, 32>}, {pipeline_mode = #tpu.pipeline_mode<synchronous>, transform_indices = @transform_15, window_bounds = array<i64: 1, 32>}, {pipeline_mode = #tpu.pipeline_mode<synchronous>, transform_indices = @transform_16, window_bounds = array<i64: 1, 32>}, {transform_indices = @transform_17, window_bounds = array<i64: 1, 12, 32>}]} {
    %c0_i32 = arith.constant 0 : i32
    %0 = arith.cmpi eq, %arg1, %c0_i32 : i32
    %c0_i32_0 = arith.constant 0 : i32
    %1 = arith.cmpi eq, %arg2, %c0_i32_0 : i32
    %2 = arith.andi %0, %1 : i1
    %3 = arith.extui %2 : i1 to i32
    %c0_i32_1 = arith.constant 0 : i32
    %4 = arith.cmpi ne, %3, %c0_i32_1 : i32
    scf.if %4 {
      %c0_22 = arith.constant 0 : index
      %c0_23 = arith.constant 0 : index
      %c0_24 = arith.constant 0 : index
      %38 = vector.load %arg4[%c0_22, %c0_23, %c0_24] : memref<1x16x32xbf16, #tpu.memory_space<vmem>>, vector<1x16x32xbf16>
      %39 = vector.shape_cast %38 : vector<1x16x32xbf16> to vector<16x32xbf16>
      %c0_25 = arith.constant 0 : index
      %c0_26 = arith.constant 0 : index
      %40 = vector.load %arg8[%c0_25, %c0_26] : memref<32x1024xbf16, #tpu.memory_space<vmem>>, vector<32x1024xbf16>
      %cst_27 = arith.constant dense<0.000000e+00> : vector<16x1024xf32>
      %41 = tpu.matmul %39, %40, %cst_27 {dimension_numbers = #tpu.dot_dimension_numbers<[1], [0], [0], [1], [0, 0, 1, 1], [], []>} : vector<16x32xbf16>, vector<32x1024xbf16>, vector<16x1024xf32> -> vector<16x1024xf32>
      %c0_28 = arith.constant 0 : index
      %c0_29 = arith.constant 0 : index
      %42 = vector.load %arg9[%c0_28, %c0_29] : memref<1x1024xf32, #tpu.memory_space<vmem>>, vector<1x1024xf32>
      %43 = vector.shape_cast %42 : vector<1x1024xf32> to vector<1024xf32>
      %44 = vector.shape_cast %43 : vector<1024xf32> to vector<1x1024xf32>
      %45 = vector.broadcast %44 : vector<1x1024xf32> to vector<16x1024xf32>
      %46 = arith.addf %41, %45 : vector<16x1024xf32>
      %47 = vector.extract_strided_slice %46 {offsets = [0, 0], sizes = [16, 512], strides = [1, 1]} : vector<16x1024xf32> to vector<16x512xf32>
      %48 = arith.truncf %47 : vector<16x512xf32> to vector<16x512xbf16>
      %49 = vector.shape_cast %48 : vector<16x512xbf16> to vector<16x4x128xbf16>
      %50 = tpu.transpose %49, [1, 0, 2] : vector<16x4x128xbf16> -> vector<4x16x128xbf16>
      %c0_30 = arith.constant 0 : index
      %c0_31 = arith.constant 0 : index
      %c0_32 = arith.constant 0 : index
      %51 = vector.load %arg21[%c0_30, %c0_31, %c0_32] : memref<4x16x128xbf16, #tpu.memory_space<vmem>>, vector<4x16x128xbf16>
      tpu.vector_store %arg21[%c0_30, %c0_31, %c0_32], %50 {strides = array<i32>} : memref<4x16x128xbf16, #tpu.memory_space<vmem>>, vector<4x16x128xbf16>,
      %52 = vector.extract_strided_slice %46 {offsets = [0, 512], sizes = [16, 512], strides = [1, 1]} : vector<16x1024xf32> to vector<16x512xf32>
      %53 = arith.truncf %52 : vector<16x512xf32> to vector<16x512xbf16>
      %54 = vector.shape_cast %53 : vector<16x512xbf16> to vector<16x4x128xbf16>
      %55 = tpu.transpose %54, [1, 0, 2] : vector<16x4x128xbf16> -> vector<4x16x128xbf16>
      %c0_33 = arith.constant 0 : index
      %c0_34 = arith.constant 0 : index
      %c0_35 = arith.constant 0 : index
      %56 = vector.load %arg22[%c0_33, %c0_34, %c0_35] : memref<4x16x128xbf16, #tpu.memory_space<vmem>>, vector<4x16x128xbf16>
      tpu.vector_store %arg22[%c0_33, %c0_34, %c0_35], %55 {strides = array<i32>} : memref<4x16x128xbf16, #tpu.memory_space<vmem>>, vector<4x16x128xbf16>,
    } else {
    }
    %c0_i32_2 = arith.constant 0 : i32
    %5 = arith.cmpi eq, %arg2, %c0_i32_2 : i32
    %6 = arith.extui %5 : i1 to i32
    %c0_i32_3 = arith.constant 0 : i32
    %7 = arith.cmpi ne, %6, %c0_i32_3 : i32
    scf.if %7 {
      %c0_22 = arith.constant 0 : index
      %c0_23 = arith.constant 0 : index
      %c0_24 = arith.constant 0 : index
      %38 = vector.load %arg3[%c0_22, %c0_23, %c0_24] : memref<1x12x32xf32, #tpu.memory_space<vmem>>, vector<1x12x32xf32>
      %39 = vector.shape_cast %38 : vector<1x12x32xf32> to vector<12x32xf32>
      %c0_25 = arith.constant 0 : index
      %c0_26 = arith.constant 0 : index
      %c0_27 = arith.constant 0 : index
      %40 = vector.load %arg5[%c0_25, %c0_26, %c0_27] : memref<1x12x16xbf16, #tpu.memory_space<vmem>>, vector<1x12x16xbf16>
      %41 = vector.shape_cast %40 : vector<1x12x16xbf16> to vector<12x16xbf16>
      %42 = arith.extf %41 : vector<12x16xbf16> to vector<12x16xf32>
      %cst_28 = arith.constant 1.000000e+00 : f32
      %43 = vector.broadcast %cst_28 : f32 to vector<12x16xf32>
      %44 = arith.subf %42, %43 : vector<12x16xf32>
      %cst_29 = arith.constant 1.000000e+09 : f32
      %45 = vector.broadcast %cst_29 : f32 to vector<12x16xf32>
      %46 = arith.mulf %44, %45 : vector<12x16xf32>
      %c0_30 = arith.constant 0 : index
      %c0_31 = arith.constant 0 : index
      %47 = vector.load %arg12[%c0_30, %c0_31] : memref<1x32xf32, #tpu.memory_space<vmem>>, vector<1x32xf32>
      %48 = vector.shape_cast %47 : vector<1x32xf32> to vector<32xf32>
      %c0_32 = arith.constant 0 : index
      %c0_33 = arith.constant 0 : index
      %49 = vector.load %arg13[%c0_32, %c0_33] : memref<1x32xf32, #tpu.memory_space<vmem>>, vector<1x32xf32>
      %50 = vector.shape_cast %49 : vector<1x32xf32> to vector<32xf32>
      %cst_34 = arith.constant dense<0.000000e+00> : vector<12xf32>
      %51 = vector.multi_reduction <add>, %39, %cst_34 [1] : vector<12x32xf32> to vector<12xf32>
      %52 = vector.shape_cast %51 : vector<12xf32> to vector<12x1xf32>
      %cst_35 = arith.constant 3.200000e+01 : f32
      %53 = vector.broadcast %cst_35 : f32 to vector<12x1xf32>
      %54 = arith.divf %52, %53 : vector<12x1xf32>
      %55 = vector.broadcast %54 : vector<12x1xf32> to vector<12x32xf32>
      %56 = arith.subf %39, %55 : vector<12x32xf32>
      %57 = arith.mulf %56, %56 : vector<12x32xf32>
      %cst_36 = arith.constant dense<0.000000e+00> : vector<12xf32>
      %58 = vector.multi_reduction <add>, %57, %cst_36 [1] : vector<12x32xf32> to vector<12xf32>
      %59 = vector.shape_cast %58 : vector<12xf32> to vector<12x1xf32>
      %cst_37 = arith.constant 0.0322580636 : f32
      %60 = vector.broadcast %cst_37 : f32 to vector<12x1xf32>
      %61 = arith.mulf %59, %60 : vector<12x1xf32>
      %62 = math.sqrt %61 : vector<12x1xf32>
      %cst_38 = arith.constant 9.99999997E-7 : f32
      %63 = vector.broadcast %cst_38 : f32 to vector<12x1xf32>
      %64 = arith.addf %62, %63 : vector<12x1xf32>
      %65 = tpu.reciprocal %64 {approx = true} : vector<12x1xf32> -> vector<12x1xf32>
      %66 = vector.broadcast %65 : vector<12x1xf32> to vector<12x32xf32>
      %67 = arith.mulf %56, %66 : vector<12x32xf32>
      %68 = vector.shape_cast %48 : vector<32xf32> to vector<1x32xf32>
      %69 = vector.broadcast %68 : vector<1x32xf32> to vector<12x32xf32>
      %70 = arith.mulf %69, %67 : vector<12x32xf32>
      %71 = vector.shape_cast %50 : vector<32xf32> to vector<1x32xf32>
      %72 = vector.broadcast %71 : vector<1x32xf32> to vector<12x32xf32>
      %73 = arith.addf %70, %72 : vector<12x32xf32>
      %74 = arith.truncf %73 : vector<12x32xf32> to vector<12x32xbf16>
      %c0_39 = arith.constant 0 : index
      %c0_40 = arith.constant 0 : index
      %75 = vector.load %arg6[%c0_39, %c0_40] : memref<32x512xbf16, #tpu.memory_space<vmem>>, vector<32x512xbf16>
      %cst_41 = arith.constant dense<0.000000e+00> : vector<12x512xf32>
      %76 = tpu.matmul %74, %75, %cst_41 {dimension_numbers = #tpu.dot_dimension_numbers<[1], [0], [0], [1], [0, 0, 1, 1], [], []>} : vector<12x32xbf16>, vector<32x512xbf16>, vector<12x512xf32> -> vector<12x512xf32>
      %c0_42 = arith.constant 0 : index
      %c0_43 = arith.constant 0 : index
      %77 = vector.load %arg7[%c0_42, %c0_43] : memref<1x512xf32, #tpu.memory_space<vmem>>, vector<1x512xf32>
      %78 = vector.shape_cast %77 : vector<1x512xf32> to vector<512xf32>
      %79 = vector.shape_cast %78 : vector<512xf32> to vector<1x512xf32>
      %80 = vector.broadcast %79 : vector<1x512xf32> to vector<12x512xf32>
      %81 = arith.addf %76, %80 : vector<12x512xf32>
      %cst_44 = arith.constant 0.353553385 : f32
      %82 = vector.broadcast %cst_44 : f32 to vector<12x512xf32>
      %83 = arith.mulf %81, %82 : vector<12x512xf32>
      %84 = arith.truncf %83 : vector<12x512xf32> to vector<12x512xbf16>
      %85 = vector.shape_cast %84 : vector<12x512xbf16> to vector<12x4x128xbf16>
      %86 = tpu.transpose %85, [1, 0, 2] : vector<12x4x128xbf16> -> vector<4x12x128xbf16>
      %c0_45 = arith.constant 0 : index
      %c0_46 = arith.constant 0 : index
      %c0_47 = arith.constant 0 : index
      %87 = vector.load %arg21[%c0_45, %c0_46, %c0_47] : memref<4x16x128xbf16, #tpu.memory_space<vmem>>, vector<4x16x128xbf16>
      "tpu.trace_start"() <{level = 10 : i32, message = "hqd,hkd->hqk"}> : () -> ()
      %cst_48 = arith.constant dense<0.000000e+00> : vector<4x12x16xf32>
      %88 = tpu.matmul %86, %87, %cst_48 {dimension_numbers = #tpu.dot_dimension_numbers<[2], [2], [1], [1], [0, 0, 0, 1, 1, 1], [0], [0]>} : vector<4x12x128xbf16>, vector<4x16x128xbf16>, vector<4x12x16xf32> -> vector<4x12x16xf32>
      "tpu.trace_stop"() : () -> ()
      %89 = vector.shape_cast %46 : vector<12x16xf32> to vector<1x12x16xf32>
      %90 = vector.broadcast %89 : vector<1x12x16xf32> to vector<4x12x16xf32>
      %91 = arith.addf %88, %90 : vector<4x12x16xf32>
      %cst_49 = arith.constant dense<0xFF800000> : vector<4x12xf32>
      %92 = vector.multi_reduction <maximumf>, %91, %cst_49 [2] : vector<4x12x16xf32> to vector<4x12xf32>
      %93 = vector.shape_cast %92 : vector<4x12xf32> to vector<4x12x1xf32>
      %94 = vector.broadcast %93 : vector<4x12x1xf32> to vector<4x12x16xf32>
      %95 = arith.subf %91, %94 : vector<4x12x16xf32>
      %96 = math.exp %95 : vector<4x12x16xf32>
      %cst_50 = arith.constant dense<0.000000e+00> : vector<4x12xf32>
      %97 = vector.multi_reduction <add>, %96, %cst_50 [2] : vector<4x12x16xf32> to vector<4x12xf32>
      %98 = vector.shape_cast %97 : vector<4x12xf32> to vector<4x12x1xf32>
      %99 = tpu.reciprocal %98 {approx = true} : vector<4x12x1xf32> -> vector<4x12x1xf32>
      %100 = vector.broadcast %99 : vector<4x12x1xf32> to vector<4x12x16xf32>
      %101 = arith.mulf %96, %100 : vector<4x12x16xf32>
      %102 = arith.truncf %101 : vector<4x12x16xf32> to vector<4x12x16xbf16>
      %c0_51 = arith.constant 0 : index
      %c0_52 = arith.constant 0 : index
      %c0_53 = arith.constant 0 : index
      %103 = vector.load %arg22[%c0_51, %c0_52, %c0_53] : memref<4x16x128xbf16, #tpu.memory_space<vmem>>, vector<4x16x128xbf16>
      "tpu.trace_start"() <{level = 10 : i32, message = "hqk,hkd->hqd"}> : () -> ()
      %cst_54 = arith.constant dense<0.000000e+00> : vector<4x12x128xf32>
      %104 = tpu.matmul %102, %103, %cst_54 {dimension_numbers = #tpu.dot_dimension_numbers<[2], [1], [1], [2], [0, 0, 0, 1, 1, 2], [0], [0]>} : vector<4x12x16xbf16>, vector<4x16x128xbf16>, vector<4x12x128xf32> -> vector<4x12x128xf32>
      "tpu.trace_stop"() : () -> ()
      %105 = arith.truncf %104 : vector<4x12x128xf32> to vector<4x12x128xbf16>
      %106 = tpu.transpose %105, [1, 0, 2] : vector<4x12x128xbf16> -> vector<12x4x128xbf16>
      %107 = vector.shape_cast %106 : vector<12x4x128xbf16> to vector<12x512xbf16>
      %c0_55 = arith.constant 0 : index
      %c0_56 = arith.constant 0 : index
      %108 = vector.load %arg10[%c0_55, %c0_56] : memref<512x32xbf16, #tpu.memory_space<vmem>>, vector<512x32xbf16>
      %cst_57 = arith.constant dense<0.000000e+00> : vector<12x32xf32>
      %109 = tpu.matmul %107, %108, %cst_57 {dimension_numbers = #tpu.dot_dimension_numbers<[1], [0], [0], [1], [0, 0, 1, 1], [], []>} : vector<12x512xbf16>, vector<512x32xbf16>, vector<12x32xf32> -> vector<12x32xf32>
      %c0_58 = arith.constant 0 : index
      %c0_59 = arith.constant 0 : index
      %110 = vector.load %arg11[%c0_58, %c0_59] : memref<1x32xf32, #tpu.memory_space<vmem>>, vector<1x32xf32>
      %111 = vector.shape_cast %110 : vector<1x32xf32> to vector<32xf32>
      %112 = vector.shape_cast %111 : vector<32xf32> to vector<1x32xf32>
      %113 = vector.broadcast %112 : vector<1x32xf32> to vector<12x32xf32>
      %114 = arith.addf %109, %113 : vector<12x32xf32>
      %115 = arith.addf %39, %114 : vector<12x32xf32>
      %c0_60 = arith.constant 0 : index
      %c0_61 = arith.constant 0 : index
      %116 = vector.load %arg24[%c0_60, %c0_61] : memref<12x32xf32, #tpu.memory_space<vmem>>, vector<12x32xf32>
      tpu.vector_store %arg24[%c0_60, %c0_61], %115 {strides = array<i32>} : memref<12x32xf32, #tpu.memory_space<vmem>>, vector<12x32xf32>,
      %c0_62 = arith.constant 0 : index
      %c0_63 = arith.constant 0 : index
      %117 = vector.load %arg18[%c0_62, %c0_63] : memref<1x32xf32, #tpu.memory_space<vmem>>, vector<1x32xf32>
      %118 = vector.shape_cast %117 : vector<1x32xf32> to vector<32xf32>
      %c0_64 = arith.constant 0 : index
      %c0_65 = arith.constant 0 : index
      %119 = vector.load %arg19[%c0_64, %c0_65] : memref<1x32xf32, #tpu.memory_space<vmem>>, vector<1x32xf32>
      %120 = vector.shape_cast %119 : vector<1x32xf32> to vector<32xf32>
      %cst_66 = arith.constant dense<0.000000e+00> : vector<12xf32>
      %121 = vector.multi_reduction <add>, %115, %cst_66 [1] : vector<12x32xf32> to vector<12xf32>
      %122 = vector.shape_cast %121 : vector<12xf32> to vector<12x1xf32>
      %cst_67 = arith.constant 3.200000e+01 : f32
      %123 = vector.broadcast %cst_67 : f32 to vector<12x1xf32>
      %124 = arith.divf %122, %123 : vector<12x1xf32>
      %125 = vector.broadcast %124 : vector<12x1xf32> to vector<12x32xf32>
      %126 = arith.subf %115, %125 : vector<12x32xf32>
      %127 = arith.mulf %126, %126 : vector<12x32xf32>
      %cst_68 = arith.constant dense<0.000000e+00> : vector<12xf32>
      %128 = vector.multi_reduction <add>, %127, %cst_68 [1] : vector<12x32xf32> to vector<12xf32>
      %129 = vector.shape_cast %128 : vector<12xf32> to vector<12x1xf32>
      %cst_69 = arith.constant 0.0322580636 : f32
      %130 = vector.broadcast %cst_69 : f32 to vector<12x1xf32>
      %131 = arith.mulf %129, %130 : vector<12x1xf32>
      %132 = math.sqrt %131 : vector<12x1xf32>
      %cst_70 = arith.constant 9.99999997E-7 : f32
      %133 = vector.broadcast %cst_70 : f32 to vector<12x1xf32>
      %134 = arith.addf %132, %133 : vector<12x1xf32>
      %135 = tpu.reciprocal %134 {approx = true} : vector<12x1xf32> -> vector<12x1xf32>
      %136 = vector.broadcast %135 : vector<12x1xf32> to vector<12x32xf32>
      %137 = arith.mulf %126, %136 : vector<12x32xf32>
      %138 = vector.shape_cast %118 : vector<32xf32> to vector<1x32xf32>
      %139 = vector.broadcast %138 : vector<1x32xf32> to vector<12x32xf32>
      %140 = arith.mulf %139, %137 : vector<12x32xf32>
      %141 = vector.shape_cast %120 : vector<32xf32> to vector<1x32xf32>
      %142 = vector.broadcast %141 : vector<1x32xf32> to vector<12x32xf32>
      %143 = arith.addf %140, %142 : vector<12x32xf32>
      %144 = arith.truncf %143 : vector<12x32xf32> to vector<12x32xbf16>
      %c0_71 = arith.constant 0 : index
      %c0_72 = arith.constant 0 : index
      %145 = vector.load %arg23[%c0_71, %c0_72] : memref<12x32xbf16, #tpu.memory_space<vmem>>, vector<12x32xbf16>
      tpu.vector_store %arg23[%c0_71, %c0_72], %144 {strides = array<i32>} : memref<12x32xbf16, #tpu.memory_space<vmem>>, vector<12x32xbf16>,
    } else {
    }
    %c0 = arith.constant 0 : index
    %c0_4 = arith.constant 0 : index
    %8 = vector.load %arg23[%c0, %c0_4] : memref<12x32xbf16, #tpu.memory_space<vmem>>, vector<12x32xbf16>
    %c0_5 = arith.constant 0 : index
    %c0_6 = arith.constant 0 : index
    %9 = vector.load %arg14[%c0_5, %c0_6] : memref<32x256xbf16, #tpu.memory_space<vmem>>, vector<32x256xbf16>
    %cst = arith.constant dense<0.000000e+00> : vector<12x256xf32>
    %10 = tpu.matmul %8, %9, %cst {dimension_numbers = #tpu.dot_dimension_numbers<[1], [0], [0], [1], [0, 0, 1, 1], [], []>} : vector<12x32xbf16>, vector<32x256xbf16>, vector<12x256xf32> -> vector<12x256xf32>
    %c0_7 = arith.constant 0 : index
    %c0_8 = arith.constant 0 : index
    %11 = vector.load %arg15[%c0_7, %c0_8] : memref<1x256xf32, #tpu.memory_space<vmem>>, vector<1x256xf32>
    %12 = vector.shape_cast %11 : vector<1x256xf32> to vector<256xf32>
    %13 = vector.shape_cast %12 : vector<256xf32> to vector<1x256xf32>
    %14 = vector.broadcast %13 : vector<1x256xf32> to vector<12x256xf32>
    %15 = arith.addf %10, %14 : vector<12x256xf32>
    %cst_9 = arith.constant 5.000000e-01 : f32
    %16 = vector.broadcast %cst_9 : f32 to vector<12x256xf32>
    %17 = arith.mulf %16, %15 : vector<12x256xf32>
    %cst_10 = arith.constant 4.471500e-02 : f32
    %18 = vector.broadcast %cst_10 : f32 to vector<12x256xf32>
    %19 = arith.mulf %18, %15 : vector<12x256xf32>
    %20 = arith.mulf %19, %15 : vector<12x256xf32>
    %21 = arith.mulf %20, %15 : vector<12x256xf32>
    %22 = arith.addf %15, %21 : vector<12x256xf32>
    %cst_11 = arith.constant 0.797884583 : f32
    %23 = vector.broadcast %cst_11 : f32 to vector<12x256xf32>
    %24 = arith.mulf %23, %22 : vector<12x256xf32>
    %25 = math.tanh %24 : vector<12x256xf32>
    %cst_12 = arith.constant 1.000000e+00 : f32
    %26 = vector.broadcast %cst_12 : f32 to vector<12x256xf32>
    %27 = arith.addf %26, %25 : vector<12x256xf32>
    %28 = arith.mulf %17, %27 : vector<12x256xf32>
    %c0_13 = arith.constant 0 : index
    %c0_14 = arith.constant 0 : index
    %29 = vector.load %arg24[%c0_13, %c0_14] : memref<12x32xf32, #tpu.memory_space<vmem>>, vector<12x32xf32>
    %30 = arith.truncf %28 : vector<12x256xf32> to vector<12x256xbf16>
    %c0_15 = arith.constant 0 : index
    %c0_16 = arith.constant 0 : index
    %31 = vector.load %arg16[%c0_15, %c0_16] : memref<256x32xbf16, #tpu.memory_space<vmem>>, vector<256x32xbf16>
    %cst_17 = arith.constant dense<0.000000e+00> : vector<12x32xf32>
    %32 = tpu.matmul %30, %31, %cst_17 {dimension_numbers = #tpu.dot_dimension_numbers<[1], [0], [0], [1], [0, 0, 1, 1], [], []>} : vector<12x256xbf16>, vector<256x32xbf16>, vector<12x32xf32> -> vector<12x32xf32>
    %33 = arith.addf %29, %32 : vector<12x32xf32>
    %c0_18 = arith.constant 0 : index
    %c0_19 = arith.constant 0 : index
    %34 = vector.load %arg24[%c0_18, %c0_19] : memref<12x32xf32, #tpu.memory_space<vmem>>, vector<12x32xf32>
    tpu.vector_store %arg24[%c0_18, %c0_19], %33 {strides = array<i32>} : memref<12x32xf32, #tpu.memory_space<vmem>>, vector<12x32xf32>,
    %c0_i32_20 = arith.constant 0 : i32
    %35 = arith.cmpi eq, %arg2, %c0_i32_20 : i32
    %36 = arith.extui %35 : i1 to i32
    %c0_i32_21 = arith.constant 0 : i32
    %37 = arith.cmpi ne, %36, %c0_i32_21 : i32
    scf.if %37 {
      %c0_22 = arith.constant 0 : index
      %c0_23 = arith.constant 0 : index
      %38 = vector.load %arg24[%c0_22, %c0_23] : memref<12x32xf32, #tpu.memory_space<vmem>>, vector<12x32xf32>
      %c0_24 = arith.constant 0 : index
      %c0_25 = arith.constant 0 : index
      %39 = vector.load %arg17[%c0_24, %c0_25] : memref<1x32xf32, #tpu.memory_space<vmem>>, vector<1x32xf32>
      %40 = vector.shape_cast %39 : vector<1x32xf32> to vector<32xf32>
      %41 = vector.shape_cast %40 : vector<32xf32> to vector<1x32xf32>
      %42 = vector.broadcast %41 : vector<1x32xf32> to vector<12x32xf32>
      %43 = arith.addf %38, %42 : vector<12x32xf32>
      %c0_26 = arith.constant 0 : index
      %c0_27 = arith.constant 0 : index
      %c0_28 = arith.constant 0 : index
      %44 = vector.load %arg20[%c0_26, %c0_27, %c0_28] : memref<1x12x32xf32, #tpu.memory_space<vmem>>, vector<1x12x32xf32>
      %45 = vector.shape_cast %44 : vector<1x12x32xf32> to vector<12x32xf32>
      %46 = vector.shape_cast %43 : vector<12x32xf32> to vector<1x12x32xf32>
      tpu.vector_store %arg20[%c0_26, %c0_27, %c0_28], %46 {strides = array<i32>} : memref<1x12x32xf32, #tpu.memory_space<vmem>>, vector<1x12x32xf32>,
    } else {
    }
    return
  }
  func.func @transform_0(%arg0: i32, %arg1: i32, %arg2: i32) -> (i32, i32, i32) {
    %c0_i32 = arith.constant 0 : i32
    %c0_i32_0 = arith.constant 0 : i32
    return %arg0, %arg1, %c0_i32 : i32, i32, i32
  }
  func.func @transform_1(%arg0: i32, %arg1: i32, %arg2: i32) -> (i32, i32, i32) {
    %c0_i32 = arith.constant 0 : i32
    %c0_i32_0 = arith.constant 0 : i32
    %c0_i32_1 = arith.constant 0 : i32
    return %arg0, %c0_i32, %c0_i32_0 : i32, i32, i32
  }
  func.func @transform_2(%arg0: i32, %arg1: i32, %arg2: i32) -> (i32, i32, i32) {
    %c0_i32 = arith.constant 0 : i32
    %c0_i32_0 = arith.constant 0 : i32
    return %arg0, %arg1, %c0_i32 : i32, i32, i32
  }
  func.func @transform_3(%arg0: i32, %arg1: i32, %arg2: i32) -> (i32, i32) {
    %c0_i32 = arith.constant 0 : i32
    %c0_i32_0 = arith.constant 0 : i32
    %c0_i32_1 = arith.constant 0 : i32
    return %c0_i32, %c0_i32_0 : i32, i32
  }
  func.func @transform_4(%arg0: i32, %arg1: i32, %arg2: i32) -> (i32, i32) {
    %c0_i32 = arith.constant 0 : i32
    %c0_i32_0 = arith.constant 0 : i32
    %c0_i32_1 = arith.constant 0 : i32
    return %c0_i32, %c0_i32_0 : i32, i32
  }
  func.func @transform_5(%arg0: i32, %arg1: i32, %arg2: i32) -> (i32, i32) {
    %c0_i32 = arith.constant 0 : i32
    %c0_i32_0 = arith.constant 0 : i32
    %c0_i32_1 = arith.constant 0 : i32
    return %c0_i32, %c0_i32_0 : i32, i32
  }
  func.func @transform_6(%arg0: i32, %arg1: i32, %arg2: i32) -> (i32, i32) {
    %c0_i32 = arith.constant 0 : i32
    %c0_i32_0 = arith.constant 0 : i32
    %c0_i32_1 = arith.constant 0 : i32
    return %c0_i32, %c0_i32_0 : i32, i32
  }
  func.func @transform_7(%arg0: i32, %arg1: i32, %arg2: i32) -> (i32, i32) {
    %c0_i32 = arith.constant 0 : i32
    %c0_i32_0 = arith.constant 0 : i32
    %c0_i32_1 = arith.constant 0 : i32
    return %c0_i32, %c0_i32_0 : i32, i32
  }
  func.func @transform_8(%arg0: i32, %arg1: i32, %arg2: i32) -> (i32, i32) {
    %c0_i32 = arith.constant 0 : i32
    %c0_i32_0 = arith.constant 0 : i32
    %c0_i32_1 = arith.constant 0 : i32
    return %c0_i32, %c0_i32_0 : i32, i32
  }
  func.func @transform_9(%arg0: i32, %arg1: i32, %arg2: i32) -> (i32, i32) {
    %c0_i32 = arith.constant 0 : i32
    %c0_i32_0 = arith.constant 0 : i32
    %c0_i32_1 = arith.constant 0 : i32
    return %c0_i32, %c0_i32_0 : i32, i32
  }
  func.func @transform_10(%arg0: i32, %arg1: i32, %arg2: i32) -> (i32, i32) {
    %c0_i32 = arith.constant 0 : i32
    %c0_i32_0 = arith.constant 0 : i32
    %c0_i32_1 = arith.constant 0 : i32
    return %c0_i32, %c0_i32_0 : i32, i32
  }
  func.func @transform_11(%arg0: i32, %arg1: i32, %arg2: i32) -> (i32, i32) {
    %c0_i32 = arith.constant 0 : i32
    %c0_i32_0 = arith.constant 0 : i32
    return %c0_i32, %arg2 : i32, i32
  }
  func.func @transform_12(%arg0: i32, %arg1: i32, %arg2: i32) -> (i32, i32) {
    %c0_i32 = arith.constant 0 : i32
    %c0_i32_0 = arith.constant 0 : i32
    return %c0_i32, %arg2 : i32, i32
  }
  func.func @transform_13(%arg0: i32, %arg1: i32, %arg2: i32) -> (i32, i32) {
    %c0_i32 = arith.constant 0 : i32
    %c0_i32_0 = arith.constant 0 : i32
    return %arg2, %c0_i32 : i32, i32
  }
  func.func @transform_14(%arg0: i32, %arg1: i32, %arg2: i32) -> (i32, i32) {
    %c0_i32 = arith.constant 0 : i32
    %c0_i32_0 = arith.constant 0 : i32
    %c0_i32_1 = arith.constant 0 : i32
    return %c0_i32, %c0_i32_0 : i32, i32
  }
  func.func @transform_15(%arg0: i32, %arg1: i32, %arg2: i32) -> (i32, i32) {
    %c0_i32 = arith.constant 0 : i32
    %c0_i32_0 = arith.constant 0 : i32
    %c0_i32_1 = arith.constant 0 : i32
    return %c0_i32, %c0_i32_0 : i32, i32
  }
  func.func @transform_16(%arg0: i32, %arg1: i32, %arg2: i32) -> (i32, i32) {
    %c0_i32 = arith.constant 0 : i32
    %c0_i32_0 = arith.constant 0 : i32
    %c0_i32_1 = arith.constant 0 : i32
    return %c0_i32, %c0_i32_0 : i32, i32
  }
  func.func @transform_17(%arg0: i32, %arg1: i32, %arg2: i32) -> (i32, i32, i32) {
    %c0_i32 = arith.constant 0 : i32
    %c0_i32_0 = arith.constant 0 : i32
    return %arg0, %arg1, %c0_i32 : i32, i32, i32
  }
}

module attributes {stable_mosaic.version = 11 : i64} {
  func.func @_transformer_block_kernel(%arg0: i32, %arg1: i32, %arg2: i32, %arg3: memref<1x12x32xf32, #tpu.memory_space<vmem>>, %arg4: memref<1x16x32xbf16, #tpu.memory_space<vmem>>, %arg5: memref<1x12x16xbf16, #tpu.memory_space<vmem>>, %arg6: memref<32x512xbf16, #tpu.memory_space<vmem>>, %arg7: memref<1x512xf32, #tpu.memory_space<vmem>>, %arg8: memref<32x1024xbf16, #tpu.memory_space<vmem>>, %arg9: memref<1x1024xf32, #tpu.memory_space<vmem>>, %arg10: memref<512x32xbf16, #tpu.memory_space<vmem>>, %arg11: memref<1x32xf32, #tpu.memory_space<vmem>>, %arg12: memref<1x32xf32, #tpu.memory_space<vmem>>, %arg13: memref<1x32xf32, #tpu.memory_space<vmem>>, %arg14: memref<32x256xbf16, #tpu.memory_space<vmem>>, %arg15: memref<1x256xf32, #tpu.memory_space<vmem>>, %arg16: memref<256x32xbf16, #tpu.memory_space<vmem>>, %arg17: memref<1x32xf32, #tpu.memory_space<vmem>>, %arg18: memref<1x32xf32, #tpu.memory_space<vmem>>, %arg19: memref<1x32xf32, #tpu.memory_space<vmem>>, %arg20: memref<1x12x32xf32, #tpu.memory_space<vmem>>, %arg21: memref<4x16x128xbf16, #tpu.memory_space<vmem>>, %arg22: memref<4x16x128xbf16, #tpu.memory_space<vmem>>, %arg23: memref<12x32xbf16, #tpu.memory_space<vmem>>, %arg24: memref<12x32xf32, #tpu.memory_space<vmem>>) attributes {dimension_semantics = [#tpu.dimension_semantics<parallel>, #tpu.dimension_semantics<arbitrary>, #tpu.dimension_semantics<arbitrary>], iteration_bounds = array<i64: 2, 1, 1>, scalar_prefetch = 0 : i64, scratch_operands = 4 : i64, tpu.core_type = #tpu.core_type<tc>, window_params = [{transform_indices = @transform_0, window_bounds = array<i64: 1, 12, 32>}, {transform_indices = @transform_1, window_bounds = array<i64: 1, 16, 32>}, {transform_indices = @transform_2, window_bounds = array<i64: 1, 12, 16>}, {pipeline_mode = #tpu.pipeline_mode<synchronous>, transform_indices = @transform_3, window_bounds = array<i64: 32, 512>}, {pipeline_mode = #tpu.pipeline_mode<synchronous>, transform_indices = @transform_4, window_bounds = array<i64: 1, 512>}, {pipeline_mode = #tpu.pipeline_mode<synchronous>, transform_indices = @transform_5, window_bounds = array<i64: 32, 1024>}, {pipeline_mode = #tpu.pipeline_mode<synchronous>, transform_indices = @transform_6, window_bounds = array<i64: 1, 1024>}, {pipeline_mode = #tpu.pipeline_mode<synchronous>, transform_indices = @transform_7, window_bounds = array<i64: 512, 32>}, {pipeline_mode = #tpu.pipeline_mode<synchronous>, transform_indices = @transform_8, window_bounds = array<i64: 1, 32>}, {pipeline_mode = #tpu.pipeline_mode<synchronous>, transform_indices = @transform_9, window_bounds = array<i64: 1, 32>}, {pipeline_mode = #tpu.pipeline_mode<synchronous>, transform_indices = @transform_10, window_bounds = array<i64: 1, 32>}, {transform_indices = @transform_11, window_bounds = array<i64: 32, 256>}, {transform_indices = @transform_12, window_bounds = array<i64: 1, 256>}, {transform_indices = @transform_13, window_bounds = array<i64: 256, 32>}, {pipeline_mode = #tpu.pipeline_mode<synchronous>, transform_indices = @transform_14, window_bounds = array<i64: 1, 32>}, {pipeline_mode = #tpu.pipeline_mode<synchronous>, transform_indices = @transform_15, window_bounds = array<i64: 1, 32>}, {pipeline_mode = #tpu.pipeline_mode<synchronous>, transform_indices = @transform_16, window_bounds = array<i64: 1, 32>}, {transform_indices = @transform_17, window_bounds = array<i64: 1, 12, 32>}]} {
    %c0_i32 = arith.constant 0 : i32
    %0 = arith.cmpi eq, %arg1, %c0_i32 : i32
    %c0_i32_0 = arith.constant 0 : i32
    %1 = arith.cmpi eq, %arg2, %c0_i32_0 : i32
    %2 = arith.andi %0, %1 : i1
    %3 = arith.extui %2 : i1 to i32
    %c0_i32_1 = arith.constant 0 : i32
    %4 = arith.cmpi ne, %3, %c0_i32_1 : i32
    scf.if %4 {
      %c0_22 = arith.constant 0 : index
      %c0_23 = arith.constant 0 : index
      %c0_24 = arith.constant 0 : index
      %38 = vector.load %arg4[%c0_22, %c0_23, %c0_24] : memref<1x16x32xbf16, #tpu.memory_space<vmem>>, vector<1x16x32xbf16>
      %39 = vector.shape_cast %38 : vector<1x16x32xbf16> to vector<16x32xbf16>
      %c0_25 = arith.constant 0 : index
      %c0_26 = arith.constant 0 : index
      %40 = vector.load %arg8[%c0_25, %c0_26] : memref<32x1024xbf16, #tpu.memory_space<vmem>>, vector<32x1024xbf16>
      %cst_27 = arith.constant dense<0.000000e+00> : vector<16x1024xf32>
      %41 = tpu.matmul %39, %40, %cst_27 {dimension_numbers = #tpu.dot_dimension_numbers<[1], [0], [0], [1], [0, 0, 1, 1], [], []>} : vector<16x32xbf16>, vector<32x1024xbf16>, vector<16x1024xf32> -> vector<16x1024xf32>
      %c0_28 = arith.constant 0 : index
      %c0_29 = arith.constant 0 : index
      %42 = vector.load %arg9[%c0_28, %c0_29] : memref<1x1024xf32, #tpu.memory_space<vmem>>, vector<1x1024xf32>
      %43 = vector.shape_cast %42 : vector<1x1024xf32> to vector<1024xf32>
      %44 = vector.shape_cast %43 : vector<1024xf32> to vector<1x1024xf32>
      %45 = vector.broadcast %44 : vector<1x1024xf32> to vector<16x1024xf32>
      %46 = arith.addf %41, %45 : vector<16x1024xf32>
      %47 = vector.extract_strided_slice %46 {offsets = [0, 0], sizes = [16, 512], strides = [1, 1]} : vector<16x1024xf32> to vector<16x512xf32>
      %48 = arith.truncf %47 : vector<16x512xf32> to vector<16x512xbf16>
      %49 = vector.shape_cast %48 : vector<16x512xbf16> to vector<16x4x128xbf16>
      %50 = tpu.transpose %49, [1, 0, 2] : vector<16x4x128xbf16> -> vector<4x16x128xbf16>
      %c0_30 = arith.constant 0 : index
      %c0_31 = arith.constant 0 : index
      %c0_32 = arith.constant 0 : index
      %51 = vector.load %arg21[%c0_30, %c0_31, %c0_32] : memref<4x16x128xbf16, #tpu.memory_space<vmem>>, vector<4x16x128xbf16>
      tpu.vector_store %arg21[%c0_30, %c0_31, %c0_32], %50 {strides = array<i32>} : memref<4x16x128xbf16, #tpu.memory_space<vmem>>, vector<4x16x128xbf16>,
      %52 = vector.extract_strided_slice %46 {offsets = [0, 512], sizes = [16, 512], strides = [1, 1]} : vector<16x1024xf32> to vector<16x512xf32>
      %53 = arith.truncf %52 : vector<16x512xf32> to vector<16x512xbf16>
      %54 = vector.shape_cast %53 : vector<16x512xbf16> to vector<16x4x128xbf16>
      %55 = tpu.transpose %54, [1, 0, 2] : vector<16x4x128xbf16> -> vector<4x16x128xbf16>
      %c0_33 = arith.constant 0 : index
      %c0_34 = arith.constant 0 : index
      %c0_35 = arith.constant 0 : index
      %56 = vector.load %arg22[%c0_33, %c0_34, %c0_35] : memref<4x16x128xbf16, #tpu.memory_space<vmem>>, vector<4x16x128xbf16>
      tpu.vector_store %arg22[%c0_33, %c0_34, %c0_35], %55 {strides = array<i32>} : memref<4x16x128xbf16, #tpu.memory_space<vmem>>, vector<4x16x128xbf16>,
    } else {
    }
    %c0_i32_2 = arith.constant 0 : i32
    %5 = arith.cmpi eq, %arg2, %c0_i32_2 : i32
    %6 = arith.extui %5 : i1 to i32
    %c0_i32_3 = arith.constant 0 : i32
    %7 = arith.cmpi ne, %6, %c0_i32_3 : i32
    scf.if %7 {
      %c0_22 = arith.constant 0 : index
      %c0_23 = arith.constant 0 : index
      %c0_24 = arith.constant 0 : index
      %38 = vector.load %arg3[%c0_22, %c0_23, %c0_24] : memref<1x12x32xf32, #tpu.memory_space<vmem>>, vector<1x12x32xf32>
      %39 = vector.shape_cast %38 : vector<1x12x32xf32> to vector<12x32xf32>
      %c0_25 = arith.constant 0 : index
      %c0_26 = arith.constant 0 : index
      %c0_27 = arith.constant 0 : index
      %40 = vector.load %arg5[%c0_25, %c0_26, %c0_27] : memref<1x12x16xbf16, #tpu.memory_space<vmem>>, vector<1x12x16xbf16>
      %41 = vector.shape_cast %40 : vector<1x12x16xbf16> to vector<12x16xbf16>
      %42 = arith.extf %41 : vector<12x16xbf16> to vector<12x16xf32>
      %cst_28 = arith.constant 1.000000e+00 : f32
      %43 = vector.broadcast %cst_28 : f32 to vector<12x16xf32>
      %44 = arith.subf %42, %43 : vector<12x16xf32>
      %cst_29 = arith.constant 1.000000e+09 : f32
      %45 = vector.broadcast %cst_29 : f32 to vector<12x16xf32>
      %46 = arith.mulf %44, %45 : vector<12x16xf32>
      %c0_30 = arith.constant 0 : index
      %c0_31 = arith.constant 0 : index
      %47 = vector.load %arg12[%c0_30, %c0_31] : memref<1x32xf32, #tpu.memory_space<vmem>>, vector<1x32xf32>
      %48 = vector.shape_cast %47 : vector<1x32xf32> to vector<32xf32>
      %c0_32 = arith.constant 0 : index
      %c0_33 = arith.constant 0 : index
      %49 = vector.load %arg13[%c0_32, %c0_33] : memref<1x32xf32, #tpu.memory_space<vmem>>, vector<1x32xf32>
      %50 = vector.shape_cast %49 : vector<1x32xf32> to vector<32xf32>
      %cst_34 = arith.constant dense<0.000000e+00> : vector<12xf32>
      %51 = vector.multi_reduction <add>, %39, %cst_34 [1] : vector<12x32xf32> to vector<12xf32>
      %52 = vector.shape_cast %51 : vector<12xf32> to vector<12x1xf32>
      %cst_35 = arith.constant 3.200000e+01 : f32
      %53 = vector.broadcast %cst_35 : f32 to vector<12x1xf32>
      %54 = arith.divf %52, %53 : vector<12x1xf32>
      %55 = vector.broadcast %54 : vector<12x1xf32> to vector<12x32xf32>
      %56 = arith.subf %39, %55 : vector<12x32xf32>
      %57 = arith.mulf %56, %56 : vector<12x32xf32>
      %cst_36 = arith.constant dense<0.000000e+00> : vector<12xf32>
      %58 = vector.multi_reduction <add>, %57, %cst_36 [1] : vector<12x32xf32> to vector<12xf32>
      %59 = vector.shape_cast %58 : vector<12xf32> to vector<12x1xf32>
      %cst_37 = arith.constant 0.0322580636 : f32
      %60 = vector.broadcast %cst_37 : f32 to vector<12x1xf32>
      %61 = arith.mulf %59, %60 : vector<12x1xf32>
      %62 = math.sqrt %61 : vector<12x1xf32>
      %cst_38 = arith.constant 9.99999997E-7 : f32
      %63 = vector.broadcast %cst_38 : f32 to vector<12x1xf32>
      %64 = arith.addf %62, %63 : vector<12x1xf32>
      %65 = tpu.reciprocal %64 {approx = true} : vector<12x1xf32> -> vector<12x1xf32>
      %66 = vector.broadcast %65 : vector<12x1xf32> to vector<12x32xf32>
      %67 = arith.mulf %56, %66 : vector<12x32xf32>
      %68 = vector.shape_cast %48 : vector<32xf32> to vector<1x32xf32>
      %69 = vector.broadcast %68 : vector<1x32xf32> to vector<12x32xf32>
      %70 = arith.mulf %69, %67 : vector<12x32xf32>
      %71 = vector.shape_cast %50 : vector<32xf32> to vector<1x32xf32>
      %72 = vector.broadcast %71 : vector<1x32xf32> to vector<12x32xf32>
      %73 = arith.addf %70, %72 : vector<12x32xf32>
      %74 = arith.truncf %73 : vector<12x32xf32> to vector<12x32xbf16>
      %c0_39 = arith.constant 0 : index
      %c0_40 = arith.constant 0 : index
      %75 = vector.load %arg6[%c0_39, %c0_40] : memref<32x512xbf16, #tpu.memory_space<vmem>>, vector<32x512xbf16>
      %cst_41 = arith.constant dense<0.000000e+00> : vector<12x512xf32>
      %76 = tpu.matmul %74, %75, %cst_41 {dimension_numbers = #tpu.dot_dimension_numbers<[1], [0], [0], [1], [0, 0, 1, 1], [], []>} : vector<12x32xbf16>, vector<32x512xbf16>, vector<12x512xf32> -> vector<12x512xf32>
      %c0_42 = arith.constant 0 : index
      %c0_43 = arith.constant 0 : index
      %77 = vector.load %arg7[%c0_42, %c0_43] : memref<1x512xf32, #tpu.memory_space<vmem>>, vector<1x512xf32>
      %78 = vector.shape_cast %77 : vector<1x512xf32> to vector<512xf32>
      %79 = vector.shape_cast %78 : vector<512xf32> to vector<1x512xf32>
      %80 = vector.broadcast %79 : vector<1x512xf32> to vector<12x512xf32>
      %81 = arith.addf %76, %80 : vector<12x512xf32>
      %cst_44 = arith.constant 0.353553385 : f32
      %82 = vector.broadcast %cst_44 : f32 to vector<12x512xf32>
      %83 = arith.mulf %81, %82 : vector<12x512xf32>
      %84 = arith.truncf %83 : vector<12x512xf32> to vector<12x512xbf16>
      %85 = vector.shape_cast %84 : vector<12x512xbf16> to vector<12x4x128xbf16>
      %86 = tpu.transpose %85, [1, 0, 2] : vector<12x4x128xbf16> -> vector<4x12x128xbf16>
      %c0_45 = arith.constant 0 : index
      %c0_46 = arith.constant 0 : index
      %c0_47 = arith.constant 0 : index
      %87 = vector.load %arg21[%c0_45, %c0_46, %c0_47] : memref<4x16x128xbf16, #tpu.memory_space<vmem>>, vector<4x16x128xbf16>
      "tpu.trace_start"() <{level = 10 : i32, message = "hqd,hkd->hqk"}> : () -> ()
      %cst_48 = arith.constant dense<0.000000e+00> : vector<4x12x16xf32>
      %88 = tpu.matmul %86, %87, %cst_48 {dimension_numbers = #tpu.dot_dimension_numbers<[2], [2], [1], [1], [0, 0, 0, 1, 1, 1], [0], [0]>} : vector<4x12x128xbf16>, vector<4x16x128xbf16>, vector<4x12x16xf32> -> vector<4x12x16xf32>
      "tpu.trace_stop"() : () -> ()
      %89 = vector.shape_cast %46 : vector<12x16xf32> to vector<1x12x16xf32>
      %90 = vector.broadcast %89 : vector<1x12x16xf32> to vector<4x12x16xf32>
      %91 = arith.addf %88, %90 : vector<4x12x16xf32>
      %cst_49 = arith.constant dense<0xFF800000> : vector<4x12xf32>
      %92 = vector.multi_reduction <maximumf>, %91, %cst_49 [2] : vector<4x12x16xf32> to vector<4x12xf32>
      %93 = vector.shape_cast %92 : vector<4x12xf32> to vector<4x12x1xf32>
      %94 = vector.broadcast %93 : vector<4x12x1xf32> to vector<4x12x16xf32>
      %95 = arith.subf %91, %94 : vector<4x12x16xf32>
      %96 = math.exp %95 : vector<4x12x16xf32>
      %cst_50 = arith.constant dense<0.000000e+00> : vector<4x12xf32>
      %97 = vector.multi_reduction <add>, %96, %cst_50 [2] : vector<4x12x16xf32> to vector<4x12xf32>
      %98 = vector.shape_cast %97 : vector<4x12xf32> to vector<4x12x1xf32>
      %99 = tpu.reciprocal %98 {approx = true} : vector<4x12x1xf32> -> vector<4x12x1xf32>
      %100 = vector.broadcast %99 : vector<4x12x1xf32> to vector<4x12x16xf32>
      %101 = arith.mulf %96, %100 : vector<4x12x16xf32>
      %102 = arith.truncf %101 : vector<4x12x16xf32> to vector<4x12x16xbf16>
      %c0_51 = arith.constant 0 : index
      %c0_52 = arith.constant 0 : index
      %c0_53 = arith.constant 0 : index
      %103 = vector.load %arg22[%c0_51, %c0_52, %c0_53] : memref<4x16x128xbf16, #tpu.memory_space<vmem>>, vector<4x16x128xbf16>
      "tpu.trace_start"() <{level = 10 : i32, message = "hqk,hkd->hqd"}> : () -> ()
      %cst_54 = arith.constant dense<0.000000e+00> : vector<4x12x128xf32>
      %104 = tpu.matmul %102, %103, %cst_54 {dimension_numbers = #tpu.dot_dimension_numbers<[2], [1], [1], [2], [0, 0, 0, 1, 1, 2], [0], [0]>} : vector<4x12x16xbf16>, vector<4x16x128xbf16>, vector<4x12x128xf32> -> vector<4x12x128xf32>
      "tpu.trace_stop"() : () -> ()
      %105 = arith.truncf %104 : vector<4x12x128xf32> to vector<4x12x128xbf16>
      %106 = tpu.transpose %105, [1, 0, 2] : vector<4x12x128xbf16> -> vector<12x4x128xbf16>
      %107 = vector.shape_cast %106 : vector<12x4x128xbf16> to vector<12x512xbf16>
      %c0_55 = arith.constant 0 : index
      %c0_56 = arith.constant 0 : index
      %108 = vector.load %arg10[%c0_55, %c0_56] : memref<512x32xbf16, #tpu.memory_space<vmem>>, vector<512x32xbf16>
      %cst_57 = arith.constant dense<0.000000e+00> : vector<12x32xf32>
      %109 = tpu.matmul %107, %108, %cst_57 {dimension_numbers = #tpu.dot_dimension_numbers<[1], [0], [0], [1], [0, 0, 1, 1], [], []>} : vector<12x512xbf16>, vector<512x32xbf16>, vector<12x32xf32> -> vector<12x32xf32>
      %c0_58 = arith.constant 0 : index
      %c0_59 = arith.constant 0 : index
      %110 = vector.load %arg11[%c0_58, %c0_59] : memref<1x32xf32, #tpu.memory_space<vmem>>, vector<1x32xf32>
      %111 = vector.shape_cast %110 : vector<1x32xf32> to vector<32xf32>
      %112 = vector.shape_cast %111 : vector<32xf32> to vector<1x32xf32>
      %113 = vector.broadcast %112 : vector<1x32xf32> to vector<12x32xf32>
      %114 = arith.addf %109, %113 : vector<12x32xf32>
      %115 = arith.addf %39, %114 : vector<12x32xf32>
      %c0_60 = arith.constant 0 : index
      %c0_61 = arith.constant 0 : index
      %116 = vector.load %arg24[%c0_60, %c0_61] : memref<12x32xf32, #tpu.memory_space<vmem>>, vector<12x32xf32>
      tpu.vector_store %arg24[%c0_60, %c0_61], %115 {strides = array<i32>} : memref<12x32xf32, #tpu.memory_space<vmem>>, vector<12x32xf32>,
      %c0_62 = arith.constant 0 : index
      %c0_63 = arith.constant 0 : index
      %117 = vector.load %arg18[%c0_62, %c0_63] : memref<1x32xf32, #tpu.memory_space<vmem>>, vector<1x32xf32>
      %118 = vector.shape_cast %117 : vector<1x32xf32> to vector<32xf32>
      %c0_64 = arith.constant 0 : index
      %c0_65 = arith.constant 0 : index
      %119 = vector.load %arg19[%c0_64, %c0_65] : memref<1x32xf32, #tpu.memory_space<vmem>>, vector<1x32xf32>
      %120 = vector.shape_cast %119 : vector<1x32xf32> to vector<32xf32>
      %cst_66 = arith.constant dense<0.000000e+00> : vector<12xf32>
      %121 = vector.multi_reduction <add>, %115, %cst_66 [1] : vector<12x32xf32> to vector<12xf32>
      %122 = vector.shape_cast %121 : vector<12xf32> to vector<12x1xf32>
      %cst_67 = arith.constant 3.200000e+01 : f32
      %123 = vector.broadcast %cst_67 : f32 to vector<12x1xf32>
      %124 = arith.divf %122, %123 : vector<12x1xf32>
      %125 = vector.broadcast %124 : vector<12x1xf32> to vector<12x32xf32>
      %126 = arith.subf %115, %125 : vector<12x32xf32>
      %127 = arith.mulf %126, %126 : vector<12x32xf32>
      %cst_68 = arith.constant dense<0.000000e+00> : vector<12xf32>
      %128 = vector.multi_reduction <add>, %127, %cst_68 [1] : vector<12x32xf32> to vector<12xf32>
      %129 = vector.shape_cast %128 : vector<12xf32> to vector<12x1xf32>
      %cst_69 = arith.constant 0.0322580636 : f32
      %130 = vector.broadcast %cst_69 : f32 to vector<12x1xf32>
      %131 = arith.mulf %129, %130 : vector<12x1xf32>
      %132 = math.sqrt %131 : vector<12x1xf32>
      %cst_70 = arith.constant 9.99999997E-7 : f32
      %133 = vector.broadcast %cst_70 : f32 to vector<12x1xf32>
      %134 = arith.addf %132, %133 : vector<12x1xf32>
      %135 = tpu.reciprocal %134 {approx = true} : vector<12x1xf32> -> vector<12x1xf32>
      %136 = vector.broadcast %135 : vector<12x1xf32> to vector<12x32xf32>
      %137 = arith.mulf %126, %136 : vector<12x32xf32>
      %138 = vector.shape_cast %118 : vector<32xf32> to vector<1x32xf32>
      %139 = vector.broadcast %138 : vector<1x32xf32> to vector<12x32xf32>
      %140 = arith.mulf %139, %137 : vector<12x32xf32>
      %141 = vector.shape_cast %120 : vector<32xf32> to vector<1x32xf32>
      %142 = vector.broadcast %141 : vector<1x32xf32> to vector<12x32xf32>
      %143 = arith.addf %140, %142 : vector<12x32xf32>
      %144 = arith.truncf %143 : vector<12x32xf32> to vector<12x32xbf16>
      %c0_71 = arith.constant 0 : index
      %c0_72 = arith.constant 0 : index
      %145 = vector.load %arg23[%c0_71, %c0_72] : memref<12x32xbf16, #tpu.memory_space<vmem>>, vector<12x32xbf16>
      tpu.vector_store %arg23[%c0_71, %c0_72], %144 {strides = array<i32>} : memref<12x32xbf16, #tpu.memory_space<vmem>>, vector<12x32xbf16>,
    } else {
    }
    %c0 = arith.constant 0 : index
    %c0_4 = arith.constant 0 : index
    %8 = vector.load %arg23[%c0, %c0_4] : memref<12x32xbf16, #tpu.memory_space<vmem>>, vector<12x32xbf16>
    %c0_5 = arith.constant 0 : index
    %c0_6 = arith.constant 0 : index
    %9 = vector.load %arg14[%c0_5, %c0_6] : memref<32x256xbf16, #tpu.memory_space<vmem>>, vector<32x256xbf16>
    %cst = arith.constant dense<0.000000e+00> : vector<12x256xf32>
    %10 = tpu.matmul %8, %9, %cst {dimension_numbers = #tpu.dot_dimension_numbers<[1], [0], [0], [1], [0, 0, 1, 1], [], []>} : vector<12x32xbf16>, vector<32x256xbf16>, vector<12x256xf32> -> vector<12x256xf32>
    %c0_7 = arith.constant 0 : index
    %c0_8 = arith.constant 0 : index
    %11 = vector.load %arg15[%c0_7, %c0_8] : memref<1x256xf32, #tpu.memory_space<vmem>>, vector<1x256xf32>
    %12 = vector.shape_cast %11 : vector<1x256xf32> to vector<256xf32>
    %13 = vector.shape_cast %12 : vector<256xf32> to vector<1x256xf32>
    %14 = vector.broadcast %13 : vector<1x256xf32> to vector<12x256xf32>
    %15 = arith.addf %10, %14 : vector<12x256xf32>
    %cst_9 = arith.constant 5.000000e-01 : f32
    %16 = vector.broadcast %cst_9 : f32 to vector<12x256xf32>
    %17 = arith.mulf %16, %15 : vector<12x256xf32>
    %cst_10 = arith.constant 4.471500e-02 : f32
    %18 = vector.broadcast %cst_10 : f32 to vector<12x256xf32>
    %19 = arith.mulf %18, %15 : vector<12x256xf32>
    %20 = arith.mulf %19, %15 : vector<12x256xf32>
    %21 = arith.mulf %20, %15 : vector<12x256xf32>
    %22 = arith.addf %15, %21 : vector<12x256xf32>
    %cst_11 = arith.constant 0.797884583 : f32
    %23 = vector.broadcast %cst_11 : f32 to vector<12x256xf32>
    %24 = arith.mulf %23, %22 : vector<12x256xf32>
    %25 = math.tanh %24 : vector<12x256xf32>
    %cst_12 = arith.constant 1.000000e+00 : f32
    %26 = vector.broadcast %cst_12 : f32 to vector<12x256xf32>
    %27 = arith.addf %26, %25 : vector<12x256xf32>
    %28 = arith.mulf %17, %27 : vector<12x256xf32>
    %c0_13 = arith.constant 0 : index
    %c0_14 = arith.constant 0 : index
    %29 = vector.load %arg24[%c0_13, %c0_14] : memref<12x32xf32, #tpu.memory_space<vmem>>, vector<12x32xf32>
    %30 = arith.truncf %28 : vector<12x256xf32> to vector<12x256xbf16>
    %c0_15 = arith.constant 0 : index
    %c0_16 = arith.constant 0 : index
    %31 = vector.load %arg16[%c0_15, %c0_16] : memref<256x32xbf16, #tpu.memory_space<vmem>>, vector<256x32xbf16>
    %cst_17 = arith.constant dense<0.000000e+00> : vector<12x32xf32>
    %32 = tpu.matmul %30, %31, %cst_17 {dimension_numbers = #tpu.dot_dimension_numbers<[1], [0], [0], [1], [0, 0, 1, 1], [], []>} : vector<12x256xbf16>, vector<256x32xbf16>, vector<12x32xf32> -> vector<12x32xf32>
    %33 = arith.addf %29, %32 : vector<12x32xf32>
    %c0_18 = arith.constant 0 : index
    %c0_19 = arith.constant 0 : index
    %34 = vector.load %arg24[%c0_18, %c0_19] : memref<12x32xf32, #tpu.memory_space<vmem>>, vector<12x32xf32>
    tpu.vector_store %arg24[%c0_18, %c0_19], %33 {strides = array<i32>} : memref<12x32xf32, #tpu.memory_space<vmem>>, vector<12x32xf32>,
    %c0_i32_20 = arith.constant 0 : i32
    %35 = arith.cmpi eq, %arg2, %c0_i32_20 : i32
    %36 = arith.extui %35 : i1 to i32
    %c0_i32_21 = arith.constant 0 : i32
    %37 = arith.cmpi ne, %36, %c0_i32_21 : i32
    scf.if %37 {
      %c0_22 = arith.constant 0 : index
      %c0_23 = arith.constant 0 : index
      %38 = vector.load %arg24[%c0_22, %c0_23] : memref<12x32xf32, #tpu.memory_space<vmem>>, vector<12x32xf32>
      %c0_24 = arith.constant 0 : index
      %c0_25 = arith.constant 0 : index
      %39 = vector.load %arg17[%c0_24, %c0_25] : memref<1x32xf32, #tpu.memory_space<vmem>>, vector<1x32xf32>
      %40 = vector.shape_cast %39 : vector<1x32xf32> to vector<32xf32>
      %41 = vector.shape_cast %40 : vector<32xf32> to vector<1x32xf32>
      %42 = vector.broadcast %41 : vector<1x32xf32> to vector<12x32xf32>
      %43 = arith.addf %38, %42 : vector<12x32xf32>
      %c0_26 = arith.constant 0 : index
      %c0_27 = arith.constant 0 : index
      %c0_28 = arith.constant 0 : index
      %44 = vector.load %arg20[%c0_26, %c0_27, %c0_28] : memref<1x12x32xf32, #tpu.memory_space<vmem>>, vector<1x12x32xf32>
      %45 = vector.shape_cast %44 : vector<1x12x32xf32> to vector<12x32xf32>
      %46 = vector.shape_cast %43 : vector<12x32xf32> to vector<1x12x32xf32>
      tpu.vector_store %arg20[%c0_26, %c0_27, %c0_28], %46 {strides = array<i32>} : memref<1x12x32xf32, #tpu.memory_space<vmem>>, vector<1x12x32xf32>,
    } else {
    }
    return
  }
  func.func @transform_0(%arg0: i32, %arg1: i32, %arg2: i32) -> (i32, i32, i32) {
    %c0_i32 = arith.constant 0 : i32
    %c0_i32_0 = arith.constant 0 : i32
    return %arg0, %arg1, %c0_i32 : i32, i32, i32
  }
  func.func @transform_1(%arg0: i32, %arg1: i32, %arg2: i32) -> (i32, i32, i32) {
    %c0_i32 = arith.constant 0 : i32
    %c0_i32_0 = arith.constant 0 : i32
    %c0_i32_1 = arith.constant 0 : i32
    return %arg0, %c0_i32, %c0_i32_0 : i32, i32, i32
  }
  func.func @transform_2(%arg0: i32, %arg1: i32, %arg2: i32) -> (i32, i32, i32) {
    %c0_i32 = arith.constant 0 : i32
    %c0_i32_0 = arith.constant 0 : i32
    return %arg0, %arg1, %c0_i32 : i32, i32, i32
  }
  func.func @transform_3(%arg0: i32, %arg1: i32, %arg2: i32) -> (i32, i32) {
    %c0_i32 = arith.constant 0 : i32
    %c0_i32_0 = arith.constant 0 : i32
    %c0_i32_1 = arith.constant 0 : i32
    return %c0_i32, %c0_i32_0 : i32, i32
  }
  func.func @transform_4(%arg0: i32, %arg1: i32, %arg2: i32) -> (i32, i32) {
    %c0_i32 = arith.constant 0 : i32
    %c0_i32_0 = arith.constant 0 : i32
    %c0_i32_1 = arith.constant 0 : i32
    return %c0_i32, %c0_i32_0 : i32, i32
  }
  func.func @transform_5(%arg0: i32, %arg1: i32, %arg2: i32) -> (i32, i32) {
    %c0_i32 = arith.constant 0 : i32
    %c0_i32_0 = arith.constant 0 : i32
    %c0_i32_1 = arith.constant 0 : i32
    return %c0_i32, %c0_i32_0 : i32, i32
  }
  func.func @transform_6(%arg0: i32, %arg1: i32, %arg2: i32) -> (i32, i32) {
    %c0_i32 = arith.constant 0 : i32
    %c0_i32_0 = arith.constant 0 : i32
    %c0_i32_1 = arith.constant 0 : i32
    return %c0_i32, %c0_i32_0 : i32, i32
  }
  func.func @transform_7(%arg0: i32, %arg1: i32, %arg2: i32) -> (i32, i32) {
    %c0_i32 = arith.constant 0 : i32
    %c0_i32_0 = arith.constant 0 : i32
    %c0_i32_1 = arith.constant 0 : i32
    return %c0_i32, %c0_i32_0 : i32, i32
  }
  func.func @transform_8(%arg0: i32, %arg1: i32, %arg2: i32) -> (i32, i32) {
    %c0_i32 = arith.constant 0 : i32
    %c0_i32_0 = arith.constant 0 : i32
    %c0_i32_1 = arith.constant 0 : i32
    return %c0_i32, %c0_i32_0 : i32, i32
  }
  func.func @transform_9(%arg0: i32, %arg1: i32, %arg2: i32) -> (i32, i32) {
    %c0_i32 = arith.constant 0 : i32
    %c0_i32_0 = arith.constant 0 : i32
    %c0_i32_1 = arith.constant 0 : i32
    return %c0_i32, %c0_i32_0 : i32, i32
  }
  func.func @transform_10(%arg0: i32, %arg1: i32, %arg2: i32) -> (i32, i32) {
    %c0_i32 = arith.constant 0 : i32
    %c0_i32_0 = arith.constant 0 : i32
    %c0_i32_1 = arith.constant 0 : i32
    return %c0_i32, %c0_i32_0 : i32, i32
  }
  func.func @transform_11(%arg0: i32, %arg1: i32, %arg2: i32) -> (i32, i32) {
    %c0_i32 = arith.constant 0 : i32
    %c0_i32_0 = arith.constant 0 : i32
    return %c0_i32, %arg2 : i32, i32
  }
  func.func @transform_12(%arg0: i32, %arg1: i32, %arg2: i32) -> (i32, i32) {
    %c0_i32 = arith.constant 0 : i32
    %c0_i32_0 = arith.constant 0 : i32
    return %c0_i32, %arg2 : i32, i32
  }
  func.func @transform_13(%arg0: i32, %arg1: i32, %arg2: i32) -> (i32, i32) {
    %c0_i32 = arith.constant 0 : i32
    %c0_i32_0 = arith.constant 0 : i32
    return %arg2, %c0_i32 : i32, i32
  }
  func.func @transform_14(%arg0: i32, %arg1: i32, %arg2: i32) -> (i32, i32) {
    %c0_i32 = arith.constant 0 : i32
    %c0_i32_0 = arith.constant 0 : i32
    %c0_i32_1 = arith.constant 0 : i32
    return %c0_i32, %c0_i32_0 : i32, i32
  }
  func.func @transform_15(%arg0: i32, %arg1: i32, %arg2: i32) -> (i32, i32) {
    %c0_i32 = arith.constant 0 : i32
    %c0_i32_0 = arith.constant 0 : i32
    %c0_i32_1 = arith.constant 0 : i32
    return %c0_i32, %c0_i32_0 : i32, i32
  }
  func.func @transform_16(%arg0: i32, %arg1: i32, %arg2: i32) -> (i32, i32) {
    %c0_i32 = arith.constant 0 : i32
    %c0_i32_0 = arith.constant 0 : i32
    %c0_i32_1 = arith.constant 0 : i32
    return %c0_i32, %c0_i32_0 : i32, i32
  }
  func.func @transform_17(%arg0: i32, %arg1: i32, %arg2: i32) -> (i32, i32, i32) {
    %c0_i32 = arith.constant 0 : i32
    %c0_i32_0 = arith.constant 0 : i32
    return %arg0, %arg1, %c0_i32 : i32, i32, i32
  }
}

</mosaic_0001>

<bundles_post_ra>
// kernel: tpu_custom_call.1
= control target key start
LH: loop header
LB: loop body
LE: loop exit
PB: predicated region body
PF: predicated region fallthrough
CT: control target
= control target key end

     0   :  { %s4295_s24 = smov 0   ;;  %s4297_s25 = smov 0   ;;  %s4853_s0 = inlined_call_operand.vmem [shape: f32[2,12,32], index: 0, kind: input, shape index: {}]   ;;  %s4854_s1 = inlined_call_operand.vmem [shape: bf16[2,16,32], index: 1, kind: input, shape index: {}]   ;;  %s4855_s2 = inlined_call_operand.vmem [shape: bf16[2,12,16], index: 2, kind: input, shape index: {}]   ;;  %s4856_s3 = inlined_call_operand.vmem [shape: bf16[32,512], index: 3, kind: input, shape index: {}]   ;;  %s4857_s4 = inlined_call_operand.vmem [shape: f32[1,512], index: 4, kind: input, shape index: {}]   ;;  %s4858_s5 = inlined_call_operand.vmem [shape: bf16[32,1024], index: 5, kind: input, shape index: {}]   ;;  %s4859_s6 = inlined_call_operand.vmem [shape: f32[1,1024], index: 6, kind: input, shape index: {}]   ;;  %s4860_s7 = inlined_call_operand.vmem [shape: bf16[512,32], index: 7, kind: input, shape index: {}]   ;;  %s4861_s8 = inlined_call_operand.vmem [shape: f32[1,32], index: 8, kind: input, shape index: {}]   ;;  %s4862_s9 = inlined_call_operand.vmem [shape: f32[1,32], index: 9, kind: input, shape index: {}]   ;;  %s4863_s10 = inlined_call_operand.vmem [shape: f32[1,32], index: 10, kind: input, shape index: {}]   ;;  %s4864_s11 = inlined_call_operand.vmem [shape: bf16[32,256], index: 11, kind: input, shape index: {}]   ;;  %s4865_s12 = inlined_call_operand.vmem [shape: f32[1,256], index: 12, kind: input, shape index: {}]   ;;  %s4866_s13 = inlined_call_operand.vmem [shape: bf16[256,32], index: 13, kind: input, shape index: {}]   ;;  %s4867_s14 = inlined_call_operand.vmem [shape: f32[1,32], index: 14, kind: input, shape index: {}]   ;;  %s4868_s15 = inlined_call_operand.vmem [shape: f32[1,32], index: 15, kind: input, shape index: {}]   ;;  %s4869_s16 = inlined_call_operand.vmem [shape: f32[1,32], index: 16, kind: input, shape index: {}]   ;;  %s4870_s17 = inlined_call_operand.vmem [shape: f32[2,12,32], index: 17, kind: output, shape index: {}]  }
   0x1   :  { %4873 = sst [smem:[#allocation6_spill]] %s4853_s0  ;;  %s4299_s26 = smov 0  }
   0x2   :  { %4874 = sst [smem:[#allocation7_spill]] %s4854_s1 }
   0x3 LB: > { %s46_s27 = sadd.s32 1, %s4194_s25  ;;  %p3731_p0 = scmp.ge.s32.totalorder %s4198_s26, 1  ;;  %s4198_s26 = sphi %s4299_s26, %s27_s26   ;;  %s4194_s25 = sphi %s4297_s25, %s4880_s25   ;;  %s4190_s24 = sphi %s4295_s24, %s4879_s24  }
   0x4   : > { %p48_p1 = scmp.ge.s32.totalorder %s46_s27, 2  ;;  %p574_p2 = scmp.lt.s32.totalorder %s4198_s26, 3 }
   0x6   : > { %s4882_s27 = smov (%p48_p1, %s46_s27), 0  ;;  %p575_p3 = pnand %p3731_p0, %p574_p2 }
   0x7   : > { %p663_p4 = scmp.lt.s32.totalorder (!%p575_p3), %s4190_s24, 1  ;;  %s4875_s18 = sld [smem:[#allocation6_spill]] (!%p575_p3) }
   0x8   : > { %578 = sbr.rel (%p575_p3) target bundleno = 2322 (0x912), region = 88  ;;  %s4876_s21 = sld [smem:[#allocation7_spill]] (!%p575_p3) }
   0xd   : > { %vm866_vm0 = vcmask 261120   ;;  %s4884_s24 = smov (!%p663_p4, %s4190_s24), 1  ;;  %vm1659_vm1 = vcmask 257024   ;;  %v731_v4 = vld [vmem:[%s4858_s5 + $0x40] sm:$0xff]  ;;  %v732_v22 = vld [vmem:[%s4858_s5 + $0x48] sm:$0xff]  ;;  %v4200_v26 = vmov 0  }
   0xe   : > { %s4871_s28 = sshll.u32 %s4884_s24, 4  ;;  %s4872_s29 = sshll.u32 %s4884_s24, 3  ;;  %v735_v5 = vld [vmem:[%s4858_s5 + $0x60] sm:$0xff]  ;;  %v736_v23 = vld [vmem:[%s4858_s5 + $0x68] sm:$0xff]  ;;  %902 = vmatprep.mubr.bf16.mxu0 %v4200_v26  ;;  %1031 = vmatprep.mubr.bf16.mxu1 %v4200_v26  ;;  %v733_v32 = vld [vmem:[%s4858_s5 + $0x50] sm:$0xff]  ;;  %vm4204_vm6 = vmmov 0  }
   0xf   : > { %s4322_s19 = scalar_lea.vmem %s4875_s18, %s4871_s28  ;;  %s4329_s22 = scalar_lea.vmem %s4876_s21, %s4872_s29  ;;  %v3750_v6 = vcombine.high %v731_v4, %v735_v5  ;;  %v3749_v7 = vcombine.low %v731_v4, %v735_v5  ;;  %v723_v18 = vld [vmem:[%s4858_s5] sm:$0xff]  ;;  %v3752_v25 = vcombine.high %v732_v22, %v736_v23  ;;  %v3751_v27 = vcombine.low %v732_v22, %v736_v23  ;;  %v724_v28 = vld [vmem:[%s4858_s5 + $0x8] sm:$0xff]  ;;  %v737_v33 = vld [vmem:[%s4858_s5 + $0x70] sm:$0xff] }
  0x10   : > { %v1643_v0 = vld [vmem:[%s4322_s19] sm:$0xff]  ;;  %v1644_v1 = vld [vmem:[%s4322_s19 + $0x8] sm:$0xf]  ;;  %v734_v34 = vld [vmem:[%s4858_s5 + $0x58] sm:$0xff]  ;;  %v3754_v35 = vcombine.high %v733_v32, %v737_v33  ;;  %v3753_v37 = vcombine.low %v733_v32, %v737_v33  ;;  %s4877_s0 = sshll.u32 %s4884_s24, 3  ;;  %vm2300_vm7 = vcmask 130048  }
  0x11   : > { %v1656_v2 = vsel %vm866_vm0, %v1643_v0, 0.0  ;;  %v1660_v3 = vsel %vm1659_vm1, %v1644_v1, 0.0  ;;  %882 = vmatprep.subr.bf16.mxu0 %v3750_v6  ;;  %v727_v19 = vld [vmem:[%s4858_s5 + $0x20] sm:$0xff]  ;;  %v728_v29 = vld [vmem:[%s4858_s5 + $0x28] sm:$0xff]  ;;  %v738_v36 = vld [vmem:[%s4858_s5 + $0x78] sm:$0xff]  ;;  %s685_s18 = scalar_lea.vmem %s4855_s2, %s4877_s0  ;;  %vm2304_vm8 = vcmask 125952  }
  0x12   : > { %1657 = vadd.xlane.f32.xlu0 %v1656_v2  ;;  %883 = vmatpush1.bf16.msra.mxu0 %v3749_v7  ;;  %v3742_v20 = vcombine.high %v723_v18, %v727_v19  ;;  %v3741_v21 = vcombine.low %v723_v18, %v727_v19  ;;  %v4042_v24 = vld [vmem:[%s4329_s22] sm:$0xff]   ;;  %v3744_v30 = vcombine.high %v724_v28, %v728_v29  ;;  %v725_v40 = vld [vmem:[%s4858_s5 + $0x10] sm:$0xff]  ;;  %v726_v42 = vld [vmem:[%s4858_s5 + $0x18] sm:$0xff]  ;;  %vm3240_vm13 = vcmask 254976  }
  0x13   : > { %v3743_v31 = vcombine.low %v724_v28, %v728_v29  ;;  %v3756_v38 = vcombine.high %v734_v34, %v738_v36  ;;  %v3755_v39 = vcombine.low %v734_v34, %v738_v36  ;;  %v729_v41 = vld [vmem:[%s4858_s5 + $0x30] sm:$0xff]  ;;  %v730_v44 = vld [vmem:[%s4858_s5 + $0x38] sm:$0xff]  ;;  %v4449_v23 = vld [vmem:[%s4859_s6] sm:$0xff] }
  0x14   : > { %884 = vmatprep.subr.bf16.mxu0 %v3742_v20  ;;  %v3746_v43 = vcombine.high %v725_v40, %v729_v41  ;;  %v3745_v45 = vcombine.low %v725_v40, %v729_v41  ;;  %v3748_v46 = vcombine.high %v726_v42, %v730_v44  ;;  %v3747_v47 = vcombine.low %v726_v42, %v730_v44  ;;  %v4045_v48 = vld [vmem:[%s4856_s3 + $0x24] ss:$16 sps:$4 sm:$0xff]   ;;  %v4043_v49 = vld [vmem:[%s4856_s3 + $0x20] ss:$16 sps:$4 sm:$0xff]   ;;  %v4048_v50 = vld [vmem:[%s4856_s3 + $0x2c] ss:$16 sps:$4 sm:$0xff]  }
  0x15   : > { %1011 = vmatprep.subr.bf16.mxu1 %v3756_v38  ;;  %v4046_v51 = vld [vmem:[%s4856_s3 + $0x28] ss:$16 sps:$4 sm:$0xff]   ;;  %v4051_v52 = vld [vmem:[%s4856_s3 + $0x4] ss:$16 sps:$4 sm:$0xff]   ;;  %v4054_v53 = vld [vmem:[%s4856_s3 + $0xc] ss:$16 sps:$4 sm:$0xff]  }
  0x16   : > { %1661 = vadd.xlane.f32.xlu0 %v1660_v3  ;;  %885 = vmatpush1.bf16.msra.mxu0 %v3741_v21  ;;  %v4049_v54 = vld [vmem:[%s4856_s3] ss:$16 sps:$4 sm:$0xff]   ;;  %v4052_v55 = vld [vmem:[%s4856_s3 + $0x8] ss:$16 sps:$4 sm:$0xff]   ;;  %v4201_v38 = vmov 1983009808  }
  0x17   : > { %925 = vmatprep.subr.bf16.mxu0 %v3752_v25  ;;  %1012 = vmatpush1.bf16.msra.mxu1 %v3755_v39  ;;  %v1070_v39 = vunpack.c.l.s4 %v4201_v38 }
  0x18   : > { %1013 = vmatprep.subr.bf16.mxu1 %v3748_v46 }
  0x19   : > { %3757 = vmatmul.mubr.msk.bf16.vlgmr.msra.gmra.mxu0 %vm866_vm0, %v4042_v24  ;;  %v1071_v46 = vunpack.c.0.s8 %v1070_v39 }
  0x1a   : > { %926 = vmatpush1.bf16.msra.mxu0 %v3751_v27  ;;  %945 = vmatprep.mubr.bf16.mxu0 %v4200_v26 }
  0x1b   : > { %927 = vmatprep.subr.bf16.mxu0 %v3744_v30  ;;  %1014 = vmatpush1.bf16.msra.mxu1 %v3747_v47 }
  0x1c   : > { %1843 = vmatprep.subr.bf16.mxu1 %v4048_v50 }
  0x1e   : > { %928 = vmatpush1.bf16.msra.mxu0 %v3743_v31  ;;  %3760 = vmatmul.mubr.msk.bf16.vlgmr.msra.gmra.mxu1 %vm866_vm0, %v4042_v24 }
  0x1f   : > { %968 = vmatprep.subr.bf16.mxu0 %v3754_v35  ;;  %1844 = vmatpush1.bf16.msra.mxu1 %v4046_v51  ;;  %v4202_v51 = vmov 1934713408  }
  0x20   : > { %1845 = vmatprep.subr.bf16.mxu1 %v4054_v53  ;;  %1863 = vmatprep.mubr.bf16.mxu1 %v4200_v26 }
  0x21   : > { %3758 = vmatmul.mubr.msk.bf16.vlgmr.msra.gmra.mxu0 %vm866_vm0, %v4042_v24 }
  0x22   : > { %988 = vmatprep.mubr.bf16.mxu0 %v4200_v26  ;;  %969 = vmatpush1.bf16.msra.mxu0 %v3753_v37 }
  0x23   : > { %970 = vmatprep.subr.bf16.mxu0 %v3746_v43  ;;  %1846 = vmatpush1.bf16.msra.mxu1 %v4052_v55 }
  0x26   : > { %971 = vmatpush1.bf16.msra.mxu0 %v3745_v45 }
  0x27   : > { %1800 = vmatprep.subr.bf16.mxu0 %v4045_v48 }
  0x29   : > { %3759 = vmatmul.mubr.msk.bf16.vlgmr.msra.gmra.mxu0 %vm866_vm0, %v4042_v24 }
  0x2a   : > { %1801 = vmatpush1.bf16.msra.mxu0 %v4043_v49  ;;  %1820 = vmatprep.mubr.bf16.mxu0 %v4200_v26 }
  0x2b   : > { %1802 = vmatprep.subr.bf16.mxu0 %v4051_v52  ;;  %v1101_v52 = vunpack.c.l.s4 %v4202_v51 }
  0x2e   : > { %1803 = vmatpush1.bf16.msra.mxu0 %v4049_v54  ;;  %v4465_v54 = vpack.i.b16 %v4200_v26, %v4200_v26 }
  0x9b   : > { %v1658_v8 = vpop.xlane.xlu0 %1657 }
  0x9c   : > { %v1664_v9 = vmul.f32 0.03125, %v1658_v8 }
  0x9e   : > { %v4341_v10 = vsub.f32 %v1643_v0, %v1664_v9 }
  0x9f   : > { %v1662_v11 = vpop.xlane.xlu0 %1661 }
  0xa0   : > { %v1665_v12 = vmul.f32 0.03125, %v1662_v11  ;;  %v1668_v13 = vmul.f32 %v4341_v10, %v4341_v10  ;;  %v3787_v11 = vld [vmem:[%s4862_s9] ss:$0 sm:$0xff] }
  0xa2   : > { %v4345_v14 = vsub.f32 %v1644_v1, %v1665_v12  ;;  %v1670_v15 = vsel %vm866_vm0, %v1668_v13, 0.0 }
  0xa3   : > { %1671 = vadd.xlane.f32.xlu1 %v1670_v15 }
  0xa4   : > { %v1669_v16 = vmul.f32 %v4345_v14, %v4345_v14 }
  0xa6   : > { %v1673_v17 = vsel %vm1659_vm1, %v1669_v16, 0.0  ;;  %v3788_v16 = vld [vmem:[%s4863_s10] ss:$0 sm:$0xff] }
  0xa7   : > { %1674 = vadd.xlane.f32.xlu1 %v1673_v17 }
  0xd9   : > { %v904_v24 = vpop.f32.mrf.mxu0 }
  0xdb   : > { %v906_v28 = vpop.f32.mrf.mxu0 }
  0xdd   : > { %v908_v30 = vpop.f32.mrf.mxu0 }
  0xdf   : > { %v910_v34 = vpop.f32.mrf.mxu0 }
  0xe1   : > { %v947_v40 = vpop.f32.mrf.mxu0 }
  0xe3   : > { %v949_v44 = vpop.f32.mrf.mxu0 }
  0xe5   : > { %v951_v47 = vpop.f32.mrf.mxu0 }
 0x12c   : > { %v1672_v56 = vpop.xlane.xlu1 %1671 }
 0x12d   : > { %v1676_v57 = vmul.f32 0.032258064, %v1672_v56  ;;  %v953_v56 = vpop.f32.mrf.mxu0 }
 0x12f   : > { %4118 = vrsqrt.f32 %v1676_v57  ;;  %vm1680_vm2 = vcmp.eq.f32.partialorder %v1676_v57, inf  ;;  %v1683_v62 = vand.u32 2147483648, %v1676_v57  ;;  %vm1682_vm3 = vcmp.eq.f32.partialorder %v1676_v57, 0.0 }
 0x130   : > { %v1675_v58 = vpop.xlane.xlu1 %1674 }
 0x131   : > { %v1677_v59 = vmul.f32 0.032258064, %v1675_v58 }
 0x133   : > { %4120 = vrsqrt.f32 %v1677_v59  ;;  %vm1687_vm4 = vcmp.eq.f32.partialorder %v1677_v59, inf  ;;  %v1690_v4 = vand.u32 2147483648, %v1677_v59  ;;  %vm1689_vm5 = vcmp.eq.f32.partialorder %v1677_v59, 0.0 }
 0x13c   : > { %v4119_v60 = vpop.eup %4118 }
 0x13d   : > { %v1679_v61 = vmul.f32 %v4119_v60, %v1676_v57 }
 0x13f   : > { %v1681_v63 = vsel %vm1680_vm2, %v1676_v57, %v1679_v61  ;;  %v1102_v61 = vunpack.c.0.s8 %v1101_v52 }
 0x140   : > { %v4121_v0 = vpop.eup %4120  ;;  %v1684_v1 = vsel %vm1682_vm3, %v1683_v62, %v1681_v63 }
 0x141   : > { %v1692_v2 = vadd.f32 1e-06, %v1684_v1  ;;  %v1686_v3 = vmul.f32 %v4121_v0, %v1677_v59 }
 0x143   : > { %4122 = vrcp.f32 %v1692_v2  ;;  %v1688_v5 = vsel %vm1687_vm4, %v1677_v59, %v1686_v3 }
 0x144   : > { %v1691_v6 = vsel %vm1689_vm5, %v1690_v4, %v1688_v5 }
 0x145   : > { %v1693_v7 = vadd.f32 1e-06, %v1691_v6 }
 0x147   : > { %4124 = vrcp.f32 %v1693_v7 }
 0x150   : > { %v4123_v8 = vpop.eup %4122 }
 0x151   : > { %v1696_v9 = vmul.f32 %v4123_v8, %v4341_v10  ;;  %v741_v10 = vlaneseq }
 0x153   : > { %v1704_v15 = vmul.f32 %v3787_v11, %v1696_v9  ;;  %v4438_v21 = vshrl.u32 %v741_v10, 7 }
 0x154   : > { %v4125_v12 = vpop.eup %4124 }
 0x155   : > { %v1697_v13 = vmul.f32 %v4125_v12, %v4345_v14  ;;  %v1712_v18 = vadd.f32 %v3788_v16, %v1704_v15  ;;  %v4441_v22 = vsub.s32 0, %v4438_v21  ;;  %v4444_v14 = vsub.s32 1, %v4438_v21 }
 0x156   : > { %v751_v29 = vsub.s32 2, %v4438_v21  ;;  %v755_v35 = vsub.s32 3, %v4438_v21  ;;  %v4468_v58 = vsub.s32 %v1071_v46, %v4438_v21  ;;  %v759_v62 = vsub.s32 4, %v4438_v21 }
 0x157   : > { %v1705_v17 = vmul.f32 %v3787_v11, %v1697_v13  ;;  %v744_v25 = vrot.slane %v4449_v23, %v4441_v22  ;;  %v748_v27 = vrot.slane %v4449_v23, %v4444_v14  ;;  %v767_v2 = vsub.s32 6, %v4438_v21 }
 0x158   : > { %v752_v37 = vrot.slane %v4449_v23, %v751_v29  ;;  %v756_v43 = vrot.slane %v4449_v23, %v755_v35  ;;  %v763_v3 = vsub.s32 5, %v4438_v21  ;;  %v4477_v8 = vsub.s32 %v1102_v61, %v4438_v21 }
 0x159   : > { %v1713_v19 = vadd.f32 %v3788_v16, %v1705_v17  ;;  %v905_v31 = vadd.f32 %v904_v24, %v744_v25  ;;  %v907_v32 = vadd.f32 %v906_v28, %v748_v27  ;;  %v909_v33 = vadd.f32 %v908_v30, %v744_v25 }
 0x15a   : > { %v911_v36 = vadd.f32 %v910_v34, %v748_v27  ;;  %v948_v45 = vadd.f32 %v947_v40, %v752_v37  ;;  %v952_v50 = vadd.f32 %v951_v47, %v752_v37  ;;  %v950_v55 = vadd.f32 %v949_v44, %v756_v43  ;;  %v990_v27 = vpop.f32.mrf.mxu0 }
 0x15b   : > { %v1714_v20 = vpack.c.bf16 %v1713_v19, %v1712_v18  ;;  %v1042_v41 = vpack.c.bf16 %v909_v33, %v905_v31  ;;  %v954_v59 = vadd.f32 %v953_v56, %v756_v43  ;;  %v760_v9 = vrot.slane %v4449_v23, %v759_v62 }
 0x15c   : > { %v1043_v42 = vpack.c.bf16 %v911_v36, %v907_v32  ;;  %v1044_v57 = vpack.c.bf16 %v952_v50, %v948_v45  ;;  %v771_v11 = vsub.s32 7, %v4438_v21  ;;  %v768_v18 = vrot.slane %v4449_v23, %v767_v2  ;;  %v1033_v32 = vpop.f32.mrf.mxu1  ;;  %v992_v39 = vpop.f32.mrf.mxu0 }
 0x15d   : > { %3797 = vmatmul.mubr.msk.bf16.vlgmr.msra.gmra.mxu0 %vm866_vm0, %v1714_v20  ;;  %3798 = vmatmul.mubr.msk.bf16.vlgmr.msra.gmra.mxu1 %vm866_vm0, %v1714_v20  ;;  %v1050_v48 = vshrl.u32 %v1042_v41, 16  ;;  %v1045_v1 = vpack.c.bf16 %v954_v59, %v950_v55  ;;  %v764_v19 = vrot.slane %v4449_v23, %v763_v3  ;;  %v991_v31 = vadd.f32 %v990_v27, %v760_v9 }
 0x15e   : > { %v1051_v49 = vshrl.u32 %v1043_v42, 16  ;;  %v1048_v53 = vpack.i.b16 %v1043_v42, %v1042_v41  ;;  %v1058_v0 = vshrl.u32 %v1044_v57, 16  ;;  %v772_v33 = vrot.slane %v4449_v23, %v771_v11  ;;  %v1035_v44 = vpop.f32.mrf.mxu1  ;;  %v994_v52 = vpop.f32.mrf.mxu0 }
 0x15f   : > { %v1056_v5 = vpack.i.b16 %v1045_v1, %v1044_v57  ;;  %v1059_v6 = vshrl.u32 %v1045_v1, 16  ;;  %v1034_v43 = vadd.f32 %v1033_v32, %v768_v18  ;;  %v993_v3 = vadd.f32 %v992_v39, %v764_v19 }
 0x160   : > { %v1052_v60 = vpack.i.b16 %v1051_v49, %v1050_v48  ;;  %v1068_v63 = vcombine.high %v1048_v53, %v4465_v54  ;;  %v1075_v4 = vrot.slane %v1048_v53, %v4468_v58  ;;  %v1037_v53 = vpop.f32.mrf.mxu1  ;;  %v996_v11 = vpop.f32.mrf.mxu0 }
 0x161   : > { %v1060_v13 = vpack.i.b16 %v1059_v6, %v1058_v0  ;;  %v1083_v15 = vcombine.high %v1056_v5, %v4465_v54  ;;  %v1090_v16 = vrot.slane %v1056_v5, %v4468_v58 }
 0x162   : > { %v1134_v7 = vcombine.high %v1052_v60, %v4465_v54  ;;  %v1082_v12 = vrot.slane %v1068_v63, %v4468_v58  ;;  %v1141_v17 = vrot.slane %v1052_v60, %v4468_v58 }
 0x163   : > { %v1097_v20 = vrot.slane %v1083_v15, %v4468_v58  ;;  %v1098_v10 = vcombine.low %v1075_v4, %v1090_v16  ;;  %v1099_v24 = vcombine.high %v1075_v4, %v1090_v16  ;;  %v1149_v25 = vcombine.high %v1060_v13, %v4465_v54 }
 0x164   : > { %v1148_v28 = vrot.slane %v1134_v7, %v4468_v58  ;;  %v1156_v30 = vrot.slane %v1060_v13, %v4468_v58  ;;  %v1036_v16 = vadd.f32 %v1035_v44, %v772_v33 }
 0x165   : > { %v1106_v34 = vrot.slane %v1098_v10, %v4477_v8  ;;  %v1113_v36 = vrot.slane %v1099_v24, %v4477_v8  ;;  %v1114_v37 = vcombine.low %v1082_v12, %v1097_v20  ;;  %v1115_v38 = vcombine.high %v1082_v12, %v1097_v20  ;;  %v1039_v12 = vpop.f32.mrf.mxu1 }
 0x166   : > { %v1163_v40 = vrot.slane %v1149_v25, %v4468_v58  ;;  %v1164_v41 = vcombine.low %v1141_v17, %v1156_v30  ;;  %v1165_v42 = vcombine.high %v1141_v17, %v1156_v30  ;;  %v995_v17 = vadd.f32 %v994_v52, %v760_v9 }
 0x167   : > { %v1122_v45 = vrot.slane %v1114_v37, %v4477_v8  ;;  %v1129_v46 = vrot.slane %v1115_v38, %v4477_v8  ;;  %v1200_v47 = vcombine.low %v1106_v34, %v1113_v36  ;;  %v3761_v48 = vcombine.high %v1106_v34, %v1113_v36 }
 0x168   : > { %v1172_v23 = vrot.slane %v1164_v41, %v4477_v8  ;;  %v1179_v49 = vrot.slane %v1165_v42, %v4477_v8  ;;  %v1180_v50 = vcombine.low %v1148_v28, %v1163_v40  ;;  %v1181_v51 = vcombine.high %v1148_v28, %v1163_v40 }
 0x169   : > { %v1207_v55 = vrot.slane %v1200_v47, %v4468_v58  ;;  %v1215_v56 = vrot.slane %v3761_v48, %v4468_v58  ;;  %v1216_v57 = vcombine.low %v1122_v45, %v1129_v46  ;;  %v3762_v59 = vcombine.high %v1122_v45, %v1129_v46 }
 0x16a   : > { %v1188_v60 = vrot.slane %v1180_v50, %v4477_v8  ;;  %v1195_v61 = vrot.slane %v1181_v51, %v4477_v8  ;;  %v1250_v62 = vcombine.low %v1172_v23, %v1179_v49  ;;  %v3763_v63 = vcombine.high %v1172_v23, %v1179_v49 }
 0x16b   : > { %v1223_v0 = vrot.slane %v1216_v57, %v4468_v58  ;;  %v1231_v1 = vrot.slane %v3762_v59, %v4468_v58  ;;  %v1232_v2 = vcombine.low %v1207_v55, %v1215_v56  ;;  %v1038_v25 = vadd.f32 %v1037_v53, %v768_v18 }
 0x16c   : > { %v1257_v4 = vrot.slane %v1250_v62, %v4468_v58  ;;  %v1265_v5 = vrot.slane %v3763_v63, %v4468_v58  ;;  %v1266_v6 = vcombine.low %v1188_v60, %v1195_v61  ;;  %v3764_v7 = vcombine.high %v1188_v60, %v1195_v61 }
 0x16d   : > { %v1239_v13 = vrot.slane %v1232_v2, %v4477_v8  ;;  %v1240_v15 = vcombine.low %v1223_v0, %v1231_v1  ;;  %v1344_v28 = vpack.c.bf16 %v995_v17, %v991_v31  ;;  %v997_v30 = vadd.f32 %v996_v11, %v764_v19 }
 0x16e   : > { %v1273_v20 = vrot.slane %v1266_v6, %v4468_v58  ;;  %v1281_v10 = vrot.slane %v3764_v7, %v4468_v58  ;;  %v1282_v24 = vcombine.low %v1257_v4, %v1265_v5  ;;  %v1040_v32 = vadd.f32 %v1039_v12, %v772_v33 }
 0x16f   : > { %v1247_v27 = vrot.slane %v1240_v15, %v4477_v8  ;;  %v1346_v37 = vpack.c.bf16 %v1038_v25, %v1034_v43  ;;  %v1352_v40 = vshrl.u32 %v1344_v28, 16  ;;  %v1345_v41 = vpack.c.bf16 %v997_v30, %v993_v3 }
 0x170   : > { %v1289_v34 = vrot.slane %v1282_v24, %v4477_v8  ;;  %v1290_v36 = vcombine.low %v1273_v20, %v1281_v10  ;;  %v1347_v42 = vpack.c.bf16 %v1040_v32, %v1036_v16 }
 0x171   : > { %v1248_v38 = vcombine.low %v1239_v13, %v1247_v27  ;;  %v1249_v39 = vcombine.high %v1239_v13, %v1247_v27  ;;  %v1360_v45 = vshrl.u32 %v1346_v37, 16  ;;  %v1350_v46 = vpack.i.b16 %v1345_v41, %v1344_v28 }
 0x172   : > { %v1297_v9 = vrot.slane %v1290_v36, %v4477_v8  ;;  %v1353_v18 = vshrl.u32 %v1345_v41, 16  ;;  %v1361_v19 = vshrl.u32 %v1347_v42, 16  ;;  %v1358_v49 = vpack.i.b16 %v1347_v42, %v1346_v37 }
 0x173   : > { %v1303_v44 = vshrl.u32 %v1248_v38, 16  ;;  %v1309_v31 = vshrl.u32 %v1249_v39, 16  ;;  %v1364_v23 = vcombine.high %v1350_v46, %v4465_v54  ;;  %v1371_v53 = vrot.slane %v1350_v46, %v4468_v58 }
 0x174   : > { %v1298_v47 = vcombine.low %v1289_v34, %v1297_v9  ;;  %v1299_v48 = vcombine.high %v1289_v34, %v1297_v9  ;;  %v1354_v33 = vpack.i.b16 %v1353_v18, %v1352_v40  ;;  %v1362_v57 = vpack.i.b16 %v1361_v19, %v1360_v45 }
 0x175   : > { %v1378_v55 = vrot.slane %v1364_v23, %v4468_v58  ;;  %v1379_v2 = vcombine.high %v1358_v49, %v4465_v54  ;;  %v1386_v7 = vrot.slane %v1358_v49, %v4468_v58 }
 0x176   : > { %v1302_v43 = vpack.i.b16 %v1298_v47, %v1248_v38  ;;  %v1304_v50 = vshrl.u32 %v1298_v47, 16  ;;  %v1308_v51 = vpack.i.b16 %v1299_v48, %v1249_v39  ;;  %v1310_v52 = vshrl.u32 %v1299_v48, 16 }
 0x177   : > { %v1430_v56 = vcombine.high %v1354_v33, %v4465_v54  ;;  %v1437_v1 = vrot.slane %v1354_v33, %v4468_v58  ;;  %v1393_v11 = vrot.slane %v1379_v2, %v4468_v58  ;;  %v1445_v12 = vcombine.high %v1362_v57, %v4465_v54 }
 0x178   : > { %v1305_v59 = vpack.i.b16 %v1304_v50, %v1303_v44  ;;  %v1311_v60 = vpack.i.b16 %v1310_v52, %v1309_v31  ;;  %v3765_v61 = vcombine.low %v1302_v43, %v1302_v43  ;;  %v3766_v62 = vcombine.high %v1302_v43, %v1302_v43 }
 0x179   : > { %v3769_v63 = vcombine.low %v1308_v51, %v1308_v51  ;;  %v3770_v0 = vcombine.high %v1308_v51, %v1308_v51  ;;  %v1452_v13 = vrot.slane %v1362_v57, %v4468_v58  ;;  %v1444_v15 = vrot.slane %v1430_v56, %v4468_v58 }
 0x17a   : > { %v3767_v3 = vcombine.low %v1305_v59, %v1305_v59  ;;  %v3768_v4 = vcombine.high %v1305_v59, %v1305_v59  ;;  %v3771_v5 = vcombine.low %v1311_v60, %v1311_v60  ;;  %v3772_v6 = vcombine.high %v1311_v60, %v1311_v60  ;;  %1336 = vst [vmem:[#allocation2] sm:$0xf] %v3765_v61 }
 0x17b   : > { %1337 = vst [vmem:[#allocation2 + $0x4] sm:$0xf] %v3766_v62  ;;  %1340 = vst [vmem:[#allocation2 + $0x10] sm:$0xf] %v3769_v63  ;;  %v1394_v16 = vcombine.low %v1371_v53, %v1386_v7  ;;  %v1395_v17 = vcombine.high %v1371_v53, %v1386_v7  ;;  %v1410_v20 = vcombine.low %v1378_v55, %v1393_v11  ;;  %v4203_v57 = vmov 0.0  }
 0x17c   : > { %1341 = vst [vmem:[#allocation2 + $0x14] sm:$0xf] %v3770_v0  ;;  %1338 = vst [vmem:[#allocation2 + $0x8] sm:$0xf] %v3767_v3  ;;  %v1411_v10 = vcombine.high %v1378_v55, %v1393_v11  ;;  %v1459_v24 = vrot.slane %v1445_v12, %v4468_v58  ;;  %v1460_v25 = vcombine.low %v1437_v1, %v1452_v13  ;;  %3965 = vmatprep.subr.bf16.mxu0 %v4203_v57 }
 0x17d   : > { %1339 = vst [vmem:[#allocation2 + $0xc] sm:$0xf] %v3768_v4  ;;  %1342 = vst [vmem:[#allocation2 + $0x18] sm:$0xf] %v3771_v5  ;;  %v1461_v27 = vcombine.high %v1437_v1, %v1452_v13  ;;  %v1402_v28 = vrot.slane %v1394_v16, %v4477_v8  ;;  %v1409_v54 = vrot.slane %v1395_v17, %v4477_v8  ;;  %3971 = vmatprep.subr.bf16.mxu1 %v4203_v57 }
 0x17e   : > { %1343 = vst [vmem:[#allocation2 + $0x1c] sm:$0xf] %v3772_v6  ;;  %v1418_v30 = vrot.slane %v1410_v20, %v4477_v8  ;;  %v1425_v32 = vrot.slane %v1411_v10, %v4477_v8  ;;  %v1468_v34 = vrot.slane %v1460_v25, %v4477_v8  ;;  %v1476_v37 = vcombine.low %v1444_v15, %v1459_v24 }
 0x17f   : > { %v1475_v36 = vrot.slane %v1461_v27, %v4477_v8  ;;  %v1477_v38 = vcombine.high %v1444_v15, %v1459_v24  ;;  %v1496_v39 = vcombine.low %v1402_v28, %v1409_v54  ;;  %v3773_v40 = vcombine.high %v1402_v28, %v1409_v54  ;;  %3967 = vmatprep.mubr.msk.bf16.mxu0 %vm4204_vm6, %v4203_v57  ;;  %v1723_v54 = vld [vmem:[%s4857_s4] sm:$0xf] }
 0x180   : > { %v1512_v41 = vcombine.low %v1418_v30, %v1425_v32  ;;  %v3774_v9 = vcombine.high %v1418_v30, %v1425_v32  ;;  %v1484_v42 = vrot.slane %v1476_v37, %v4477_v8  ;;  %3973 = vmatprep.mubr.msk.bf16.mxu1 %vm4204_vm6, %v4203_v57  ;;  %v1728_v30 = vrot.slane %v1723_v54, %v4441_v22 }
 0x181   : > { %v1491_v44 = vrot.slane %v1477_v38, %v4477_v8  ;;  %v1546_v45 = vcombine.low %v1468_v34, %v1475_v36  ;;  %v3775_v46 = vcombine.high %v1468_v34, %v1475_v36  ;;  %v1503_v18 = vrot.slane %v1496_v39, %v4468_v58 }
 0x182   : > { %v1511_v47 = vrot.slane %v3773_v40, %v4468_v58  ;;  %v1519_v48 = vrot.slane %v1512_v41, %v4468_v58  ;;  %v1527_v31 = vrot.slane %v3774_v9, %v4468_v58  ;;  %v4055_v19 = vld [vmem:[#allocation2] sm:$0xff]   ;;  %v1736_v32 = vrot.slane %v1723_v54, %v751_v29 }
 0x183   : > { %v1553_v33 = vrot.slane %v1546_v45, %v4468_v58  ;;  %v1561_v23 = vrot.slane %v3775_v46, %v4468_v58  ;;  %v1562_v49 = vcombine.low %v1484_v42, %v1491_v44  ;;  %v3776_v43 = vcombine.high %v1484_v42, %v1491_v44  ;;  %3966 = vmatpush3.bf16.xpose.msra.mxu0 %v4055_v19 }
 0x184   : > { %v1528_v50 = vcombine.low %v1503_v18, %v1511_v47  ;;  %v1536_v51 = vcombine.low %v1519_v48, %v1527_v31  ;;  %v4056_v52 = vld [vmem:[#allocation2 + $0x8] sm:$0xff]   ;;  %3977 = vmatprep.subr.bf16.mxu0 %v4203_v57  ;;  %v1732_v37 = vrot.slane %v1723_v54, %v4444_v14  ;;  %v1740_v41 = vrot.slane %v1723_v54, %v755_v35 }
 0x185   : > { %v1569_v53 = vrot.slane %v1562_v49, %v4468_v58  ;;  %v1577_v55 = vrot.slane %v3776_v43, %v4468_v58  ;;  %v1578_v56 = vcombine.low %v1553_v33, %v1561_v23  ;;  %3972 = vmatpush3.bf16.xpose.msra.mxu1 %v4056_v52 }
 0x186   : > { %v1535_v59 = vrot.slane %v1528_v50, %v4477_v8  ;;  %v1543_v60 = vrot.slane %v1536_v51, %v4477_v8  ;;  %3983 = vmatprep.subr.bf16.mxu1 %v4203_v57 }
 0x187   : > { %v1585_v61 = vrot.slane %v1578_v56, %v4477_v8  ;;  %v1586_v62 = vcombine.low %v1569_v53, %v1577_v55 }
 0x188   : > { %v1544_v63 = vcombine.low %v1535_v59, %v1543_v60  ;;  %v1545_v0 = vcombine.high %v1535_v59, %v1543_v60 }
 0x189   : > { %v1593_v1 = vrot.slane %v1586_v62, %v4477_v8 }
 0x18a   : > { %v1599_v4 = vshrl.u32 %v1544_v63, 16  ;;  %v1605_v5 = vshrl.u32 %v1545_v0, 16 }
 0x18b   : > { %v1594_v2 = vcombine.low %v1585_v61, %v1593_v1  ;;  %v1595_v3 = vcombine.high %v1585_v61, %v1593_v1 }
 0x18d   : > { %v1598_v6 = vpack.i.b16 %v1594_v2, %v1544_v63  ;;  %v1600_v7 = vshrl.u32 %v1594_v2, 16  ;;  %v1604_v11 = vpack.i.b16 %v1595_v3, %v1545_v0  ;;  %v1606_v12 = vshrl.u32 %v1595_v3, 16 }
 0x18f   : > { %v1601_v13 = vpack.i.b16 %v1600_v7, %v1599_v4  ;;  %v1607_v15 = vpack.i.b16 %v1606_v12, %v1605_v5  ;;  %v3777_v16 = vcombine.low %v1598_v6, %v1598_v6  ;;  %v3778_v17 = vcombine.high %v1598_v6, %v1598_v6 }
 0x190   : > { %v3781_v20 = vcombine.low %v1604_v11, %v1604_v11  ;;  %v3782_v10 = vcombine.high %v1604_v11, %v1604_v11 }
 0x191   : > { %v3779_v24 = vcombine.low %v1601_v13, %v1601_v13  ;;  %v3780_v25 = vcombine.high %v1601_v13, %v1601_v13  ;;  %v3783_v27 = vcombine.low %v1607_v15, %v1607_v15  ;;  %v3784_v28 = vcombine.high %v1607_v15, %v1607_v15  ;;  %1632 = vst [vmem:[#allocation3] sm:$0xf] %v3777_v16 }
 0x192   : > { %1633 = vst [vmem:[#allocation3 + $0x4] sm:$0xf] %v3778_v17  ;;  %1636 = vst [vmem:[#allocation3 + $0x10] sm:$0xf] %v3781_v20 }
 0x193   : > { %1637 = vst [vmem:[#allocation3 + $0x14] sm:$0xf] %v3782_v10  ;;  %1634 = vst [vmem:[#allocation3 + $0x8] sm:$0xf] %v3779_v24 }
 0x194   : > { %1635 = vst [vmem:[#allocation3 + $0xc] sm:$0xf] %v3780_v25  ;;  %1638 = vst [vmem:[#allocation3 + $0x18] sm:$0xf] %v3783_v27 }
 0x195   : > { %1639 = vst [vmem:[#allocation3 + $0x1c] sm:$0xf] %v3784_v28 }
 0x21d   : > { %v1822_v34 = vpop.f32.mrf.mxu0  ;;  %v1865_v36 = vpop.f32.mrf.mxu1 }
 0x21e   : > { %v1823_v38 = vadd.f32 %v1822_v34, %v1728_v30  ;;  %v1866_v39 = vadd.f32 %v1865_v36, %v1736_v32 }
 0x21f   : > { %v1824_v40 = vpop.f32.mrf.mxu0  ;;  %v1867_v9 = vpop.f32.mrf.mxu1 }
 0x220   : > { %v1825_v42 = vadd.f32 %v1824_v40, %v1732_v37  ;;  %v1874_v47 = vmul.f32 0.35355338, %v1823_v38  ;;  %v1876_v48 = vmul.f32 0.35355338, %v1866_v39  ;;  %v1868_v31 = vadd.f32 %v1867_v9, %v1740_v41 }
 0x221   : > { %v1826_v44 = vpop.f32.mrf.mxu0  ;;  %v1869_v45 = vpop.f32.mrf.mxu1 }
 0x222   : > { %v1827_v46 = vadd.f32 %v1826_v44, %v1728_v30  ;;  %v1870_v18 = vadd.f32 %v1869_v45, %v1736_v32  ;;  %v1875_v50 = vmul.f32 0.35355338, %v1825_v42  ;;  %v1877_v53 = vmul.f32 0.35355338, %v1868_v31 }
 0x223   : > { %v1828_v29 = vpop.f32.mrf.mxu0  ;;  %v1871_v19 = vpop.f32.mrf.mxu1 }
 0x224   : > { %v1878_v33 = vmul.f32 0.35355338, %v1827_v46  ;;  %v1880_v23 = vmul.f32 0.35355338, %v1870_v18  ;;  %v1829_v49 = vadd.f32 %v1828_v29, %v1732_v37  ;;  %v1872_v43 = vadd.f32 %v1871_v19, %v1740_v41 }
 0x226   : > { %v1882_v51 = vpack.c.bf16 %v1878_v33, %v1874_v47  ;;  %v1884_v52 = vpack.c.bf16 %v1880_v23, %v1876_v48  ;;  %v3799_v21 = vpack.c.bf16 %v1880_v23, %v1878_v33  ;;  %v1879_v35 = vmul.f32 0.35355338, %v1829_v49 }
 0x227   : > { %v1881_v55 = vmul.f32 0.35355338, %v1872_v43 }
 0x228   : > { %v1892_v56 = vrot.slane %v1882_v51, %v4468_v58  ;;  %v1900_v59 = vrot.slane %v1884_v52, %v4468_v58  ;;  %v1925_v60 = vrot.slane %v3799_v21, %v4477_v8  ;;  %v1883_v61 = vpack.c.bf16 %v1879_v35, %v1875_v50 }
 0x229   : > { %v1885_v62 = vpack.c.bf16 %v1881_v55, %v1877_v53  ;;  %v3800_v63 = vpack.c.bf16 %v1881_v55, %v1879_v35 }
 0x22a   : > { %v1902_v0 = vcombine.low %v1892_v56, %v1900_v59  ;;  %v1903_v1 = vcombine.high %v1892_v56, %v1900_v59  ;;  %v1928_v2 = vcombine.high %v1925_v60, %v4200_v26  ;;  %v1935_v3 = vrot.slane %v1883_v61, %v4468_v58 }
 0x22b   : > { %v1943_v4 = vrot.slane %v1885_v62, %v4468_v58  ;;  %v1968_v5 = vrot.slane %v3800_v63, %v4477_v8  ;;  %v2007_v47 = vshrl.u32 %v1925_v60, 16 }
 0x22c   : > { %v1910_v6 = vrot.slane %v1902_v0, %v4477_v8  ;;  %v1917_v7 = vrot.slane %v1903_v1, %v4477_v8  ;;  %v2013_v17 = vshrl.u32 %v1928_v2, 16 }
 0x22d   : > { %v1945_v11 = vcombine.low %v1935_v3, %v1943_v4  ;;  %v1946_v12 = vcombine.high %v1935_v3, %v1943_v4  ;;  %v1971_v13 = vcombine.high %v1968_v5, %v4200_v26  ;;  %v2008_v27 = vshrl.u32 %v1968_v5, 16  ;;  %v4057_v4 = vld [vmem:[#allocation2 + $0x10] sm:$0xff]  }
 0x22e   : > { %v1926_v15 = vcombine.high %v1910_v6, %v4200_v26  ;;  %v1927_v16 = vcombine.high %v1917_v7, %v4200_v26  ;;  %v1976_v24 = vshrl.u32 %v1910_v6, 16  ;;  %v1992_v25 = vshrl.u32 %v1917_v7, 16 }
 0x22f   : > { %v1953_v20 = vrot.slane %v1945_v11, %v4477_v8  ;;  %v1960_v10 = vrot.slane %v1946_v12, %v4477_v8  ;;  %v2012_v28 = vpack.i.b16 %v1971_v13, %v1928_v2  ;;  %v2014_v39 = vshrl.u32 %v1971_v13, 16 }
 0x230   : > { %v1984_v36 = vshrl.u32 %v1926_v15, 16  ;;  %v2000_v44 = vshrl.u32 %v1927_v16, 16  ;;  %v2006_v19 = vpack.i.b16 %v1968_v5, %v1925_v60  ;;  %v2009_v50 = vpack.i.b16 %v2008_v27, %v2007_v47 }
 0x231   : > { %v1969_v54 = vcombine.high %v1953_v20, %v4200_v26  ;;  %v1970_v30 = vcombine.high %v1960_v10, %v4200_v26  ;;  %v1974_v32 = vpack.i.b16 %v1953_v20, %v1910_v6  ;;  %v1977_v34 = vshrl.u32 %v1953_v20, 16  ;;  %v4060_v20 = vld [vmem:[#allocation3 + $0x8] sm:$0xff]  }
 0x232   : > { %v1990_v37 = vpack.i.b16 %v1960_v10, %v1917_v7  ;;  %v1993_v38 = vshrl.u32 %v1960_v10, 16  ;;  %v2015_v33 = vpack.i.b16 %v2014_v39, %v2013_v17  ;;  %v2042_v51 = vcombine.low %v2006_v19, %v2012_v28  ;;  %v4058_v7 = vld [vmem:[#allocation2 + $0x18] sm:$0xff]   ;;  %v1645_v10 = vld [vmem:[%s685_s18] sm:$0xf] }
 0x233   : > { %v1978_v40 = vpack.i.b16 %v1977_v34, %v1976_v24  ;;  %v1982_v41 = vpack.i.b16 %v1969_v54, %v1926_v15  ;;  %v1985_v9 = vshrl.u32 %v1969_v54, 16  ;;  %v1998_v42 = vpack.i.b16 %v1970_v30, %v1927_v16  ;;  %v4059_v16 = vld [vmem:[#allocation3] sm:$0xff]  }
 0x234   : > { %v1994_v45 = vpack.i.b16 %v1993_v38, %v1992_v25  ;;  %v2001_v46 = vshrl.u32 %v1970_v30, 16  ;;  %v2016_v18 = vcombine.low %v1974_v32, %v1990_v37  ;;  %v2078_v55 = vcombine.low %v2009_v50, %v2015_v33  ;;  %v1646_v25 = vld [vmem:[%s685_s18 + $0x4] sm:$0x3]  ;;  %s4878_s18 = sshll.u32 %s4884_s24, 4 }
 0x235   : > { %v1986_v48 = vpack.i.b16 %v1985_v9, %v1984_v36  ;;  %v2024_v31 = vcombine.low %v1982_v41, %v1998_v42  ;;  %v2049_v59 = vrot.slane %v2042_v51, %v4477_v8  ;;  %v1647_v24 = vunpack.c.l.bf16 %v1645_v10  ;;  %s712_s21 = scalar_lea.vmem %s4870_s17, %s4878_s18 }
 0x236   : > { %v2002_v29 = vpack.i.b16 %v2001_v46, %v2000_v44  ;;  %v2052_v23 = vcombine.low %v1978_v40, %v1994_v45  ;;  %v2023_v49 = vrot.slane %v2016_v18, %v4468_v58  ;;  %v2085_v63 = vrot.slane %v2078_v55, %v4477_v8 }
 0x237   : > { %v2031_v43 = vrot.slane %v2024_v31, %v4468_v58  ;;  %v3785_v27 = vadd.f32 -1.0, %v1647_v24  ;;  %v1648_v28 = vunpack.c.l.bf16 %v1646_v25 }
 0x238   : > { %v2060_v52 = vcombine.low %v1986_v48, %v2002_v29  ;;  %v2059_v35 = vrot.slane %v2052_v23, %v4468_v58 }
 0x239   : > { %v2034_v21 = vcombine.low %v2023_v49, %v2031_v43  ;;  %v1651_v54 = vmul.f32 1e+09, %v3785_v27  ;;  %v3786_v30 = vadd.f32 -1.0, %v1648_v28 }
 0x23a   : > { %v2067_v53 = vrot.slane %v2060_v52, %v4468_v58 }
 0x23b   : > { %v2041_v56 = vrot.slane %v2034_v21, %v4477_v8  ;;  %v1652_v36 = vmul.f32 1e+09, %v3786_v30 }
 0x23c   : > { %v2070_v60 = vcombine.low %v2059_v35, %v2067_v53 }
 0x23d   : > { %v2050_v61 = vcombine.low %v2041_v56, %v2049_v59  ;;  %v2051_v11 = vcombine.high %v2041_v56, %v2049_v59 }
 0x23e   : > { %v2077_v62 = vrot.slane %v2070_v60, %v4477_v8 }
 0x23f   : > { %v2092_v2 = vshrl.u32 %v2050_v61, 16  ;;  %v2100_v15 = vshrl.u32 %v2051_v11, 16 }
 0x240   : > { %v2086_v0 = vcombine.low %v2077_v62, %v2085_v63  ;;  %v2087_v6 = vcombine.high %v2077_v62, %v2085_v63 }
 0x242   : > { %v2090_v1 = vpack.i.b16 %v2086_v0, %v2050_v61  ;;  %v2093_v3 = vshrl.u32 %v2086_v0, 16  ;;  %v2101_v12 = vshrl.u32 %v2087_v6, 16  ;;  %v2098_v13 = vpack.i.b16 %v2087_v6, %v2051_v11 }
 0x244   : > { %3968 = vmatmul.mubr.bf16.vlgmr.msra.gmra.mxu0 %v2090_v1  ;;  %v2094_v5 = vpack.i.b16 %v2093_v3, %v2092_v2  ;;  %v2102_v17 = vpack.i.b16 %v2101_v12, %v2100_v15 }
 0x245   : > { %3978 = vmatpush3.bf16.xpose.msra.mxu0 %v4057_v4  ;;  %3979 = vmatprep.mubr.msk.bf16.mxu0 %vm4204_vm6, %v4203_v57 }
 0x246   : > { %3974 = vmatmul.mubr.bf16.vlgmr.msra.gmra.mxu1 %v2094_v5  ;;  %3989 = vmatprep.subr.bf16.mxu0 %v4203_v57 }
 0x247   : > { %3984 = vmatpush3.bf16.xpose.msra.mxu1 %v4058_v7  ;;  %3985 = vmatprep.mubr.msk.bf16.mxu1 %vm4204_vm6, %v4203_v57 }
 0x248   : > { %3995 = vmatprep.subr.bf16.mxu1 %v4203_v57 }
 0x24c   : > { %3980 = vmatmul.mubr.bf16.vlgmr.msra.gmra.mxu0 %v2098_v13 }
 0x24d   : > { %3990 = vmatpush3.bf16.msra.mxu0 %v4059_v16  ;;  %3991 = vmatprep.mubr.msk.bf16.mxu0 %vm4204_vm6, %v4203_v57 }
 0x24e   : > { %3986 = vmatmul.mubr.bf16.vlgmr.msra.gmra.mxu1 %v2102_v17  ;;  %4001 = vmatprep.subr.bf16.mxu0 %v4203_v57 }
 0x24f   : > { %3996 = vmatpush3.bf16.msra.mxu1 %v4060_v20  ;;  %3997 = vmatprep.mubr.msk.bf16.mxu1 %vm4204_vm6, %v4203_v57 }
 0x250   : > { %4007 = vmatprep.subr.bf16.mxu1 %v4203_v57 }
 0x304   : > { %v2152_v32 = vpop.f32.mrf.mxu0 }
 0x305   : > { %v2153_v34 = vadd.f32 %v2152_v32, %v1651_v54 }
 0x306   : > { %v3969_v37 = vpop.f32.mrf.mxu0  ;;  %v2199_v38 = vpop.f32.mrf.mxu1 }
 0x307   : > { %v2200_v39 = vadd.f32 %v2199_v38, %v1651_v54  ;;  %v2301_v40 = vsel %vm2300_vm7, %v2153_v34, -inf }
 0x308   : > { %v3975_v41 = vpop.f32.mrf.mxu1  ;;  %2302 = vmax.xlane.f32.xlu0 %v2301_v40  ;;  %v2155_v9 = vpop.f32.mrf.mxu0 }
 0x309   : > { %v2156_v42 = vadd.f32 %v2155_v9, %v1652_v36  ;;  %v2308_v18 = vsel %vm2300_vm7, %v2200_v39, -inf }
 0x30a   : > { %v3970_v44 = vpop.f32.mrf.mxu0  ;;  %v2202_v45 = vpop.f32.mrf.mxu1 }
 0x30b   : > { %v2203_v46 = vadd.f32 %v2202_v45, %v1652_v36  ;;  %v2305_v47 = vsel %vm2304_vm8, %v2156_v42, -inf }
 0x30c   : > { %v3976_v48 = vpop.f32.mrf.mxu1  ;;  %2309 = vmax.xlane.f32.xlu0 %v2308_v18  ;;  %2306 = vmax.xlane.f32.xlu1 %v2305_v47  ;;  %v2246_v31 = vpop.f32.mrf.mxu0 }
 0x30d   : > { %v2247_v29 = vadd.f32 %v2246_v31, %v1651_v54  ;;  %v2311_v49 = vsel %vm2304_vm8, %v2203_v46, -inf }
 0x30e   : > { %v3981_v19 = vpop.f32.mrf.mxu0  ;;  %v2293_v33 = vpop.f32.mrf.mxu1 }
 0x30f   : > { %v2294_v23 = vadd.f32 %v2293_v33, %v1651_v54  ;;  %v2314_v43 = vsel %vm2300_vm7, %v2247_v29, -inf }
 0x310   : > { %v3987_v50 = vpop.f32.mrf.mxu1  ;;  %2312 = vmax.xlane.f32.xlu1 %v2311_v49  ;;  %2315 = vmax.xlane.f32.xlu0 %v2314_v43  ;;  %v2249_v51 = vpop.f32.mrf.mxu0 }
 0x311   : > { %v2250_v52 = vadd.f32 %v2249_v51, %v1652_v36  ;;  %v2320_v55 = vsel %vm2300_vm7, %v2294_v23, -inf }
 0x312   : > { %v3982_v21 = vpop.f32.mrf.mxu0  ;;  %v2296_v35 = vpop.f32.mrf.mxu1 }
 0x313   : > { %v2297_v53 = vadd.f32 %v2296_v35, %v1652_v36  ;;  %v2317_v56 = vsel %vm2304_vm8, %v2250_v52, -inf }
 0x314   : > { %v3988_v59 = vpop.f32.mrf.mxu1  ;;  %2321 = vmax.xlane.f32.xlu0 %v2320_v55  ;;  %2318 = vmax.xlane.f32.xlu1 %v2317_v56  ;;  %v4061_v55 = vld [vmem:[#allocation3 + $0x10] sm:$0xff]  }
 0x315   : > { %v2323_v60 = vsel %vm2304_vm8, %v2297_v53, -inf }
 0x318   : > { %2324 = vmax.xlane.f32.xlu1 %v2323_v60 }
 0x391   : > { %v2303_v61 = vpop.xlane.xlu0 %2302 }
 0x392   : > { %v2326_v62 = vsub.f32 %v2153_v34, %v2303_v61 }
 0x394   : > { %v2334_v63 = vmul.f32 1.442695, %v2326_v62 }
 0x395   : > { %v2310_v0 = vpop.xlane.xlu0 %2309  ;;  %v2307_v1 = vpop.xlane.xlu1 %2306 }
 0x396   : > { %4126 = vpow2.f32 %v2334_v63  ;;  %v2328_v2 = vsub.f32 %v2200_v39, %v2310_v0  ;;  %v2327_v3 = vsub.f32 %v2156_v42, %v2307_v1  ;;  %v4062_v0 = vld [vmem:[#allocation3 + $0x18] sm:$0xff]  }
 0x398   : > { %v2338_v4 = vmul.f32 1.442695, %v2328_v2  ;;  %v2336_v5 = vmul.f32 1.442695, %v2327_v3 }
 0x399   : > { %v2313_v6 = vpop.xlane.xlu1 %2312  ;;  %v2316_v7 = vpop.xlane.xlu0 %2315 }
 0x39a   : > { %4128 = vpow2.f32 %v2338_v4  ;;  %v2329_v11 = vsub.f32 %v2203_v46, %v2313_v6  ;;  %v2330_v12 = vsub.f32 %v2247_v29, %v2316_v7 }
 0x39b   : > { %4130 = vpow2.f32 %v2336_v5 }
 0x39c   : > { %v2340_v13 = vmul.f32 1.442695, %v2329_v11  ;;  %v2342_v15 = vmul.f32 1.442695, %v2330_v12  ;;  %v4063_v12 = vld [vmem:[%s4860_s7 + $0x78] sm:$0xff]  }
 0x39d   : > { %v2322_v16 = vpop.xlane.xlu0 %2321  ;;  %v2319_v17 = vpop.xlane.xlu1 %2318 }
 0x39e   : > { %4132 = vpow2.f32 %v2340_v13  ;;  %v2332_v20 = vsub.f32 %v2294_v23, %v2322_v16  ;;  %v2331_v10 = vsub.f32 %v2250_v52, %v2319_v17  ;;  %v4064_v13 = vld [vmem:[%s4860_s7 + $0xf8] sm:$0xff]   ;;  %v4067_v16 = vld [vmem:[%s4860_s7 + $0x70] sm:$0xff]  }
 0x39f   : > { %4134 = vpow2.f32 %v2342_v15  ;;  %v4066_v15 = vld [vmem:[%s4860_s7 + $0xb8] sm:$0xff]   ;;  %v4068_v17 = vld [vmem:[%s4860_s7 + $0xf0] sm:$0xff]  }
 0x3a0   : > { %v2346_v24 = vmul.f32 1.442695, %v2332_v20  ;;  %v2344_v25 = vmul.f32 1.442695, %v2331_v10  ;;  %v4069_v20 = vld [vmem:[%s4860_s7 + $0x30] sm:$0xff]  }
 0x3a1   : > { %v2325_v27 = vpop.xlane.xlu1 %2324  ;;  %v4070_v10 = vld [vmem:[%s4860_s7 + $0xb0] sm:$0xff]  }
 0x3a2   : > { %4136 = vpow2.f32 %v2346_v24  ;;  %v2333_v28 = vsub.f32 %v2297_v53, %v2325_v27  ;;  %v4071_v24 = vld [vmem:[%s4860_s7 + $0x68] sm:$0xff]  }
 0x3a3   : > { %v4127_v54 = vpop.eup %4126  ;;  %4138 = vpow2.f32 %v2344_v25  ;;  %v4072_v25 = vld [vmem:[%s4860_s7 + $0xe8] sm:$0xff]  }
 0x3a4   : > { %v2348_v30 = vmul.f32 1.442695, %v2333_v28  ;;  %v2350_v32 = vsel %vm2300_vm7, %v4127_v54, 0.0  ;;  %v4073_v27 = vld [vmem:[%s4860_s7 + $0x28] sm:$0xff]  }
 0x3a5   : > { %2351 = vadd.xlane.f32.xlu0 %v2350_v32  ;;  %v4074_v28 = vld [vmem:[%s4860_s7 + $0xa8] sm:$0xff]   ;;  %v4077_v32 = vld [vmem:[%s4860_s7 + $0x20] sm:$0xff]  }
 0x3a6   : > { %4140 = vpow2.f32 %v2348_v30  ;;  %v4076_v30 = vld [vmem:[%s4860_s7 + $0xe0] sm:$0xff]  }
 0x3a7   : > { %v4129_v34 = vpop.eup %4128 }
 0x3a8   : > { %v4131_v36 = vpop.eup %4130  ;;  %v2356_v37 = vsel %vm2300_vm7, %v4129_v34, 0.0 }
 0x3a9   : > { %2357 = vadd.xlane.f32.xlu0 %v2356_v37  ;;  %v2353_v38 = vsel %vm2304_vm8, %v4131_v36, 0.0  ;;  %v4080_v37 = vld [vmem:[%s4860_s7 + $0xd8] sm:$0xff]  }
 0x3aa   : > { %2354 = vadd.xlane.f32.xlu1 %v2353_v38  ;;  %v4081_v38 = vld [vmem:[%s4860_s7 + $0x18] sm:$0xff]  }
 0x3ab   : > { %v4133_v39 = vpop.eup %4132 }
 0x3ac   : > { %v4135_v40 = vpop.eup %4134  ;;  %v2359_v41 = vsel %vm2304_vm8, %v4133_v39, 0.0 }
 0x3ad   : > { %v2362_v9 = vsel %vm2300_vm7, %v4135_v40, 0.0 }
 0x3ae   : > { %2363 = vadd.xlane.f32.xlu0 %v2362_v9  ;;  %2360 = vadd.xlane.f32.xlu1 %v2359_v41  ;;  %v4084_v41 = vld [vmem:[%s4860_s7 + $0xd0] sm:$0xff]  }
 0x3af   : > { %v4137_v42 = vpop.eup %4136  ;;  %v4085_v9 = vld [vmem:[%s4860_s7 + $0x10] sm:$0xff]  }
 0x3b0   : > { %v4139_v44 = vpop.eup %4138  ;;  %v2368_v45 = vsel %vm2300_vm7, %v4137_v42, 0.0 }
 0x3b1   : > { %v2365_v46 = vsel %vm2304_vm8, %v4139_v44, 0.0 }
 0x3b2   : > { %2369 = vadd.xlane.f32.xlu0 %v2368_v45  ;;  %2366 = vadd.xlane.f32.xlu1 %v2365_v46  ;;  %v4088_v45 = vld [vmem:[%s4860_s7 + $0xc8] sm:$0xff]  }
 0x3b3   : > { %v4141_v18 = vpop.eup %4140  ;;  %v4089_v46 = vld [vmem:[%s4860_s7 + $0x8] sm:$0xff]  }
 0x3b4   : > { %v2371_v47 = vsel %vm2304_vm8, %v4141_v18, 0.0 }
 0x3b6   : > { %2372 = vadd.xlane.f32.xlu1 %v2371_v47  ;;  %v4091_v47 = vld [vmem:[%s4860_s7 + $0x40] sm:$0xff]  }
 0x42e   : > { %v2352_v48 = vpop.xlane.xlu0 %2351 }
 0x42f   : > { %4142 = vrcp.f32 %v2352_v48  ;;  %v4092_v48 = vld [vmem:[%s4860_s7 + $0xc0] sm:$0xff]  }
 0x432   : > { %v2358_v31 = vpop.xlane.xlu0 %2357 }
 0x433   : > { %v2355_v29 = vpop.xlane.xlu1 %2354 }
 0x434   : > { %4144 = vrcp.f32 %v2355_v29  ;;  %v4094_v29 = vld [vmem:[%s4860_s7 + $0x80] sm:$0xff]  }
 0x435   : > { %4146 = vrcp.f32 %v2358_v31  ;;  %v4093_v31 = vld [vmem:[%s4860_s7] sm:$0xff]  }
 0x437   : > { %v2364_v19 = vpop.xlane.xlu0 %2363  ;;  %v2361_v33 = vpop.xlane.xlu1 %2360 }
 0x438   : > { %4148 = vrcp.f32 %v2361_v33 }
 0x439   : > { %4150 = vrcp.f32 %v2364_v19 }
 0x43b   : > { %v2370_v23 = vpop.xlane.xlu0 %2369  ;;  %v2367_v49 = vpop.xlane.xlu1 %2366 }
 0x43c   : > { %4152 = vrcp.f32 %v2367_v49  ;;  %v4143_v43 = vpop.eup %4142 }
 0x43d   : > { %4154 = vrcp.f32 %v2370_v23  ;;  %v2382_v52 = vmul.f32 %v4143_v43, %v4127_v54  ;;  %v4075_v54 = vld [vmem:[%s4860_s7 + $0x60] sm:$0xff]  }
 0x43f   : > { %v2373_v50 = vpop.xlane.xlu1 %2372 }
 0x440   : > { %4156 = vrcp.f32 %v2373_v50 }
 0x441   : > { %v4145_v51 = vpop.eup %4144 }
 0x442   : > { %v2383_v21 = vmul.f32 %v4145_v51, %v4131_v36  ;;  %v4147_v35 = vpop.eup %4146  ;;  %v4079_v36 = vld [vmem:[%s4860_s7 + $0x58] sm:$0xff]  }
 0x443   : > { %v2384_v59 = vmul.f32 %v4147_v35, %v4129_v34  ;;  %v4078_v34 = vld [vmem:[%s4860_s7 + $0xa0] sm:$0xff]  }
 0x444   : > { %v2390_v53 = vpack.c.bf16 %v2383_v21, %v2382_v52 }
 0x445   : > { %v4149_v56 = vpop.eup %4148 }
 0x446   : > { %3992 = vmatmul.mubr.msk.bf16.vlgmr.msra.gmra.mxu0 %vm2300_vm7, %v2390_v53  ;;  %v2385_v60 = vmul.f32 %v4149_v56, %v4133_v39  ;;  %v4151_v61 = vpop.eup %4150  ;;  %v4082_v39 = vld [vmem:[%s4860_s7 + $0x98] sm:$0xff]  }
 0x447   : > { %4002 = vmatpush3.bf16.msra.mxu0 %v4061_v55  ;;  %4003 = vmatprep.mubr.msk.bf16.mxu0 %vm4204_vm6, %v4203_v57  ;;  %v2386_v2 = vmul.f32 %v4151_v61, %v4135_v40  ;;  %v4083_v40 = vld [vmem:[%s4860_s7 + $0x50] sm:$0xff]  }
 0x448   : > { %v2391_v62 = vpack.c.bf16 %v2385_v60, %v2384_v59  ;;  %3899 = vmatprep.subr.bf16.mxu0 %v4063_v12 }
 0x449   : > { %v4153_v63 = vpop.eup %4152 }
 0x44a   : > { %v4155_v1 = vpop.eup %4154  ;;  %3998 = vmatmul.mubr.msk.bf16.vlgmr.msra.gmra.mxu1 %vm2300_vm7, %v2391_v62  ;;  %v2387_v3 = vmul.f32 %v4153_v63, %v4139_v44  ;;  %v4087_v44 = vld [vmem:[%s4860_s7 + $0x48] sm:$0xff]  }
 0x44b   : > { %4008 = vmatpush3.bf16.msra.mxu1 %v4062_v0  ;;  %4009 = vmatprep.mubr.msk.bf16.mxu1 %vm4204_vm6, %v4203_v57  ;;  %v2388_v6 = vmul.f32 %v4155_v1, %v4137_v42  ;;  %v4065_v57 = vld [vmem:[%s4860_s7 + $0x38] sm:$0xff]   ;;  %v4086_v42 = vld [vmem:[%s4860_s7 + $0x90] sm:$0xff]  }
 0x44c   : > { %v2392_v5 = vpack.c.bf16 %v2387_v3, %v2386_v2  ;;  %3921 = vmatprep.subr.bf16.mxu1 %v4064_v13 }
 0x44d   : > { %v4157_v4 = vpop.eup %4156 }
 0x44e   : > { %v2389_v7 = vmul.f32 %v4157_v4, %v4141_v18  ;;  %4004 = vmatmul.mubr.msk.bf16.vlgmr.msra.gmra.mxu0 %vm2300_vm7, %v2392_v5  ;;  %v4090_v18 = vld [vmem:[%s4860_s7 + $0x88] sm:$0xff]  }
 0x44f   : > { %3900 = vmatpush3.bf16.msra.mxu0 %v4065_v57 }
 0x450   : > { %v2393_v11 = vpack.c.bf16 %v2389_v7, %v2388_v6  ;;  %3901 = vmatprep.subr.bf16.mxu0 %v4067_v16 }
 0x452   : > { %4010 = vmatmul.mubr.msk.bf16.vlgmr.msra.gmra.mxu1 %vm2300_vm7, %v2393_v11 }
 0x453   : > { %3922 = vmatpush3.bf16.msra.mxu1 %v4066_v15  ;;  %3902 = vmatpush3.bf16.msra.mxu0 %v4069_v20 }
 0x454   : > { %3923 = vmatprep.subr.bf16.mxu1 %v4068_v17  ;;  %3903 = vmatprep.subr.bf16.mxu0 %v4071_v24 }
 0x457   : > { %3924 = vmatpush3.bf16.msra.mxu1 %v4070_v10  ;;  %3904 = vmatpush3.bf16.msra.mxu0 %v4073_v27 }
 0x458   : > { %3925 = vmatprep.subr.bf16.mxu1 %v4072_v25  ;;  %3905 = vmatprep.subr.bf16.mxu0 %v4075_v54 }
 0x45b   : > { %3926 = vmatpush3.bf16.msra.mxu1 %v4074_v28  ;;  %3906 = vmatpush3.bf16.msra.mxu0 %v4077_v32 }
 0x45c   : > { %3927 = vmatprep.subr.bf16.mxu1 %v4076_v30  ;;  %3907 = vmatprep.subr.bf16.mxu0 %v4079_v36 }
 0x45f   : > { %3928 = vmatpush3.bf16.msra.mxu1 %v4078_v34  ;;  %3908 = vmatpush3.bf16.msra.mxu0 %v4081_v38 }
 0x460   : > { %3929 = vmatprep.subr.bf16.mxu1 %v4080_v37  ;;  %3909 = vmatprep.subr.bf16.mxu0 %v4083_v40 }
 0x463   : > { %3930 = vmatpush3.bf16.msra.mxu1 %v4082_v39  ;;  %3910 = vmatpush3.bf16.msra.mxu0 %v4085_v9 }
 0x464   : > { %3931 = vmatprep.subr.bf16.mxu1 %v4084_v41  ;;  %3911 = vmatprep.subr.bf16.mxu0 %v4087_v44 }
 0x467   : > { %3932 = vmatpush3.bf16.msra.mxu1 %v4086_v42  ;;  %3912 = vmatpush3.bf16.msra.mxu0 %v4089_v46 }
 0x468   : > { %3933 = vmatprep.subr.bf16.mxu1 %v4088_v45  ;;  %3913 = vmatprep.subr.bf16.mxu0 %v4091_v47 }
 0x46b   : > { %3934 = vmatpush3.bf16.msra.mxu1 %v4090_v18  ;;  %3914 = vmatpush3.bf16.msra.mxu0 %v4093_v31 }
 0x46c   : > { %3935 = vmatprep.subr.bf16.mxu1 %v4092_v48 }
 0x46f   : > { %3936 = vmatpush3.bf16.msra.mxu1 %v4094_v29 }
 0x506   : > { %v2445_v19 = vpop.f32.mrf.mxu0 }
 0x508   : > { %v3993_v33 = vpop.f32.mrf.mxu0 }
 0x50a   : > { %v2448_v23 = vpop.f32.mrf.mxu0  ;;  %v2495_v49 = vpop.f32.mrf.mxu1 }
 0x50b   : > { %v2602_v53 = vpack.c.bf16 %v2448_v23, %v2445_v19 }
 0x50c   : > { %v3994_v43 = vpop.f32.mrf.mxu0  ;;  %v3999_v50 = vpop.f32.mrf.mxu1 }
 0x50d   : > { %v2612_v63 = vrot.slane %v2602_v53, %v4468_v58 }
 0x50e   : > { %v2498_v51 = vpop.f32.mrf.mxu1  ;;  %v2545_v52 = vpop.f32.mrf.mxu0 }
 0x50f   : > { %v2603_v1 = vpack.c.bf16 %v2498_v51, %v2495_v49 }
 0x510   : > { %v4000_v21 = vpop.f32.mrf.mxu1  ;;  %v4005_v35 = vpop.f32.mrf.mxu0 }
 0x511   : > { %v2655_v57 = vrot.slane %v2603_v1, %v4468_v58 }
 0x512   : > { %v2548_v55 = vpop.f32.mrf.mxu0  ;;  %v2595_v56 = vpop.f32.mrf.mxu1 }
 0x513   : > { %v2604_v59 = vpack.c.bf16 %v2548_v55, %v2545_v52  ;;  %v3813_v60 = vpack.c.bf16 %v2548_v55, %v2448_v23 }
 0x514   : > { %v4006_v61 = vpop.f32.mrf.mxu0  ;;  %v4011_v62 = vpop.f32.mrf.mxu1 }
 0x515   : > { %v2620_v0 = vrot.slane %v2604_v59, %v4468_v58  ;;  %v2645_v2 = vrot.slane %v3813_v60, %v4477_v8 }
 0x516   : > { %v2598_v3 = vpop.f32.mrf.mxu1 }
 0x517   : > { %v2622_v4 = vcombine.low %v2612_v63, %v2620_v0  ;;  %v2623_v5 = vcombine.high %v2612_v63, %v2620_v0  ;;  %v2605_v6 = vpack.c.bf16 %v2598_v3, %v2595_v56  ;;  %v3814_v7 = vpack.c.bf16 %v2598_v3, %v2498_v51 }
 0x518   : > { %v4012_v11 = vpop.f32.mrf.mxu1  ;;  %v2648_v15 = vcombine.high %v2645_v2, %v4200_v26  ;;  %v2727_v23 = vshrl.u32 %v2645_v2, 16 }
 0x519   : > { %v2630_v12 = vrot.slane %v2622_v4, %v4477_v8  ;;  %v2637_v13 = vrot.slane %v2623_v5, %v4477_v8  ;;  %v2663_v16 = vrot.slane %v2605_v6, %v4468_v58  ;;  %v2688_v17 = vrot.slane %v3814_v7, %v4477_v8 }
 0x51a   : > { %v2733_v28 = vshrl.u32 %v2648_v15, 16 }
 0x51b   : > { %v2646_v20 = vcombine.high %v2630_v12, %v4200_v26  ;;  %v2647_v10 = vcombine.high %v2637_v13, %v4200_v26  ;;  %v2665_v24 = vcombine.low %v2655_v57, %v2663_v16  ;;  %v2666_v25 = vcombine.high %v2655_v57, %v2663_v16 }
 0x51c   : > { %v2691_v27 = vcombine.high %v2688_v17, %v4200_v26  ;;  %v2696_v32 = vshrl.u32 %v2630_v12, 16  ;;  %v2712_v36 = vshrl.u32 %v2637_v13, 16  ;;  %v2728_v44 = vshrl.u32 %v2688_v17, 16 }
 0x51d   : > { %v2673_v54 = vrot.slane %v2665_v24, %v4477_v8  ;;  %v2680_v30 = vrot.slane %v2666_v25, %v4477_v8  ;;  %v2704_v34 = vshrl.u32 %v2646_v20, 16  ;;  %v2720_v37 = vshrl.u32 %v2647_v10, 16  ;;  %v3815_v24 = vld [vmem:[%s4861_s8] ss:$0 sm:$0xff] }
 0x51e   : > { %v2734_v45 = vshrl.u32 %v2691_v27, 16  ;;  %v2732_v19 = vpack.i.b16 %v2691_v27, %v2648_v15  ;;  %v2726_v51 = vpack.i.b16 %v2688_v17, %v2645_v2  ;;  %v2729_v55 = vpack.i.b16 %v2728_v44, %v2727_v23 }
 0x51f   : > { %v2689_v38 = vcombine.high %v2673_v54, %v4200_v26  ;;  %v2690_v39 = vcombine.high %v2680_v30, %v4200_v26  ;;  %v2694_v40 = vpack.i.b16 %v2673_v54, %v2630_v12  ;;  %v2697_v41 = vshrl.u32 %v2673_v54, 16 }
 0x520   : > { %v2710_v9 = vpack.i.b16 %v2680_v30, %v2637_v13  ;;  %v2713_v42 = vshrl.u32 %v2680_v30, 16  ;;  %v2735_v52 = vpack.i.b16 %v2734_v45, %v2733_v28  ;;  %v2762_v56 = vcombine.low %v2726_v51, %v2732_v19  ;;  %v4175_v45 = vld [vmem:[%s4322_s19 + $0x8] sm:$0xf]  ;;  %v4095_v51 = vld [vmem:[%s4864_s11 + $0x10] ss:$8 sps:$4 sm:$0xff]  }
 0x521   : > { %v2698_v46 = vpack.i.b16 %v2697_v41, %v2696_v32  ;;  %v2702_v18 = vpack.i.b16 %v2689_v38, %v2646_v20  ;;  %v2705_v47 = vshrl.u32 %v2689_v38, 16  ;;  %v2718_v48 = vpack.i.b16 %v2690_v39, %v2647_v10 }
 0x522   : > { %v2714_v31 = vpack.i.b16 %v2713_v42, %v2712_v36  ;;  %v2721_v29 = vshrl.u32 %v2690_v39, 16  ;;  %v2736_v33 = vcombine.low %v2694_v40, %v2710_v9  ;;  %v2798_v63 = vcombine.low %v2729_v55, %v2735_v52  ;;  %v4174_v40 = vld [vmem:[%s4322_s19] sm:$0xff]  ;;  %v4097_v52 = vld [vmem:[%s4864_s11 + $0x14] ss:$8 sps:$4 sm:$0xff]  }
 0x523   : > { %v2706_v49 = vpack.i.b16 %v2705_v47, %v2704_v34  ;;  %v2744_v43 = vcombine.low %v2702_v18, %v2718_v48  ;;  %v2769_v1 = vrot.slane %v2762_v56, %v4477_v8  ;;  %3301 = vmatprep.subr.bf16.mxu0 %v4097_v52 }
 0x524   : > { %v2722_v50 = vpack.i.b16 %v2721_v29, %v2720_v37  ;;  %v2772_v21 = vcombine.low %v2698_v46, %v2714_v31  ;;  %v2743_v35 = vrot.slane %v2736_v33, %v4468_v58  ;;  %v2805_v5 = vrot.slane %v2798_v63, %v4477_v8 }
 0x525   : > { %v2751_v53 = vrot.slane %v2744_v43, %v4468_v58 }
 0x526   : > { %v2780_v59 = vcombine.low %v2706_v49, %v2722_v50  ;;  %v2779_v61 = vrot.slane %v2772_v21, %v4468_v58  ;;  %v4100_v21 = vld [vmem:[%s4864_s11 + $0x4] ss:$8 sps:$4 sm:$0xff]  }
 0x527   : > { %v2754_v60 = vcombine.low %v2743_v35, %v2751_v53  ;;  %v4098_v35 = vld [vmem:[%s4864_s11] ss:$8 sps:$4 sm:$0xff]  }
 0x528   : > { %v2787_v62 = vrot.slane %v2780_v59, %v4468_v58 }
 0x529   : > { %v2761_v0 = vrot.slane %v2754_v60, %v4477_v8 }
 0x52a   : > { %v2790_v2 = vcombine.low %v2779_v61, %v2787_v62 }
 0x52b   : > { %v2770_v3 = vcombine.low %v2761_v0, %v2769_v1  ;;  %v2771_v6 = vcombine.high %v2761_v0, %v2769_v1 }
 0x52c   : > { %v2797_v4 = vrot.slane %v2790_v2, %v4477_v8 }
 0x52d   : > { %v2812_v12 = vshrl.u32 %v2770_v3, 16  ;;  %v2820_v57 = vshrl.u32 %v2771_v6, 16 }
 0x52e   : > { %v2806_v7 = vcombine.low %v2797_v4, %v2805_v5  ;;  %v2807_v11 = vcombine.high %v2797_v4, %v2805_v5 }
 0x530   : > { %v2813_v13 = vshrl.u32 %v2806_v7, 16  ;;  %v2821_v15 = vshrl.u32 %v2807_v11, 16  ;;  %v2810_v17 = vpack.i.b16 %v2806_v7, %v2770_v3  ;;  %v2818_v20 = vpack.i.b16 %v2807_v11, %v2771_v6 }
 0x532   : > { %v2814_v16 = vpack.i.b16 %v2813_v13, %v2812_v12  ;;  %v2822_v58 = vpack.i.b16 %v2821_v15, %v2820_v57  ;;  %v3848_v12 = vld [vmem:[%s4868_s15] ss:$0 sm:$0xff] }
 0x533   : > { %v3849_v57 = vld [vmem:[%s4869_s16] ss:$0 sm:$0xff] }
 0x534   : > { %3119 = vmatprep.mubr.bf16.mxu0 %v2814_v16  ;;  %3160 = vmatprep.mubr.bf16.mxu1 %v2822_v58 }
 0x535   : > { %3120 = vmatmul.mubr.bf16.vlgmr.msra.gmra.mxu0 %v2810_v17  ;;  %3161 = vmatmul.mubr.bf16.vlgmr.msra.gmra.mxu1 %v2818_v20 }
 0x536   : > { %3321 = vmatprep.mubr.bf16.mxu0 %v4200_v26  ;;  %3302 = vmatpush1.bf16.msra.mxu0 %v4095_v51 }
 0x537   : > { %3303 = vmatprep.subr.bf16.mxu0 %v4100_v21 }
 0x53a   : > { %3304 = vmatpush1.bf16.msra.mxu0 %v4098_v35 }
 0x5f5   : > { %v3915_v10 = vpop.f32.mrf.mxu0  ;;  %v3937_v8 = vpop.f32.mrf.mxu1 }
 0x5f7   : > { %v3916_v25 = vpop.f32.mrf.mxu0  ;;  %v3938_v27 = vpop.f32.mrf.mxu1 }
 0x5f8   : > { %v3917_v28 = vadd.f32 %v3916_v25, %v3915_v10  ;;  %v3939_v34 = vadd.f32 %v3938_v27, %v3937_v8  ;;  %v4102_v27 = vld [vmem:[%s4866_s13 + $0x78] sm:$0xff]  }
 0x5f9   : > { %v3918_v54 = vpop.f32.mrf.mxu0  ;;  %v3940_v30 = vpop.f32.mrf.mxu1  ;;  %3943 = vmatprep.subr.bf16.mxu1 %v4102_v27 }
 0x5fa   : > { %v3122_v32 = vadd.f32 %v3917_v28, %v3815_v24  ;;  %v4103_v28 = vld [vmem:[%s4866_s13 + $0x38] sm:$0xff]  }
 0x5fb   : > { %v3919_v36 = vpop.f32.mrf.mxu0  ;;  %v3941_v37 = vpop.f32.mrf.mxu1  ;;  %3944 = vmatpush3.bf16.msra.mxu1 %v4103_v28 }
 0x5fc   : > { %v3163_v38 = vadd.f32 %v3939_v34, %v3122_v32  ;;  %v3920_v39 = vadd.f32 %v3919_v36, %v3918_v54  ;;  %v3942_v9 = vadd.f32 %v3941_v37, %v3940_v30  ;;  %v4104_v54 = vld [vmem:[%s4866_s13 + $0x70] sm:$0xff]   ;;  %v4106_v32 = vld [vmem:[%s4866_s13 + $0x68] sm:$0xff]   ;;  %v4108_v36 = vld [vmem:[%s4866_s13 + $0x60] sm:$0xff]  }
 0x5fd   : > { %v4105_v30 = vld [vmem:[%s4866_s13 + $0x30] sm:$0xff]   ;;  %3945 = vmatprep.subr.bf16.mxu1 %v4104_v54  ;;  %v4107_v34 = vld [vmem:[%s4866_s13 + $0x28] sm:$0xff]   ;;  %v4109_v37 = vld [vmem:[%s4866_s13 + $0x20] sm:$0xff]  }
 0x5fe   : > { %v3169_v26 = vadd.f32 %v4174_v40, %v3163_v38  ;;  %v3125_v41 = vadd.f32 %v3920_v39, %v3815_v24  ;;  %v4110_v38 = vld [vmem:[%s4866_s13 + $0x58] sm:$0xff]   ;;  %v4112_v40 = vld [vmem:[%s4866_s13 + $0x50] sm:$0xff]  }
 0x5ff   : > { %3946 = vmatpush3.bf16.msra.mxu1 %v4105_v30  ;;  %v4111_v39 = vld [vmem:[%s4866_s13 + $0x18] sm:$0xff]  }
 0x600   : > { %3171 = vst.msk [vmem:[#allocation5] sm:$0xff] %vm866_vm0, %v3169_v26  ;;  %v3166_v42 = vadd.f32 %v3942_v9, %v3125_v41  ;;  %v3175_v44 = vsel %vm866_vm0, %v3169_v26, 0.0  ;;  %3947 = vmatprep.subr.bf16.mxu1 %v4106_v32  ;;  %v4114_v41 = vld [vmem:[%s4866_s13 + $0x48] sm:$0xff]  }
 0x601   : > { %3176 = vadd.xlane.f32.xlu0 %v3175_v44  ;;  %v4115_v9 = vld [vmem:[%s4866_s13 + $0x8] sm:$0xff]   ;;  %v4117_v44 = vld [vmem:[%s4866_s13] sm:$0xff]  }
 0x602   : > { %v3170_v46 = vadd.f32 %v4175_v45, %v3166_v42  ;;  %v4116_v42 = vld [vmem:[%s4866_s13 + $0x40] sm:$0xff]  }
 0x603   : > { %3948 = vmatpush3.bf16.msra.mxu1 %v4107_v34  ;;  %v3248_v45 = vld [vmem:[%s4865_s12] sm:$0x3] }
 0x604   : > { %3172 = vst.msk [vmem:[#allocation5 + $0x8] sm:$0xf] %vm1659_vm1, %v3170_v46  ;;  %v3178_v18 = vsel %vm1659_vm1, %v3170_v46, 0.0  ;;  %3949 = vmatprep.subr.bf16.mxu1 %v4108_v36 }
 0x605   : > { %3179 = vadd.xlane.f32.xlu1 %v3178_v18  ;;  %v3257_v18 = vrot.slane %v3248_v45, %v4444_v14 }
 0x607   : > { %3950 = vmatpush3.bf16.msra.mxu1 %v4109_v37  ;;  %v3368_v32 = vld [vmem:[#allocation5] sm:$0xff] }
 0x608   : > { %3951 = vmatprep.subr.bf16.mxu1 %v4110_v38 }
 0x60b   : > { %3952 = vmatpush3.bf16.msra.mxu1 %v4111_v39  ;;  %v3369_v39 = vld [vmem:[#allocation5 + $0x8] sm:$0xf] }
 0x60c   : > { %3953 = vmatprep.subr.bf16.mxu1 %v4112_v40 }
 0x68a   : > { %v3177_v47 = vpop.xlane.xlu0 %3176 }
 0x68b   : > { %v3181_v48 = vmul.f32 0.03125, %v3177_v47 }
 0x68d   : > { %v3183_v31 = vsub.f32 %v3169_v26, %v3181_v48  ;;  %v4113_v26 = vld [vmem:[%s4866_s13 + $0x10] sm:$0xff]  }
 0x68e   : > { %v3180_v29 = vpop.xlane.xlu1 %3179  ;;  %3954 = vmatpush3.bf16.msra.mxu1 %v4113_v26  ;;  %v3874_v26 = vld [vmem:[%s4867_s14] ss:$0 sm:$0xff] }
 0x68f   : > { %v3182_v19 = vmul.f32 0.03125, %v3180_v29  ;;  %v3185_v33 = vmul.f32 %v3183_v31, %v3183_v31  ;;  %3955 = vmatprep.subr.bf16.mxu1 %v4114_v41 }
 0x691   : > { %v3184_v23 = vsub.f32 %v3170_v46, %v3182_v19  ;;  %v3187_v49 = vsel %vm866_vm0, %v3185_v33, 0.0  ;;  %v3253_v46 = vrot.slane %v3248_v45, %v4441_v22 }
 0x692   : > { %3188 = vadd.xlane.f32.xlu0 %v3187_v49  ;;  %3956 = vmatpush3.bf16.msra.mxu1 %v4115_v9 }
 0x693   : > { %v3186_v43 = vmul.f32 %v3184_v23, %v3184_v23  ;;  %3957 = vmatprep.subr.bf16.mxu1 %v4116_v42 }
 0x695   : > { %v3190_v50 = vsel %vm1659_vm1, %v3186_v43, 0.0 }
 0x696   : > { %3191 = vadd.xlane.f32.xlu1 %v3190_v50  ;;  %3958 = vmatpush3.bf16.msra.mxu1 %v4117_v44 }
 0x71b   : > { %v3189_v53 = vpop.xlane.xlu0 %3188 }
 0x71c   : > { %v3193_v55 = vmul.f32 0.032258064, %v3189_v53 }
 0x71e   : > { %4158 = vrsqrt.f32 %v3193_v55  ;;  %vm3197_vm9 = vcmp.eq.f32.partialorder %v3193_v55, inf  ;;  %v3200_v62 = vand.u32 2147483648, %v3193_v55  ;;  %vm3199_vm10 = vcmp.eq.f32.partialorder %v3193_v55, 0.0 }
 0x71f   : > { %v3192_v56 = vpop.xlane.xlu1 %3191 }
 0x720   : > { %v3194_v59 = vmul.f32 0.032258064, %v3192_v56 }
 0x722   : > { %4160 = vrsqrt.f32 %v3194_v59  ;;  %vm3204_vm11 = vcmp.eq.f32.partialorder %v3194_v59, inf  ;;  %v3207_v4 = vand.u32 2147483648, %v3194_v59  ;;  %vm3206_vm12 = vcmp.eq.f32.partialorder %v3194_v59, 0.0 }
 0x72b   : > { %v4159_v60 = vpop.eup %4158 }
 0x72c   : > { %v3196_v61 = vmul.f32 %v4159_v60, %v3193_v55 }
 0x72e   : > { %v3198_v63 = vsel %vm3197_vm9, %v3193_v55, %v3196_v61 }
 0x72f   : > { %v4161_v0 = vpop.eup %4160  ;;  %v3201_v1 = vsel %vm3199_vm10, %v3200_v62, %v3198_v63 }
 0x730   : > { %v3209_v2 = vadd.f32 1e-06, %v3201_v1  ;;  %v3203_v3 = vmul.f32 %v4161_v0, %v3194_v59 }
 0x732   : > { %4162 = vrcp.f32 %v3209_v2  ;;  %v3205_v5 = vsel %vm3204_vm11, %v3194_v59, %v3203_v3 }
 0x733   : > { %v3208_v6 = vsel %vm3206_vm12, %v3207_v4, %v3205_v5 }
 0x734   : > { %v3210_v7 = vadd.f32 1e-06, %v3208_v6 }
 0x736   : > { %4164 = vrcp.f32 %v3210_v7 }
 0x73f   : > { %v4163_v11 = vpop.eup %4162 }
 0x740   : > { %v3213_v13 = vmul.f32 %v4163_v11, %v3183_v31 }
 0x742   : > { %v3221_v15 = vmul.f32 %v3848_v12, %v3213_v13 }
 0x743   : > { %v4165_v16 = vpop.eup %4164 }
 0x744   : > { %v3229_v58 = vadd.f32 %v3849_v57, %v3221_v15  ;;  %v3214_v17 = vmul.f32 %v4165_v16, %v3184_v23 }
 0x746   : > { %v3881_v20 = vpack.c.bf16 %v3229_v58, %v3229_v58  ;;  %v3222_v10 = vmul.f32 %v3848_v12, %v3214_v17 }
 0x748   : > { %3239 = vst.msk [vmem:[#allocation4] sm:$0xf] %vm1659_vm1, %v3881_v20  ;;  %v3230_v8 = vadd.f32 %v3849_v57, %v3222_v10 }
 0x74a   : > { %v3882_v24 = vpack.c.bf16 %v3230_v8, %v3230_v8 }
 0x74c   : > { %3241 = vst.msk [vmem:[#allocation4 + $0x4] sm:$0x3] %vm3240_vm13, %v3882_v24 }
 0x753   : > { %v4101_v25 = vld [vmem:[#allocation4] sm:$0x3f]  }
 0x754   : > { %3857 = vmatmul.mubr.msk.bf16.vlgmr.msra.gmra.mxu0 %vm866_vm0, %v4101_v25 }
 0x814   : > { %v3323_v47 = vpop.f32.mrf.mxu0 }
 0x815   : > { %v3324_v48 = vadd.f32 %v3323_v47, %v3253_v46 }
 0x816   : > { %v3325_v31 = vpop.f32.mrf.mxu0 }
 0x817   : > { %v3336_v29 = vmul.f32 0.044715, %v3324_v48  ;;  %v3326_v19 = vadd.f32 %v3325_v31, %v3257_v18  ;;  %v3332_v17 = vmul.f32 0.5, %v3324_v48 }
 0x818   : > { %v3327_v33 = vpop.f32.mrf.mxu0 }
 0x819   : > { %v3340_v23 = vmul.f32 %v3336_v29, %v3324_v48  ;;  %v3337_v49 = vmul.f32 0.044715, %v3326_v19  ;;  %v3328_v43 = vadd.f32 %v3327_v33, %v3253_v46  ;;  %v3333_v15 = vmul.f32 0.5, %v3326_v19 }
 0x81a   : > { %v3329_v50 = vpop.f32.mrf.mxu0 }
 0x81b   : > { %v3344_v51 = vmul.f32 %v3340_v23, %v3324_v48  ;;  %v3341_v52 = vmul.f32 %v3337_v49, %v3326_v19  ;;  %v3338_v21 = vmul.f32 0.044715, %v3328_v43  ;;  %v3330_v35 = vadd.f32 %v3329_v50, %v3257_v18 }
 0x81c   : > { %v3334_v13 = vmul.f32 0.5, %v3328_v43 }
 0x81d   : > { %v3348_v53 = vadd.f32 %v3344_v51, %v3324_v48  ;;  %v3345_v55 = vmul.f32 %v3341_v52, %v3326_v19  ;;  %v3342_v56 = vmul.f32 %v3338_v21, %v3328_v43  ;;  %v3339_v22 = vmul.f32 0.044715, %v3330_v35 }
 0x81e   : > { %v3335_v16 = vmul.f32 0.5, %v3330_v35 }
 0x81f   : > { %v3346_v59 = vmul.f32 %v3342_v56, %v3328_v43  ;;  %v3343_v14 = vmul.f32 %v3339_v22, %v3330_v35  ;;  %v3349_v60 = vadd.f32 %v3345_v55, %v3326_v19  ;;  %v3352_v61 = vmul.f32 0.7978846, %v3348_v53 }
 0x821   : > { %v3350_v62 = vadd.f32 %v3346_v59, %v3328_v43  ;;  %v3347_v63 = vmul.f32 %v3343_v14, %v3330_v35  ;;  %v3353_v0 = vmul.f32 0.7978846, %v3349_v60 }
 0x823   : > { %v3354_v1 = vmul.f32 0.7978846, %v3350_v62  ;;  %v3351_v2 = vadd.f32 %v3347_v63, %v3330_v35  ;;  %4166 = vtanh.f32 %v3353_v0 }
 0x824   : > { %4168 = vtanh.f32 %v3352_v61 }
 0x825   : > { %4170 = vtanh.f32 %v3354_v1  ;;  %v3355_v3 = vmul.f32 0.7978846, %v3351_v2 }
 0x827   : > { %4172 = vtanh.f32 %v3355_v3 }
 0x830   : > { %v4167_v4 = vpop.eup %4166 }
 0x831   : > { %v4169_v5 = vpop.eup %4168  ;;  %v3361_v7 = vadd.f32 1.0, %v4167_v4 }
 0x832   : > { %v4171_v6 = vpop.eup %4170  ;;  %v3360_v57 = vadd.f32 1.0, %v4169_v5 }
 0x833   : > { %v3362_v11 = vadd.f32 1.0, %v4171_v6  ;;  %v3365_v10 = vmul.f32 %v3361_v7, %v3333_v15 }
 0x834   : > { %v4173_v12 = vpop.eup %4172  ;;  %v3364_v24 = vmul.f32 %v3360_v57, %v3332_v17 }
 0x835   : > { %v3363_v58 = vadd.f32 1.0, %v4173_v12  ;;  %v3366_v20 = vmul.f32 %v3362_v11, %v3334_v13 }
 0x837   : > { %v3367_v8 = vmul.f32 %v3363_v58, %v3335_v16  ;;  %v3370_v27 = vpack.c.bf16 %v3366_v20, %v3364_v24 }
 0x839   : > { %v3371_v25 = vpack.c.bf16 %v3367_v8, %v3365_v10 }
 0x83b   : > { %3532 = vmatprep.mubr.bf16.mxu1 %v3371_v25 }
 0x83c   : > { %3533 = vmatmul.mubr.bf16.vlgmr.msra.gmra.mxu1 %v3370_v27 }
 0x8fc   : > { %v3959_v28 = vpop.f32.mrf.mxu1 }
 0x8fe   : > { %v3960_v54 = vpop.f32.mrf.mxu1 }
 0x8ff   : > { %v3961_v30 = vadd.f32 %v3960_v54, %v3959_v28 }
 0x900   : > { %v3962_v34 = vpop.f32.mrf.mxu1 }
 0x901   : > { %v3541_v36 = vadd.f32 %v3961_v30, %v3368_v32 }
 0x902   : > { %v3963_v37 = vpop.f32.mrf.mxu1 }
 0x903   : > { %3543 = vst.msk [vmem:[#allocation5] sm:$0xff] %vm866_vm0, %v3541_v36  ;;  %v3964_v38 = vadd.f32 %v3963_v37, %v3962_v34 }
 0x905   : > { %v3542_v40 = vadd.f32 %v3964_v38, %v3369_v39 }
 0x907   : > { %3545 = vst.msk [vmem:[#allocation5 + $0x8] sm:$0xf] %vm1659_vm1, %v3542_v40 }
 0x90a   : > { %v3549_v41 = vld [vmem:[#allocation5] sm:$0xff] }
 0x90b   : > { %v3558_v9 = vadd.f32 %v3874_v26, %v3549_v41 }
 0x90d   : > { %3560 = vst.msk [vmem:[%s712_s21] sm:$0xff] %vm866_vm0, %v3558_v9 }
 0x90e   : > { %v3550_v42 = vld [vmem:[#allocation5 + $0x8] sm:$0xf] }
 0x90f   : > { %v3559_v44 = vadd.f32 %v3874_v26, %v3550_v42 }
 0x911   : > { %3561 = vst.msk [vmem:[%s712_s21 + $0x8] sm:$0xf] %vm1659_vm1, %v3559_v44 }
 0x912 PF: > { %s27_s26 = sadd.s32 1, %s4198_s26   ;;  %s4879_s24 = smov %s4194_s25 }
 0x913   : > { %p24_p5 = scmp.ge.s32.totalorder %s27_s26, 4   ;;  %s4880_s25 = smov %s4882_s27 }
 0x915   :  { %26 = sbr.rel (!%p24_p5) target bundleno = 3 (0x3), region = 145 }

// kernel: tpu_custom_call.1
= control target key start
LH: loop header
LB: loop body
LE: loop exit
PB: predicated region body
PF: predicated region fallthrough
CT: control target
= control target key end

     0   :  { %s4295_s24 = smov 0   ;;  %s4297_s25 = smov 0   ;;  %s4853_s0 = inlined_call_operand.vmem [shape: f32[2,12,32], index: 0, kind: input, shape index: {}]   ;;  %s4854_s1 = inlined_call_operand.vmem [shape: bf16[2,16,32], index: 1, kind: input, shape index: {}]   ;;  %s4855_s2 = inlined_call_operand.vmem [shape: bf16[2,12,16], index: 2, kind: input, shape index: {}]   ;;  %s4856_s3 = inlined_call_operand.vmem [shape: bf16[32,512], index: 3, kind: input, shape index: {}]   ;;  %s4857_s4 = inlined_call_operand.vmem [shape: f32[1,512], index: 4, kind: input, shape index: {}]   ;;  %s4858_s5 = inlined_call_operand.vmem [shape: bf16[32,1024], index: 5, kind: input, shape index: {}]   ;;  %s4859_s6 = inlined_call_operand.vmem [shape: f32[1,1024], index: 6, kind: input, shape index: {}]   ;;  %s4860_s7 = inlined_call_operand.vmem [shape: bf16[512,32], index: 7, kind: input, shape index: {}]   ;;  %s4861_s8 = inlined_call_operand.vmem [shape: f32[1,32], index: 8, kind: input, shape index: {}]   ;;  %s4862_s9 = inlined_call_operand.vmem [shape: f32[1,32], index: 9, kind: input, shape index: {}]   ;;  %s4863_s10 = inlined_call_operand.vmem [shape: f32[1,32], index: 10, kind: input, shape index: {}]   ;;  %s4864_s11 = inlined_call_operand.vmem [shape: bf16[32,256], index: 11, kind: input, shape index: {}]   ;;  %s4865_s12 = inlined_call_operand.vmem [shape: f32[1,256], index: 12, kind: input, shape index: {}]   ;;  %s4866_s13 = inlined_call_operand.vmem [shape: bf16[256,32], index: 13, kind: input, shape index: {}]   ;;  %s4867_s14 = inlined_call_operand.vmem [shape: f32[1,32], index: 14, kind: input, shape index: {}]   ;;  %s4868_s15 = inlined_call_operand.vmem [shape: f32[1,32], index: 15, kind: input, shape index: {}]   ;;  %s4869_s16 = inlined_call_operand.vmem [shape: f32[1,32], index: 16, kind: input, shape index: {}]   ;;  %s4870_s17 = inlined_call_operand.vmem [shape: f32[2,12,32], index: 17, kind: output, shape index: {}]  }
   0x1   :  { %4873 = sst [smem:[#allocation6_spill]] %s4853_s0  ;;  %s4299_s26 = smov 0  }
   0x2   :  { %4874 = sst [smem:[#allocation7_spill]] %s4854_s1 }
   0x3 LB: > { %s46_s27 = sadd.s32 1, %s4194_s25  ;;  %p3731_p0 = scmp.ge.s32.totalorder %s4198_s26, 1  ;;  %s4198_s26 = sphi %s4299_s26, %s27_s26   ;;  %s4194_s25 = sphi %s4297_s25, %s4880_s25   ;;  %s4190_s24 = sphi %s4295_s24, %s4879_s24  }
   0x4   : > { %p48_p1 = scmp.ge.s32.totalorder %s46_s27, 2  ;;  %p574_p2 = scmp.lt.s32.totalorder %s4198_s26, 3 }
   0x6   : > { %s4882_s27 = smov (%p48_p1, %s46_s27), 0  ;;  %p575_p3 = pnand %p3731_p0, %p574_p2 }
   0x7   : > { %p663_p4 = scmp.lt.s32.totalorder (!%p575_p3), %s4190_s24, 1  ;;  %s4875_s18 = sld [smem:[#allocation6_spill]] (!%p575_p3) }
   0x8   : > { %578 = sbr.rel (%p575_p3) target bundleno = 2322 (0x912), region = 88  ;;  %s4876_s21 = sld [smem:[#allocation7_spill]] (!%p575_p3) }
   0xd   : > { %vm866_vm0 = vcmask 261120   ;;  %s4884_s24 = smov (!%p663_p4, %s4190_s24), 1  ;;  %vm1659_vm1 = vcmask 257024   ;;  %v731_v4 = vld [vmem:[%s4858_s5 + $0x40] sm:$0xff]  ;;  %v732_v22 = vld [vmem:[%s4858_s5 + $0x48] sm:$0xff]  ;;  %v4200_v26 = vmov 0  }
   0xe   : > { %s4871_s28 = sshll.u32 %s4884_s24, 4  ;;  %s4872_s29 = sshll.u32 %s4884_s24, 3  ;;  %v735_v5 = vld [vmem:[%s4858_s5 + $0x60] sm:$0xff]  ;;  %v736_v23 = vld [vmem:[%s4858_s5 + $0x68] sm:$0xff]  ;;  %902 = vmatprep.mubr.bf16.mxu0 %v4200_v26  ;;  %1031 = vmatprep.mubr.bf16.mxu1 %v4200_v26  ;;  %v733_v32 = vld [vmem:[%s4858_s5 + $0x50] sm:$0xff]  ;;  %vm4204_vm6 = vmmov 0  }
   0xf   : > { %s4322_s19 = scalar_lea.vmem %s4875_s18, %s4871_s28  ;;  %s4329_s22 = scalar_lea.vmem %s4876_s21, %s4872_s29  ;;  %v3750_v6 = vcombine.high %v731_v4, %v735_v5  ;;  %v3749_v7 = vcombine.low %v731_v4, %v735_v5  ;;  %v723_v18 = vld [vmem:[%s4858_s5] sm:$0xff]  ;;  %v3752_v25 = vcombine.high %v732_v22, %v736_v23  ;;  %v3751_v27 = vcombine.low %v732_v22, %v736_v23  ;;  %v724_v28 = vld [vmem:[%s4858_s5 + $0x8] sm:$0xff]  ;;  %v737_v33 = vld [vmem:[%s4858_s5 + $0x70] sm:$0xff] }
  0x10   : > { %v1643_v0 = vld [vmem:[%s4322_s19] sm:$0xff]  ;;  %v1644_v1 = vld [vmem:[%s4322_s19 + $0x8] sm:$0xf]  ;;  %v734_v34 = vld [vmem:[%s4858_s5 + $0x58] sm:$0xff]  ;;  %v3754_v35 = vcombine.high %v733_v32, %v737_v33  ;;  %v3753_v37 = vcombine.low %v733_v32, %v737_v33  ;;  %s4877_s0 = sshll.u32 %s4884_s24, 3  ;;  %vm2300_vm7 = vcmask 130048  }
  0x11   : > { %v1656_v2 = vsel %vm866_vm0, %v1643_v0, 0.0  ;;  %v1660_v3 = vsel %vm1659_vm1, %v1644_v1, 0.0  ;;  %882 = vmatprep.subr.bf16.mxu0 %v3750_v6  ;;  %v727_v19 = vld [vmem:[%s4858_s5 + $0x20] sm:$0xff]  ;;  %v728_v29 = vld [vmem:[%s4858_s5 + $0x28] sm:$0xff]  ;;  %v738_v36 = vld [vmem:[%s4858_s5 + $0x78] sm:$0xff]  ;;  %s685_s18 = scalar_lea.vmem %s4855_s2, %s4877_s0  ;;  %vm2304_vm8 = vcmask 125952  }
  0x12   : > { %1657 = vadd.xlane.f32.xlu0 %v1656_v2  ;;  %883 = vmatpush1.bf16.msra.mxu0 %v3749_v7  ;;  %v3742_v20 = vcombine.high %v723_v18, %v727_v19  ;;  %v3741_v21 = vcombine.low %v723_v18, %v727_v19  ;;  %v4042_v24 = vld [vmem:[%s4329_s22] sm:$0xff]   ;;  %v3744_v30 = vcombine.high %v724_v28, %v728_v29  ;;  %v725_v40 = vld [vmem:[%s4858_s5 + $0x10] sm:$0xff]  ;;  %v726_v42 = vld [vmem:[%s4858_s5 + $0x18] sm:$0xff]  ;;  %vm3240_vm13 = vcmask 254976  }
  0x13   : > { %v3743_v31 = vcombine.low %v724_v28, %v728_v29  ;;  %v3756_v38 = vcombine.high %v734_v34, %v738_v36  ;;  %v3755_v39 = vcombine.low %v734_v34, %v738_v36  ;;  %v729_v41 = vld [vmem:[%s4858_s5 + $0x30] sm:$0xff]  ;;  %v730_v44 = vld [vmem:[%s4858_s5 + $0x38] sm:$0xff]  ;;  %v4449_v23 = vld [vmem:[%s4859_s6] sm:$0xff] }
  0x14   : > { %884 = vmatprep.subr.bf16.mxu0 %v3742_v20  ;;  %v3746_v43 = vcombine.high %v725_v40, %v729_v41  ;;  %v3745_v45 = vcombine.low %v725_v40, %v729_v41  ;;  %v3748_v46 = vcombine.high %v726_v42, %v730_v44  ;;  %v3747_v47 = vcombine.low %v726_v42, %v730_v44  ;;  %v4045_v48 = vld [vmem:[%s4856_s3 + $0x24] ss:$16 sps:$4 sm:$0xff]   ;;  %v4043_v49 = vld [vmem:[%s4856_s3 + $0x20] ss:$16 sps:$4 sm:$0xff]   ;;  %v4048_v50 = vld [vmem:[%s4856_s3 + $0x2c] ss:$16 sps:$4 sm:$0xff]  }
  0x15   : > { %1011 = vmatprep.subr.bf16.mxu1 %v3756_v38  ;;  %v4046_v51 = vld [vmem:[%s4856_s3 + $0x28] ss:$16 sps:$4 sm:$0xff]   ;;  %v4051_v52 = vld [vmem:[%s4856_s3 + $0x4] ss:$16 sps:$4 sm:$0xff]   ;;  %v4054_v53 = vld [vmem:[%s4856_s3 + $0xc] ss:$16 sps:$4 sm:$0xff]  }
  0x16   : > { %1661 = vadd.xlane.f32.xlu0 %v1660_v3  ;;  %885 = vmatpush1.bf16.msra.mxu0 %v3741_v21  ;;  %v4049_v54 = vld [vmem:[%s4856_s3] ss:$16 sps:$4 sm:$0xff]   ;;  %v4052_v55 = vld [vmem:[%s4856_s3 + $0x8] ss:$16 sps:$4 sm:$0xff]   ;;  %v4201_v38 = vmov 1983009808  }
  0x17   : > { %925 = vmatprep.subr.bf16.mxu0 %v3752_v25  ;;  %1012 = vmatpush1.bf16.msra.mxu1 %v3755_v39  ;;  %v1070_v39 = vunpack.c.l.s4 %v4201_v38 }
  0x18   : > { %1013 = vmatprep.subr.bf16.mxu1 %v3748_v46 }
  0x19   : > { %3757 = vmatmul.mubr.msk.bf16.vlgmr.msra.gmra.mxu0 %vm866_vm0, %v4042_v24  ;;  %v1071_v46 = vunpack.c.0.s8 %v1070_v39 }
  0x1a   : > { %926 = vmatpush1.bf16.msra.mxu0 %v3751_v27  ;;  %945 = vmatprep.mubr.bf16.mxu0 %v4200_v26 }
  0x1b   : > { %927 = vmatprep.subr.bf16.mxu0 %v3744_v30  ;;  %1014 = vmatpush1.bf16.msra.mxu1 %v3747_v47 }
  0x1c   : > { %1843 = vmatprep.subr.bf16.mxu1 %v4048_v50 }
  0x1e   : > { %928 = vmatpush1.bf16.msra.mxu0 %v3743_v31  ;;  %3760 = vmatmul.mubr.msk.bf16.vlgmr.msra.gmra.mxu1 %vm866_vm0, %v4042_v24 }
  0x1f   : > { %968 = vmatprep.subr.bf16.mxu0 %v3754_v35  ;;  %1844 = vmatpush1.bf16.msra.mxu1 %v4046_v51  ;;  %v4202_v51 = vmov 1934713408  }
  0x20   : > { %1845 = vmatprep.subr.bf16.mxu1 %v4054_v53  ;;  %1863 = vmatprep.mubr.bf16.mxu1 %v4200_v26 }
  0x21   : > { %3758 = vmatmul.mubr.msk.bf16.vlgmr.msra.gmra.mxu0 %vm866_vm0, %v4042_v24 }
  0x22   : > { %988 = vmatprep.mubr.bf16.mxu0 %v4200_v26  ;;  %969 = vmatpush1.bf16.msra.mxu0 %v3753_v37 }
  0x23   : > { %970 = vmatprep.subr.bf16.mxu0 %v3746_v43  ;;  %1846 = vmatpush1.bf16.msra.mxu1 %v4052_v55 }
  0x26   : > { %971 = vmatpush1.bf16.msra.mxu0 %v3745_v45 }
  0x27   : > { %1800 = vmatprep.subr.bf16.mxu0 %v4045_v48 }
  0x29   : > { %3759 = vmatmul.mubr.msk.bf16.vlgmr.msra.gmra.mxu0 %vm866_vm0, %v4042_v24 }
  0x2a   : > { %1801 = vmatpush1.bf16.msra.mxu0 %v4043_v49  ;;  %1820 = vmatprep.mubr.bf16.mxu0 %v4200_v26 }
  0x2b   : > { %1802 = vmatprep.subr.bf16.mxu0 %v4051_v52  ;;  %v1101_v52 = vunpack.c.l.s4 %v4202_v51 }
  0x2e   : > { %1803 = vmatpush1.bf16.msra.mxu0 %v4049_v54  ;;  %v4465_v54 = vpack.i.b16 %v4200_v26, %v4200_v26 }
  0x9b   : > { %v1658_v8 = vpop.xlane.xlu0 %1657 }
  0x9c   : > { %v1664_v9 = vmul.f32 0.03125, %v1658_v8 }
  0x9e   : > { %v4341_v10 = vsub.f32 %v1643_v0, %v1664_v9 }
  0x9f   : > { %v1662_v11 = vpop.xlane.xlu0 %1661 }
  0xa0   : > { %v1665_v12 = vmul.f32 0.03125, %v1662_v11  ;;  %v1668_v13 = vmul.f32 %v4341_v10, %v4341_v10  ;;  %v3787_v11 = vld [vmem:[%s4862_s9] ss:$0 sm:$0xff] }
  0xa2   : > { %v4345_v14 = vsub.f32 %v1644_v1, %v1665_v12  ;;  %v1670_v15 = vsel %vm866_vm0, %v1668_v13, 0.0 }
  0xa3   : > { %1671 = vadd.xlane.f32.xlu1 %v1670_v15 }
  0xa4   : > { %v1669_v16 = vmul.f32 %v4345_v14, %v4345_v14 }
  0xa6   : > { %v1673_v17 = vsel %vm1659_vm1, %v1669_v16, 0.0  ;;  %v3788_v16 = vld [vmem:[%s4863_s10] ss:$0 sm:$0xff] }
  0xa7   : > { %1674 = vadd.xlane.f32.xlu1 %v1673_v17 }
  0xd9   : > { %v904_v24 = vpop.f32.mrf.mxu0 }
  0xdb   : > { %v906_v28 = vpop.f32.mrf.mxu0 }
  0xdd   : > { %v908_v30 = vpop.f32.mrf.mxu0 }
  0xdf   : > { %v910_v34 = vpop.f32.mrf.mxu0 }
  0xe1   : > { %v947_v40 = vpop.f32.mrf.mxu0 }
  0xe3   : > { %v949_v44 = vpop.f32.mrf.mxu0 }
  0xe5   : > { %v951_v47 = vpop.f32.mrf.mxu0 }
 0x12c   : > { %v1672_v56 = vpop.xlane.xlu1 %1671 }
 0x12d   : > { %v1676_v57 = vmul.f32 0.032258064, %v1672_v56  ;;  %v953_v56 = vpop.f32.mrf.mxu0 }
 0x12f   : > { %4118 = vrsqrt.f32 %v1676_v57  ;;  %vm1680_vm2 = vcmp.eq.f32.partialorder %v1676_v57, inf  ;;  %v1683_v62 = vand.u32 2147483648, %v1676_v57  ;;  %vm1682_vm3 = vcmp.eq.f32.partialorder %v1676_v57, 0.0 }
 0x130   : > { %v1675_v58 = vpop.xlane.xlu1 %1674 }
 0x131   : > { %v1677_v59 = vmul.f32 0.032258064, %v1675_v58 }
 0x133   : > { %4120 = vrsqrt.f32 %v1677_v59  ;;  %vm1687_vm4 = vcmp.eq.f32.partialorder %v1677_v59, inf  ;;  %v1690_v4 = vand.u32 2147483648, %v1677_v59  ;;  %vm1689_vm5 = vcmp.eq.f32.partialorder %v1677_v59, 0.0 }
 0x13c   : > { %v4119_v60 = vpop.eup %4118 }
 0x13d   : > { %v1679_v61 = vmul.f32 %v4119_v60, %v1676_v57 }
 0x13f   : > { %v1681_v63 = vsel %vm1680_vm2, %v1676_v57, %v1679_v61  ;;  %v1102_v61 = vunpack.c.0.s8 %v1101_v52 }
 0x140   : > { %v4121_v0 = vpop.eup %4120  ;;  %v1684_v1 = vsel %vm1682_vm3, %v1683_v62, %v1681_v63 }
 0x141   : > { %v1692_v2 = vadd.f32 1e-06, %v1684_v1  ;;  %v1686_v3 = vmul.f32 %v4121_v0, %v1677_v59 }
 0x143   : > { %4122 = vrcp.f32 %v1692_v2  ;;  %v1688_v5 = vsel %vm1687_vm4, %v1677_v59, %v1686_v3 }
 0x144   : > { %v1691_v6 = vsel %vm1689_vm5, %v1690_v4, %v1688_v5 }
 0x145   : > { %v1693_v7 = vadd.f32 1e-06, %v1691_v6 }
 0x147   : > { %4124 = vrcp.f32 %v1693_v7 }
 0x150   : > { %v4123_v8 = vpop.eup %4122 }
 0x151   : > { %v1696_v9 = vmul.f32 %v4123_v8, %v4341_v10  ;;  %v741_v10 = vlaneseq }
 0x153   : > { %v1704_v15 = vmul.f32 %v3787_v11, %v1696_v9  ;;  %v4438_v21 = vshrl.u32 %v741_v10, 7 }
 0x154   : > { %v4125_v12 = vpop.eup %4124 }
 0x155   : > { %v1697_v13 = vmul.f32 %v4125_v12, %v4345_v14  ;;  %v1712_v18 = vadd.f32 %v3788_v16, %v1704_v15  ;;  %v4441_v22 = vsub.s32 0, %v4438_v21  ;;  %v4444_v14 = vsub.s32 1, %v4438_v21 }
 0x156   : > { %v751_v29 = vsub.s32 2, %v4438_v21  ;;  %v755_v35 = vsub.s32 3, %v4438_v21  ;;  %v4468_v58 = vsub.s32 %v1071_v46, %v4438_v21  ;;  %v759_v62 = vsub.s32 4, %v4438_v21 }
 0x157   : > { %v1705_v17 = vmul.f32 %v3787_v11, %v1697_v13  ;;  %v744_v25 = vrot.slane %v4449_v23, %v4441_v22  ;;  %v748_v27 = vrot.slane %v4449_v23, %v4444_v14  ;;  %v767_v2 = vsub.s32 6, %v4438_v21 }
 0x158   : > { %v752_v37 = vrot.slane %v4449_v23, %v751_v29  ;;  %v756_v43 = vrot.slane %v4449_v23, %v755_v35  ;;  %v763_v3 = vsub.s32 5, %v4438_v21  ;;  %v4477_v8 = vsub.s32 %v1102_v61, %v4438_v21 }
 0x159   : > { %v1713_v19 = vadd.f32 %v3788_v16, %v1705_v17  ;;  %v905_v31 = vadd.f32 %v904_v24, %v744_v25  ;;  %v907_v32 = vadd.f32 %v906_v28, %v748_v27  ;;  %v909_v33 = vadd.f32 %v908_v30, %v744_v25 }
 0x15a   : > { %v911_v36 = vadd.f32 %v910_v34, %v748_v27  ;;  %v948_v45 = vadd.f32 %v947_v40, %v752_v37  ;;  %v952_v50 = vadd.f32 %v951_v47, %v752_v37  ;;  %v950_v55 = vadd.f32 %v949_v44, %v756_v43  ;;  %v990_v27 = vpop.f32.mrf.mxu0 }
 0x15b   : > { %v1714_v20 = vpack.c.bf16 %v1713_v19, %v1712_v18  ;;  %v1042_v41 = vpack.c.bf16 %v909_v33, %v905_v31  ;;  %v954_v59 = vadd.f32 %v953_v56, %v756_v43  ;;  %v760_v9 = vrot.slane %v4449_v23, %v759_v62 }
 0x15c   : > { %v1043_v42 = vpack.c.bf16 %v911_v36, %v907_v32  ;;  %v1044_v57 = vpack.c.bf16 %v952_v50, %v948_v45  ;;  %v771_v11 = vsub.s32 7, %v4438_v21  ;;  %v768_v18 = vrot.slane %v4449_v23, %v767_v2  ;;  %v1033_v32 = vpop.f32.mrf.mxu1  ;;  %v992_v39 = vpop.f32.mrf.mxu0 }
 0x15d   : > { %3797 = vmatmul.mubr.msk.bf16.vlgmr.msra.gmra.mxu0 %vm866_vm0, %v1714_v20  ;;  %3798 = vmatmul.mubr.msk.bf16.vlgmr.msra.gmra.mxu1 %vm866_vm0, %v1714_v20  ;;  %v1050_v48 = vshrl.u32 %v1042_v41, 16  ;;  %v1045_v1 = vpack.c.bf16 %v954_v59, %v950_v55  ;;  %v764_v19 = vrot.slane %v4449_v23, %v763_v3  ;;  %v991_v31 = vadd.f32 %v990_v27, %v760_v9 }
 0x15e   : > { %v1051_v49 = vshrl.u32 %v1043_v42, 16  ;;  %v1048_v53 = vpack.i.b16 %v1043_v42, %v1042_v41  ;;  %v1058_v0 = vshrl.u32 %v1044_v57, 16  ;;  %v772_v33 = vrot.slane %v4449_v23, %v771_v11  ;;  %v1035_v44 = vpop.f32.mrf.mxu1  ;;  %v994_v52 = vpop.f32.mrf.mxu0 }
 0x15f   : > { %v1056_v5 = vpack.i.b16 %v1045_v1, %v1044_v57  ;;  %v1059_v6 = vshrl.u32 %v1045_v1, 16  ;;  %v1034_v43 = vadd.f32 %v1033_v32, %v768_v18  ;;  %v993_v3 = vadd.f32 %v992_v39, %v764_v19 }
 0x160   : > { %v1052_v60 = vpack.i.b16 %v1051_v49, %v1050_v48  ;;  %v1068_v63 = vcombine.high %v1048_v53, %v4465_v54  ;;  %v1075_v4 = vrot.slane %v1048_v53, %v4468_v58  ;;  %v1037_v53 = vpop.f32.mrf.mxu1  ;;  %v996_v11 = vpop.f32.mrf.mxu0 }
 0x161   : > { %v1060_v13 = vpack.i.b16 %v1059_v6, %v1058_v0  ;;  %v1083_v15 = vcombine.high %v1056_v5, %v4465_v54  ;;  %v1090_v16 = vrot.slane %v1056_v5, %v4468_v58 }
 0x162   : > { %v1134_v7 = vcombine.high %v1052_v60, %v4465_v54  ;;  %v1082_v12 = vrot.slane %v1068_v63, %v4468_v58  ;;  %v1141_v17 = vrot.slane %v1052_v60, %v4468_v58 }
 0x163   : > { %v1097_v20 = vrot.slane %v1083_v15, %v4468_v58  ;;  %v1098_v10 = vcombine.low %v1075_v4, %v1090_v16  ;;  %v1099_v24 = vcombine.high %v1075_v4, %v1090_v16  ;;  %v1149_v25 = vcombine.high %v1060_v13, %v4465_v54 }
 0x164   : > { %v1148_v28 = vrot.slane %v1134_v7, %v4468_v58  ;;  %v1156_v30 = vrot.slane %v1060_v13, %v4468_v58  ;;  %v1036_v16 = vadd.f32 %v1035_v44, %v772_v33 }
 0x165   : > { %v1106_v34 = vrot.slane %v1098_v10, %v4477_v8  ;;  %v1113_v36 = vrot.slane %v1099_v24, %v4477_v8  ;;  %v1114_v37 = vcombine.low %v1082_v12, %v1097_v20  ;;  %v1115_v38 = vcombine.high %v1082_v12, %v1097_v20  ;;  %v1039_v12 = vpop.f32.mrf.mxu1 }
 0x166   : > { %v1163_v40 = vrot.slane %v1149_v25, %v4468_v58  ;;  %v1164_v41 = vcombine.low %v1141_v17, %v1156_v30  ;;  %v1165_v42 = vcombine.high %v1141_v17, %v1156_v30  ;;  %v995_v17 = vadd.f32 %v994_v52, %v760_v9 }
 0x167   : > { %v1122_v45 = vrot.slane %v1114_v37, %v4477_v8  ;;  %v1129_v46 = vrot.slane %v1115_v38, %v4477_v8  ;;  %v1200_v47 = vcombine.low %v1106_v34, %v1113_v36  ;;  %v3761_v48 = vcombine.high %v1106_v34, %v1113_v36 }
 0x168   : > { %v1172_v23 = vrot.slane %v1164_v41, %v4477_v8  ;;  %v1179_v49 = vrot.slane %v1165_v42, %v4477_v8  ;;  %v1180_v50 = vcombine.low %v1148_v28, %v1163_v40  ;;  %v1181_v51 = vcombine.high %v1148_v28, %v1163_v40 }
 0x169   : > { %v1207_v55 = vrot.slane %v1200_v47, %v4468_v58  ;;  %v1215_v56 = vrot.slane %v3761_v48, %v4468_v58  ;;  %v1216_v57 = vcombine.low %v1122_v45, %v1129_v46  ;;  %v3762_v59 = vcombine.high %v1122_v45, %v1129_v46 }
 0x16a   : > { %v1188_v60 = vrot.slane %v1180_v50, %v4477_v8  ;;  %v1195_v61 = vrot.slane %v1181_v51, %v4477_v8  ;;  %v1250_v62 = vcombine.low %v1172_v23, %v1179_v49  ;;  %v3763_v63 = vcombine.high %v1172_v23, %v1179_v49 }
 0x16b   : > { %v1223_v0 = vrot.slane %v1216_v57, %v4468_v58  ;;  %v1231_v1 = vrot.slane %v3762_v59, %v4468_v58  ;;  %v1232_v2 = vcombine.low %v1207_v55, %v1215_v56  ;;  %v1038_v25 = vadd.f32 %v1037_v53, %v768_v18 }
 0x16c   : > { %v1257_v4 = vrot.slane %v1250_v62, %v4468_v58  ;;  %v1265_v5 = vrot.slane %v3763_v63, %v4468_v58  ;;  %v1266_v6 = vcombine.low %v1188_v60, %v1195_v61  ;;  %v3764_v7 = vcombine.high %v1188_v60, %v1195_v61 }
 0x16d   : > { %v1239_v13 = vrot.slane %v1232_v2, %v4477_v8  ;;  %v1240_v15 = vcombine.low %v1223_v0, %v1231_v1  ;;  %v1344_v28 = vpack.c.bf16 %v995_v17, %v991_v31  ;;  %v997_v30 = vadd.f32 %v996_v11, %v764_v19 }
 0x16e   : > { %v1273_v20 = vrot.slane %v1266_v6, %v4468_v58  ;;  %v1281_v10 = vrot.slane %v3764_v7, %v4468_v58  ;;  %v1282_v24 = vcombine.low %v1257_v4, %v1265_v5  ;;  %v1040_v32 = vadd.f32 %v1039_v12, %v772_v33 }
 0x16f   : > { %v1247_v27 = vrot.slane %v1240_v15, %v4477_v8  ;;  %v1346_v37 = vpack.c.bf16 %v1038_v25, %v1034_v43  ;;  %v1352_v40 = vshrl.u32 %v1344_v28, 16  ;;  %v1345_v41 = vpack.c.bf16 %v997_v30, %v993_v3 }
 0x170   : > { %v1289_v34 = vrot.slane %v1282_v24, %v4477_v8  ;;  %v1290_v36 = vcombine.low %v1273_v20, %v1281_v10  ;;  %v1347_v42 = vpack.c.bf16 %v1040_v32, %v1036_v16 }
 0x171   : > { %v1248_v38 = vcombine.low %v1239_v13, %v1247_v27  ;;  %v1249_v39 = vcombine.high %v1239_v13, %v1247_v27  ;;  %v1360_v45 = vshrl.u32 %v1346_v37, 16  ;;  %v1350_v46 = vpack.i.b16 %v1345_v41, %v1344_v28 }
 0x172   : > { %v1297_v9 = vrot.slane %v1290_v36, %v4477_v8  ;;  %v1353_v18 = vshrl.u32 %v1345_v41, 16  ;;  %v1361_v19 = vshrl.u32 %v1347_v42, 16  ;;  %v1358_v49 = vpack.i.b16 %v1347_v42, %v1346_v37 }
 0x173   : > { %v1303_v44 = vshrl.u32 %v1248_v38, 16  ;;  %v1309_v31 = vshrl.u32 %v1249_v39, 16  ;;  %v1364_v23 = vcombine.high %v1350_v46, %v4465_v54  ;;  %v1371_v53 = vrot.slane %v1350_v46, %v4468_v58 }
 0x174   : > { %v1298_v47 = vcombine.low %v1289_v34, %v1297_v9  ;;  %v1299_v48 = vcombine.high %v1289_v34, %v1297_v9  ;;  %v1354_v33 = vpack.i.b16 %v1353_v18, %v1352_v40  ;;  %v1362_v57 = vpack.i.b16 %v1361_v19, %v1360_v45 }
 0x175   : > { %v1378_v55 = vrot.slane %v1364_v23, %v4468_v58  ;;  %v1379_v2 = vcombine.high %v1358_v49, %v4465_v54  ;;  %v1386_v7 = vrot.slane %v1358_v49, %v4468_v58 }
 0x176   : > { %v1302_v43 = vpack.i.b16 %v1298_v47, %v1248_v38  ;;  %v1304_v50 = vshrl.u32 %v1298_v47, 16  ;;  %v1308_v51 = vpack.i.b16 %v1299_v48, %v1249_v39  ;;  %v1310_v52 = vshrl.u32 %v1299_v48, 16 }
 0x177   : > { %v1430_v56 = vcombine.high %v1354_v33, %v4465_v54  ;;  %v1437_v1 = vrot.slane %v1354_v33, %v4468_v58  ;;  %v1393_v11 = vrot.slane %v1379_v2, %v4468_v58  ;;  %v1445_v12 = vcombine.high %v1362_v57, %v4465_v54 }
 0x178   : > { %v1305_v59 = vpack.i.b16 %v1304_v50, %v1303_v44  ;;  %v1311_v60 = vpack.i.b16 %v1310_v52, %v1309_v31  ;;  %v3765_v61 = vcombine.low %v1302_v43, %v1302_v43  ;;  %v3766_v62 = vcombine.high %v1302_v43, %v1302_v43 }
 0x179   : > { %v3769_v63 = vcombine.low %v1308_v51, %v1308_v51  ;;  %v3770_v0 = vcombine.high %v1308_v51, %v1308_v51  ;;  %v1452_v13 = vrot.slane %v1362_v57, %v4468_v58  ;;  %v1444_v15 = vrot.slane %v1430_v56, %v4468_v58 }
 0x17a   : > { %v3767_v3 = vcombine.low %v1305_v59, %v1305_v59  ;;  %v3768_v4 = vcombine.high %v1305_v59, %v1305_v59  ;;  %v3771_v5 = vcombine.low %v1311_v60, %v1311_v60  ;;  %v3772_v6 = vcombine.high %v1311_v60, %v1311_v60  ;;  %1336 = vst [vmem:[#allocation2] sm:$0xf] %v3765_v61 }
 0x17b   : > { %1337 = vst [vmem:[#allocation2 + $0x4] sm:$0xf] %v3766_v62  ;;  %1340 = vst [vmem:[#allocation2 + $0x10] sm:$0xf] %v3769_v63  ;;  %v1394_v16 = vcombine.low %v1371_v53, %v1386_v7  ;;  %v1395_v17 = vcombine.high %v1371_v53, %v1386_v7  ;;  %v1410_v20 = vcombine.low %v1378_v55, %v1393_v11  ;;  %v4203_v57 = vmov 0.0  }
 0x17c   : > { %1341 = vst [vmem:[#allocation2 + $0x14] sm:$0xf] %v3770_v0  ;;  %1338 = vst [vmem:[#allocation2 + $0x8] sm:$0xf] %v3767_v3  ;;  %v1411_v10 = vcombine.high %v1378_v55, %v1393_v11  ;;  %v1459_v24 = vrot.slane %v1445_v12, %v4468_v58  ;;  %v1460_v25 = vcombine.low %v1437_v1, %v1452_v13  ;;  %3965 = vmatprep.subr.bf16.mxu0 %v4203_v57 }
 0x17d   : > { %1339 = vst [vmem:[#allocation2 + $0xc] sm:$0xf] %v3768_v4  ;;  %1342 = vst [vmem:[#allocation2 + $0x18] sm:$0xf] %v3771_v5  ;;  %v1461_v27 = vcombine.high %v1437_v1, %v1452_v13  ;;  %v1402_v28 = vrot.slane %v1394_v16, %v4477_v8  ;;  %v1409_v54 = vrot.slane %v1395_v17, %v4477_v8  ;;  %3971 = vmatprep.subr.bf16.mxu1 %v4203_v57 }
 0x17e   : > { %1343 = vst [vmem:[#allocation2 + $0x1c] sm:$0xf] %v3772_v6  ;;  %v1418_v30 = vrot.slane %v1410_v20, %v4477_v8  ;;  %v1425_v32 = vrot.slane %v1411_v10, %v4477_v8  ;;  %v1468_v34 = vrot.slane %v1460_v25, %v4477_v8  ;;  %v1476_v37 = vcombine.low %v1444_v15, %v1459_v24 }
 0x17f   : > { %v1475_v36 = vrot.slane %v1461_v27, %v4477_v8  ;;  %v1477_v38 = vcombine.high %v1444_v15, %v1459_v24  ;;  %v1496_v39 = vcombine.low %v1402_v28, %v1409_v54  ;;  %v3773_v40 = vcombine.high %v1402_v28, %v1409_v54  ;;  %3967 = vmatprep.mubr.msk.bf16.mxu0 %vm4204_vm6, %v4203_v57  ;;  %v1723_v54 = vld [vmem:[%s4857_s4] sm:$0xf] }
 0x180   : > { %v1512_v41 = vcombine.low %v1418_v30, %v1425_v32  ;;  %v3774_v9 = vcombine.high %v1418_v30, %v1425_v32  ;;  %v1484_v42 = vrot.slane %v1476_v37, %v4477_v8  ;;  %3973 = vmatprep.mubr.msk.bf16.mxu1 %vm4204_vm6, %v4203_v57  ;;  %v1728_v30 = vrot.slane %v1723_v54, %v4441_v22 }
 0x181   : > { %v1491_v44 = vrot.slane %v1477_v38, %v4477_v8  ;;  %v1546_v45 = vcombine.low %v1468_v34, %v1475_v36  ;;  %v3775_v46 = vcombine.high %v1468_v34, %v1475_v36  ;;  %v1503_v18 = vrot.slane %v1496_v39, %v4468_v58 }
 0x182   : > { %v1511_v47 = vrot.slane %v3773_v40, %v4468_v58  ;;  %v1519_v48 = vrot.slane %v1512_v41, %v4468_v58  ;;  %v1527_v31 = vrot.slane %v3774_v9, %v4468_v58  ;;  %v4055_v19 = vld [vmem:[#allocation2] sm:$0xff]   ;;  %v1736_v32 = vrot.slane %v1723_v54, %v751_v29 }
 0x183   : > { %v1553_v33 = vrot.slane %v1546_v45, %v4468_v58  ;;  %v1561_v23 = vrot.slane %v3775_v46, %v4468_v58  ;;  %v1562_v49 = vcombine.low %v1484_v42, %v1491_v44  ;;  %v3776_v43 = vcombine.high %v1484_v42, %v1491_v44  ;;  %3966 = vmatpush3.bf16.xpose.msra.mxu0 %v4055_v19 }
 0x184   : > { %v1528_v50 = vcombine.low %v1503_v18, %v1511_v47  ;;  %v1536_v51 = vcombine.low %v1519_v48, %v1527_v31  ;;  %v4056_v52 = vld [vmem:[#allocation2 + $0x8] sm:$0xff]   ;;  %3977 = vmatprep.subr.bf16.mxu0 %v4203_v57  ;;  %v1732_v37 = vrot.slane %v1723_v54, %v4444_v14  ;;  %v1740_v41 = vrot.slane %v1723_v54, %v755_v35 }
 0x185   : > { %v1569_v53 = vrot.slane %v1562_v49, %v4468_v58  ;;  %v1577_v55 = vrot.slane %v3776_v43, %v4468_v58  ;;  %v1578_v56 = vcombine.low %v1553_v33, %v1561_v23  ;;  %3972 = vmatpush3.bf16.xpose.msra.mxu1 %v4056_v52 }
 0x186   : > { %v1535_v59 = vrot.slane %v1528_v50, %v4477_v8  ;;  %v1543_v60 = vrot.slane %v1536_v51, %v4477_v8  ;;  %3983 = vmatprep.subr.bf16.mxu1 %v4203_v57 }
 0x187   : > { %v1585_v61 = vrot.slane %v1578_v56, %v4477_v8  ;;  %v1586_v62 = vcombine.low %v1569_v53, %v1577_v55 }
 0x188   : > { %v1544_v63 = vcombine.low %v1535_v59, %v1543_v60  ;;  %v1545_v0 = vcombine.high %v1535_v59, %v1543_v60 }
 0x189   : > { %v1593_v1 = vrot.slane %v1586_v62, %v4477_v8 }
 0x18a   : > { %v1599_v4 = vshrl.u32 %v1544_v63, 16  ;;  %v1605_v5 = vshrl.u32 %v1545_v0, 16 }
 0x18b   : > { %v1594_v2 = vcombine.low %v1585_v61, %v1593_v1  ;;  %v1595_v3 = vcombine.high %v1585_v61, %v1593_v1 }
 0x18d   : > { %v1598_v6 = vpack.i.b16 %v1594_v2, %v1544_v63  ;;  %v1600_v7 = vshrl.u32 %v1594_v2, 16  ;;  %v1604_v11 = vpack.i.b16 %v1595_v3, %v1545_v0  ;;  %v1606_v12 = vshrl.u32 %v1595_v3, 16 }
 0x18f   : > { %v1601_v13 = vpack.i.b16 %v1600_v7, %v1599_v4  ;;  %v1607_v15 = vpack.i.b16 %v1606_v12, %v1605_v5  ;;  %v3777_v16 = vcombine.low %v1598_v6, %v1598_v6  ;;  %v3778_v17 = vcombine.high %v1598_v6, %v1598_v6 }
 0x190   : > { %v3781_v20 = vcombine.low %v1604_v11, %v1604_v11  ;;  %v3782_v10 = vcombine.high %v1604_v11, %v1604_v11 }
 0x191   : > { %v3779_v24 = vcombine.low %v1601_v13, %v1601_v13  ;;  %v3780_v25 = vcombine.high %v1601_v13, %v1601_v13  ;;  %v3783_v27 = vcombine.low %v1607_v15, %v1607_v15  ;;  %v3784_v28 = vcombine.high %v1607_v15, %v1607_v15  ;;  %1632 = vst [vmem:[#allocation3] sm:$0xf] %v3777_v16 }
 0x192   : > { %1633 = vst [vmem:[#allocation3 + $0x4] sm:$0xf] %v3778_v17  ;;  %1636 = vst [vmem:[#allocation3 + $0x10] sm:$0xf] %v3781_v20 }
 0x193   : > { %1637 = vst [vmem:[#allocation3 + $0x14] sm:$0xf] %v3782_v10  ;;  %1634 = vst [vmem:[#allocation3 + $0x8] sm:$0xf] %v3779_v24 }
 0x194   : > { %1635 = vst [vmem:[#allocation3 + $0xc] sm:$0xf] %v3780_v25  ;;  %1638 = vst [vmem:[#allocation3 + $0x18] sm:$0xf] %v3783_v27 }
 0x195   : > { %1639 = vst [vmem:[#allocation3 + $0x1c] sm:$0xf] %v3784_v28 }
 0x21d   : > { %v1822_v34 = vpop.f32.mrf.mxu0  ;;  %v1865_v36 = vpop.f32.mrf.mxu1 }
 0x21e   : > { %v1823_v38 = vadd.f32 %v1822_v34, %v1728_v30  ;;  %v1866_v39 = vadd.f32 %v1865_v36, %v1736_v32 }
 0x21f   : > { %v1824_v40 = vpop.f32.mrf.mxu0  ;;  %v1867_v9 = vpop.f32.mrf.mxu1 }
 0x220   : > { %v1825_v42 = vadd.f32 %v1824_v40, %v1732_v37  ;;  %v1874_v47 = vmul.f32 0.35355338, %v1823_v38  ;;  %v1876_v48 = vmul.f32 0.35355338, %v1866_v39  ;;  %v1868_v31 = vadd.f32 %v1867_v9, %v1740_v41 }
 0x221   : > { %v1826_v44 = vpop.f32.mrf.mxu0  ;;  %v1869_v45 = vpop.f32.mrf.mxu1 }
 0x222   : > { %v1827_v46 = vadd.f32 %v1826_v44, %v1728_v30  ;;  %v1870_v18 = vadd.f32 %v1869_v45, %v1736_v32  ;;  %v1875_v50 = vmul.f32 0.35355338, %v1825_v42  ;;  %v1877_v53 = vmul.f32 0.35355338, %v1868_v31 }
 0x223   : > { %v1828_v29 = vpop.f32.mrf.mxu0  ;;  %v1871_v19 = vpop.f32.mrf.mxu1 }
 0x224   : > { %v1878_v33 = vmul.f32 0.35355338, %v1827_v46  ;;  %v1880_v23 = vmul.f32 0.35355338, %v1870_v18  ;;  %v1829_v49 = vadd.f32 %v1828_v29, %v1732_v37  ;;  %v1872_v43 = vadd.f32 %v1871_v19, %v1740_v41 }
 0x226   : > { %v1882_v51 = vpack.c.bf16 %v1878_v33, %v1874_v47  ;;  %v1884_v52 = vpack.c.bf16 %v1880_v23, %v1876_v48  ;;  %v3799_v21 = vpack.c.bf16 %v1880_v23, %v1878_v33  ;;  %v1879_v35 = vmul.f32 0.35355338, %v1829_v49 }
 0x227   : > { %v1881_v55 = vmul.f32 0.35355338, %v1872_v43 }
 0x228   : > { %v1892_v56 = vrot.slane %v1882_v51, %v4468_v58  ;;  %v1900_v59 = vrot.slane %v1884_v52, %v4468_v58  ;;  %v1925_v60 = vrot.slane %v3799_v21, %v4477_v8  ;;  %v1883_v61 = vpack.c.bf16 %v1879_v35, %v1875_v50 }
 0x229   : > { %v1885_v62 = vpack.c.bf16 %v1881_v55, %v1877_v53  ;;  %v3800_v63 = vpack.c.bf16 %v1881_v55, %v1879_v35 }
 0x22a   : > { %v1902_v0 = vcombine.low %v1892_v56, %v1900_v59  ;;  %v1903_v1 = vcombine.high %v1892_v56, %v1900_v59  ;;  %v1928_v2 = vcombine.high %v1925_v60, %v4200_v26  ;;  %v1935_v3 = vrot.slane %v1883_v61, %v4468_v58 }
 0x22b   : > { %v1943_v4 = vrot.slane %v1885_v62, %v4468_v58  ;;  %v1968_v5 = vrot.slane %v3800_v63, %v4477_v8  ;;  %v2007_v47 = vshrl.u32 %v1925_v60, 16 }
 0x22c   : > { %v1910_v6 = vrot.slane %v1902_v0, %v4477_v8  ;;  %v1917_v7 = vrot.slane %v1903_v1, %v4477_v8  ;;  %v2013_v17 = vshrl.u32 %v1928_v2, 16 }
 0x22d   : > { %v1945_v11 = vcombine.low %v1935_v3, %v1943_v4  ;;  %v1946_v12 = vcombine.high %v1935_v3, %v1943_v4  ;;  %v1971_v13 = vcombine.high %v1968_v5, %v4200_v26  ;;  %v2008_v27 = vshrl.u32 %v1968_v5, 16  ;;  %v4057_v4 = vld [vmem:[#allocation2 + $0x10] sm:$0xff]  }
 0x22e   : > { %v1926_v15 = vcombine.high %v1910_v6, %v4200_v26  ;;  %v1927_v16 = vcombine.high %v1917_v7, %v4200_v26  ;;  %v1976_v24 = vshrl.u32 %v1910_v6, 16  ;;  %v1992_v25 = vshrl.u32 %v1917_v7, 16 }
 0x22f   : > { %v1953_v20 = vrot.slane %v1945_v11, %v4477_v8  ;;  %v1960_v10 = vrot.slane %v1946_v12, %v4477_v8  ;;  %v2012_v28 = vpack.i.b16 %v1971_v13, %v1928_v2  ;;  %v2014_v39 = vshrl.u32 %v1971_v13, 16 }
 0x230   : > { %v1984_v36 = vshrl.u32 %v1926_v15, 16  ;;  %v2000_v44 = vshrl.u32 %v1927_v16, 16  ;;  %v2006_v19 = vpack.i.b16 %v1968_v5, %v1925_v60  ;;  %v2009_v50 = vpack.i.b16 %v2008_v27, %v2007_v47 }
 0x231   : > { %v1969_v54 = vcombine.high %v1953_v20, %v4200_v26  ;;  %v1970_v30 = vcombine.high %v1960_v10, %v4200_v26  ;;  %v1974_v32 = vpack.i.b16 %v1953_v20, %v1910_v6  ;;  %v1977_v34 = vshrl.u32 %v1953_v20, 16  ;;  %v4060_v20 = vld [vmem:[#allocation3 + $0x8] sm:$0xff]  }
 0x232   : > { %v1990_v37 = vpack.i.b16 %v1960_v10, %v1917_v7  ;;  %v1993_v38 = vshrl.u32 %v1960_v10, 16  ;;  %v2015_v33 = vpack.i.b16 %v2014_v39, %v2013_v17  ;;  %v2042_v51 = vcombine.low %v2006_v19, %v2012_v28  ;;  %v4058_v7 = vld [vmem:[#allocation2 + $0x18] sm:$0xff]   ;;  %v1645_v10 = vld [vmem:[%s685_s18] sm:$0xf] }
 0x233   : > { %v1978_v40 = vpack.i.b16 %v1977_v34, %v1976_v24  ;;  %v1982_v41 = vpack.i.b16 %v1969_v54, %v1926_v15  ;;  %v1985_v9 = vshrl.u32 %v1969_v54, 16  ;;  %v1998_v42 = vpack.i.b16 %v1970_v30, %v1927_v16  ;;  %v4059_v16 = vld [vmem:[#allocation3] sm:$0xff]  }
 0x234   : > { %v1994_v45 = vpack.i.b16 %v1993_v38, %v1992_v25  ;;  %v2001_v46 = vshrl.u32 %v1970_v30, 16  ;;  %v2016_v18 = vcombine.low %v1974_v32, %v1990_v37  ;;  %v2078_v55 = vcombine.low %v2009_v50, %v2015_v33  ;;  %v1646_v25 = vld [vmem:[%s685_s18 + $0x4] sm:$0x3]  ;;  %s4878_s18 = sshll.u32 %s4884_s24, 4 }
 0x235   : > { %v1986_v48 = vpack.i.b16 %v1985_v9, %v1984_v36  ;;  %v2024_v31 = vcombine.low %v1982_v41, %v1998_v42  ;;  %v2049_v59 = vrot.slane %v2042_v51, %v4477_v8  ;;  %v1647_v24 = vunpack.c.l.bf16 %v1645_v10  ;;  %s712_s21 = scalar_lea.vmem %s4870_s17, %s4878_s18 }
 0x236   : > { %v2002_v29 = vpack.i.b16 %v2001_v46, %v2000_v44  ;;  %v2052_v23 = vcombine.low %v1978_v40, %v1994_v45  ;;  %v2023_v49 = vrot.slane %v2016_v18, %v4468_v58  ;;  %v2085_v63 = vrot.slane %v2078_v55, %v4477_v8 }
 0x237   : > { %v2031_v43 = vrot.slane %v2024_v31, %v4468_v58  ;;  %v3785_v27 = vadd.f32 -1.0, %v1647_v24  ;;  %v1648_v28 = vunpack.c.l.bf16 %v1646_v25 }
 0x238   : > { %v2060_v52 = vcombine.low %v1986_v48, %v2002_v29  ;;  %v2059_v35 = vrot.slane %v2052_v23, %v4468_v58 }
 0x239   : > { %v2034_v21 = vcombine.low %v2023_v49, %v2031_v43  ;;  %v1651_v54 = vmul.f32 1e+09, %v3785_v27  ;;  %v3786_v30 = vadd.f32 -1.0, %v1648_v28 }
 0x23a   : > { %v2067_v53 = vrot.slane %v2060_v52, %v4468_v58 }
 0x23b   : > { %v2041_v56 = vrot.slane %v2034_v21, %v4477_v8  ;;  %v1652_v36 = vmul.f32 1e+09, %v3786_v30 }
 0x23c   : > { %v2070_v60 = vcombine.low %v2059_v35, %v2067_v53 }
 0x23d   : > { %v2050_v61 = vcombine.low %v2041_v56, %v2049_v59  ;;  %v2051_v11 = vcombine.high %v2041_v56, %v2049_v59 }
 0x23e   : > { %v2077_v62 = vrot.slane %v2070_v60, %v4477_v8 }
 0x23f   : > { %v2092_v2 = vshrl.u32 %v2050_v61, 16  ;;  %v2100_v15 = vshrl.u32 %v2051_v11, 16 }
 0x240   : > { %v2086_v0 = vcombine.low %v2077_v62, %v2085_v63  ;;  %v2087_v6 = vcombine.high %v2077_v62, %v2085_v63 }
 0x242   : > { %v2090_v1 = vpack.i.b16 %v2086_v0, %v2050_v61  ;;  %v2093_v3 = vshrl.u32 %v2086_v0, 16  ;;  %v2101_v12 = vshrl.u32 %v2087_v6, 16  ;;  %v2098_v13 = vpack.i.b16 %v2087_v6, %v2051_v11 }
 0x244   : > { %3968 = vmatmul.mubr.bf16.vlgmr.msra.gmra.mxu0 %v2090_v1  ;;  %v2094_v5 = vpack.i.b16 %v2093_v3, %v2092_v2  ;;  %v2102_v17 = vpack.i.b16 %v2101_v12, %v2100_v15 }
 0x245   : > { %3978 = vmatpush3.bf16.xpose.msra.mxu0 %v4057_v4  ;;  %3979 = vmatprep.mubr.msk.bf16.mxu0 %vm4204_vm6, %v4203_v57 }
 0x246   : > { %3974 = vmatmul.mubr.bf16.vlgmr.msra.gmra.mxu1 %v2094_v5  ;;  %3989 = vmatprep.subr.bf16.mxu0 %v4203_v57 }
 0x247   : > { %3984 = vmatpush3.bf16.xpose.msra.mxu1 %v4058_v7  ;;  %3985 = vmatprep.mubr.msk.bf16.mxu1 %vm4204_vm6, %v4203_v57 }
 0x248   : > { %3995 = vmatprep.subr.bf16.mxu1 %v4203_v57 }
 0x24c   : > { %3980 = vmatmul.mubr.bf16.vlgmr.msra.gmra.mxu0 %v2098_v13 }
 0x24d   : > { %3990 = vmatpush3.bf16.msra.mxu0 %v4059_v16  ;;  %3991 = vmatprep.mubr.msk.bf16.mxu0 %vm4204_vm6, %v4203_v57 }
 0x24e   : > { %3986 = vmatmul.mubr.bf16.vlgmr.msra.gmra.mxu1 %v2102_v17  ;;  %4001 = vmatprep.subr.bf16.mxu0 %v4203_v57 }
 0x24f   : > { %3996 = vmatpush3.bf16.msra.mxu1 %v4060_v20  ;;  %3997 = vmatprep.mubr.msk.bf16.mxu1 %vm4204_vm6, %v4203_v57 }
 0x250   : > { %4007 = vmatprep.subr.bf16.mxu1 %v4203_v57 }
 0x304   : > { %v2152_v32 = vpop.f32.mrf.mxu0 }
 0x305   : > { %v2153_v34 = vadd.f32 %v2152_v32, %v1651_v54 }
 0x306   : > { %v3969_v37 = vpop.f32.mrf.mxu0  ;;  %v2199_v38 = vpop.f32.mrf.mxu1 }
 0x307   : > { %v2200_v39 = vadd.f32 %v2199_v38, %v1651_v54  ;;  %v2301_v40 = vsel %vm2300_vm7, %v2153_v34, -inf }
 0x308   : > { %v3975_v41 = vpop.f32.mrf.mxu1  ;;  %2302 = vmax.xlane.f32.xlu0 %v2301_v40  ;;  %v2155_v9 = vpop.f32.mrf.mxu0 }
 0x309   : > { %v2156_v42 = vadd.f32 %v2155_v9, %v1652_v36  ;;  %v2308_v18 = vsel %vm2300_vm7, %v2200_v39, -inf }
 0x30a   : > { %v3970_v44 = vpop.f32.mrf.mxu0  ;;  %v2202_v45 = vpop.f32.mrf.mxu1 }
 0x30b   : > { %v2203_v46 = vadd.f32 %v2202_v45, %v1652_v36  ;;  %v2305_v47 = vsel %vm2304_vm8, %v2156_v42, -inf }
 0x30c   : > { %v3976_v48 = vpop.f32.mrf.mxu1  ;;  %2309 = vmax.xlane.f32.xlu0 %v2308_v18  ;;  %2306 = vmax.xlane.f32.xlu1 %v2305_v47  ;;  %v2246_v31 = vpop.f32.mrf.mxu0 }
 0x30d   : > { %v2247_v29 = vadd.f32 %v2246_v31, %v1651_v54  ;;  %v2311_v49 = vsel %vm2304_vm8, %v2203_v46, -inf }
 0x30e   : > { %v3981_v19 = vpop.f32.mrf.mxu0  ;;  %v2293_v33 = vpop.f32.mrf.mxu1 }
 0x30f   : > { %v2294_v23 = vadd.f32 %v2293_v33, %v1651_v54  ;;  %v2314_v43 = vsel %vm2300_vm7, %v2247_v29, -inf }
 0x310   : > { %v3987_v50 = vpop.f32.mrf.mxu1  ;;  %2312 = vmax.xlane.f32.xlu1 %v2311_v49  ;;  %2315 = vmax.xlane.f32.xlu0 %v2314_v43  ;;  %v2249_v51 = vpop.f32.mrf.mxu0 }
 0x311   : > { %v2250_v52 = vadd.f32 %v2249_v51, %v1652_v36  ;;  %v2320_v55 = vsel %vm2300_vm7, %v2294_v23, -inf }
 0x312   : > { %v3982_v21 = vpop.f32.mrf.mxu0  ;;  %v2296_v35 = vpop.f32.mrf.mxu1 }
 0x313   : > { %v2297_v53 = vadd.f32 %v2296_v35, %v1652_v36  ;;  %v2317_v56 = vsel %vm2304_vm8, %v2250_v52, -inf }
 0x314   : > { %v3988_v59 = vpop.f32.mrf.mxu1  ;;  %2321 = vmax.xlane.f32.xlu0 %v2320_v55  ;;  %2318 = vmax.xlane.f32.xlu1 %v2317_v56  ;;  %v4061_v55 = vld [vmem:[#allocation3 + $0x10] sm:$0xff]  }
 0x315   : > { %v2323_v60 = vsel %vm2304_vm8, %v2297_v53, -inf }
 0x318   : > { %2324 = vmax.xlane.f32.xlu1 %v2323_v60 }
 0x391   : > { %v2303_v61 = vpop.xlane.xlu0 %2302 }
 0x392   : > { %v2326_v62 = vsub.f32 %v2153_v34, %v2303_v61 }
 0x394   : > { %v2334_v63 = vmul.f32 1.442695, %v2326_v62 }
 0x395   : > { %v2310_v0 = vpop.xlane.xlu0 %2309  ;;  %v2307_v1 = vpop.xlane.xlu1 %2306 }
 0x396   : > { %4126 = vpow2.f32 %v2334_v63  ;;  %v2328_v2 = vsub.f32 %v2200_v39, %v2310_v0  ;;  %v2327_v3 = vsub.f32 %v2156_v42, %v2307_v1  ;;  %v4062_v0 = vld [vmem:[#allocation3 + $0x18] sm:$0xff]  }
 0x398   : > { %v2338_v4 = vmul.f32 1.442695, %v2328_v2  ;;  %v2336_v5 = vmul.f32 1.442695, %v2327_v3 }
 0x399   : > { %v2313_v6 = vpop.xlane.xlu1 %2312  ;;  %v2316_v7 = vpop.xlane.xlu0 %2315 }
 0x39a   : > { %4128 = vpow2.f32 %v2338_v4  ;;  %v2329_v11 = vsub.f32 %v2203_v46, %v2313_v6  ;;  %v2330_v12 = vsub.f32 %v2247_v29, %v2316_v7 }
 0x39b   : > { %4130 = vpow2.f32 %v2336_v5 }
 0x39c   : > { %v2340_v13 = vmul.f32 1.442695, %v2329_v11  ;;  %v2342_v15 = vmul.f32 1.442695, %v2330_v12  ;;  %v4063_v12 = vld [vmem:[%s4860_s7 + $0x78] sm:$0xff]  }
 0x39d   : > { %v2322_v16 = vpop.xlane.xlu0 %2321  ;;  %v2319_v17 = vpop.xlane.xlu1 %2318 }
 0x39e   : > { %4132 = vpow2.f32 %v2340_v13  ;;  %v2332_v20 = vsub.f32 %v2294_v23, %v2322_v16  ;;  %v2331_v10 = vsub.f32 %v2250_v52, %v2319_v17  ;;  %v4064_v13 = vld [vmem:[%s4860_s7 + $0xf8] sm:$0xff]   ;;  %v4067_v16 = vld [vmem:[%s4860_s7 + $0x70] sm:$0xff]  }
 0x39f   : > { %4134 = vpow2.f32 %v2342_v15  ;;  %v4066_v15 = vld [vmem:[%s4860_s7 + $0xb8] sm:$0xff]   ;;  %v4068_v17 = vld [vmem:[%s4860_s7 + $0xf0] sm:$0xff]  }
 0x3a0   : > { %v2346_v24 = vmul.f32 1.442695, %v2332_v20  ;;  %v2344_v25 = vmul.f32 1.442695, %v2331_v10  ;;  %v4069_v20 = vld [vmem:[%s4860_s7 + $0x30] sm:$0xff]  }
 0x3a1   : > { %v2325_v27 = vpop.xlane.xlu1 %2324  ;;  %v4070_v10 = vld [vmem:[%s4860_s7 + $0xb0] sm:$0xff]  }
 0x3a2   : > { %4136 = vpow2.f32 %v2346_v24  ;;  %v2333_v28 = vsub.f32 %v2297_v53, %v2325_v27  ;;  %v4071_v24 = vld [vmem:[%s4860_s7 + $0x68] sm:$0xff]  }
 0x3a3   : > { %v4127_v54 = vpop.eup %4126  ;;  %4138 = vpow2.f32 %v2344_v25  ;;  %v4072_v25 = vld [vmem:[%s4860_s7 + $0xe8] sm:$0xff]  }
 0x3a4   : > { %v2348_v30 = vmul.f32 1.442695, %v2333_v28  ;;  %v2350_v32 = vsel %vm2300_vm7, %v4127_v54, 0.0  ;;  %v4073_v27 = vld [vmem:[%s4860_s7 + $0x28] sm:$0xff]  }
 0x3a5   : > { %2351 = vadd.xlane.f32.xlu0 %v2350_v32  ;;  %v4074_v28 = vld [vmem:[%s4860_s7 + $0xa8] sm:$0xff]   ;;  %v4077_v32 = vld [vmem:[%s4860_s7 + $0x20] sm:$0xff]  }
 0x3a6   : > { %4140 = vpow2.f32 %v2348_v30  ;;  %v4076_v30 = vld [vmem:[%s4860_s7 + $0xe0] sm:$0xff]  }
 0x3a7   : > { %v4129_v34 = vpop.eup %4128 }
 0x3a8   : > { %v4131_v36 = vpop.eup %4130  ;;  %v2356_v37 = vsel %vm2300_vm7, %v4129_v34, 0.0 }
 0x3a9   : > { %2357 = vadd.xlane.f32.xlu0 %v2356_v37  ;;  %v2353_v38 = vsel %vm2304_vm8, %v4131_v36, 0.0  ;;  %v4080_v37 = vld [vmem:[%s4860_s7 + $0xd8] sm:$0xff]  }
 0x3aa   : > { %2354 = vadd.xlane.f32.xlu1 %v2353_v38  ;;  %v4081_v38 = vld [vmem:[%s4860_s7 + $0x18] sm:$0xff]  }
 0x3ab   : > { %v4133_v39 = vpop.eup %4132 }
 0x3ac   : > { %v4135_v40 = vpop.eup %4134  ;;  %v2359_v41 = vsel %vm2304_vm8, %v4133_v39, 0.0 }
 0x3ad   : > { %v2362_v9 = vsel %vm2300_vm7, %v4135_v40, 0.0 }
 0x3ae   : > { %2363 = vadd.xlane.f32.xlu0 %v2362_v9  ;;  %2360 = vadd.xlane.f32.xlu1 %v2359_v41  ;;  %v4084_v41 = vld [vmem:[%s4860_s7 + $0xd0] sm:$0xff]  }
 0x3af   : > { %v4137_v42 = vpop.eup %4136  ;;  %v4085_v9 = vld [vmem:[%s4860_s7 + $0x10] sm:$0xff]  }
 0x3b0   : > { %v4139_v44 = vpop.eup %4138  ;;  %v2368_v45 = vsel %vm2300_vm7, %v4137_v42, 0.0 }
 0x3b1   : > { %v2365_v46 = vsel %vm2304_vm8, %v4139_v44, 0.0 }
 0x3b2   : > { %2369 = vadd.xlane.f32.xlu0 %v2368_v45  ;;  %2366 = vadd.xlane.f32.xlu1 %v2365_v46  ;;  %v4088_v45 = vld [vmem:[%s4860_s7 + $0xc8] sm:$0xff]  }
 0x3b3   : > { %v4141_v18 = vpop.eup %4140  ;;  %v4089_v46 = vld [vmem:[%s4860_s7 + $0x8] sm:$0xff]  }
 0x3b4   : > { %v2371_v47 = vsel %vm2304_vm8, %v4141_v18, 0.0 }
 0x3b6   : > { %2372 = vadd.xlane.f32.xlu1 %v2371_v47  ;;  %v4091_v47 = vld [vmem:[%s4860_s7 + $0x40] sm:$0xff]  }
 0x42e   : > { %v2352_v48 = vpop.xlane.xlu0 %2351 }
 0x42f   : > { %4142 = vrcp.f32 %v2352_v48  ;;  %v4092_v48 = vld [vmem:[%s4860_s7 + $0xc0] sm:$0xff]  }
 0x432   : > { %v2358_v31 = vpop.xlane.xlu0 %2357 }
 0x433   : > { %v2355_v29 = vpop.xlane.xlu1 %2354 }
 0x434   : > { %4144 = vrcp.f32 %v2355_v29  ;;  %v4094_v29 = vld [vmem:[%s4860_s7 + $0x80] sm:$0xff]  }
 0x435   : > { %4146 = vrcp.f32 %v2358_v31  ;;  %v4093_v31 = vld [vmem:[%s4860_s7] sm:$0xff]  }
 0x437   : > { %v2364_v19 = vpop.xlane.xlu0 %2363  ;;  %v2361_v33 = vpop.xlane.xlu1 %2360 }
 0x438   : > { %4148 = vrcp.f32 %v2361_v33 }
 0x439   : > { %4150 = vrcp.f32 %v2364_v19 }
 0x43b   : > { %v2370_v23 = vpop.xlane.xlu0 %2369  ;;  %v2367_v49 = vpop.xlane.xlu1 %2366 }
 0x43c   : > { %4152 = vrcp.f32 %v2367_v49  ;;  %v4143_v43 = vpop.eup %4142 }
 0x43d   : > { %4154 = vrcp.f32 %v2370_v23  ;;  %v2382_v52 = vmul.f32 %v4143_v43, %v4127_v54  ;;  %v4075_v54 = vld [vmem:[%s4860_s7 + $0x60] sm:$0xff]  }
 0x43f   : > { %v2373_v50 = vpop.xlane.xlu1 %2372 }
 0x440   : > { %4156 = vrcp.f32 %v2373_v50 }
 0x441   : > { %v4145_v51 = vpop.eup %4144 }
 0x442   : > { %v2383_v21 = vmul.f32 %v4145_v51, %v4131_v36  ;;  %v4147_v35 = vpop.eup %4146  ;;  %v4079_v36 = vld [vmem:[%s4860_s7 + $0x58] sm:$0xff]  }
 0x443   : > { %v2384_v59 = vmul.f32 %v4147_v35, %v4129_v34  ;;  %v4078_v34 = vld [vmem:[%s4860_s7 + $0xa0] sm:$0xff]  }
 0x444   : > { %v2390_v53 = vpack.c.bf16 %v2383_v21, %v2382_v52 }
 0x445   : > { %v4149_v56 = vpop.eup %4148 }
 0x446   : > { %3992 = vmatmul.mubr.msk.bf16.vlgmr.msra.gmra.mxu0 %vm2300_vm7, %v2390_v53  ;;  %v2385_v60 = vmul.f32 %v4149_v56, %v4133_v39  ;;  %v4151_v61 = vpop.eup %4150  ;;  %v4082_v39 = vld [vmem:[%s4860_s7 + $0x98] sm:$0xff]  }
 0x447   : > { %4002 = vmatpush3.bf16.msra.mxu0 %v4061_v55  ;;  %4003 = vmatprep.mubr.msk.bf16.mxu0 %vm4204_vm6, %v4203_v57  ;;  %v2386_v2 = vmul.f32 %v4151_v61, %v4135_v40  ;;  %v4083_v40 = vld [vmem:[%s4860_s7 + $0x50] sm:$0xff]  }
 0x448   : > { %v2391_v62 = vpack.c.bf16 %v2385_v60, %v2384_v59  ;;  %3899 = vmatprep.subr.bf16.mxu0 %v4063_v12 }
 0x449   : > { %v4153_v63 = vpop.eup %4152 }
 0x44a   : > { %v4155_v1 = vpop.eup %4154  ;;  %3998 = vmatmul.mubr.msk.bf16.vlgmr.msra.gmra.mxu1 %vm2300_vm7, %v2391_v62  ;;  %v2387_v3 = vmul.f32 %v4153_v63, %v4139_v44  ;;  %v4087_v44 = vld [vmem:[%s4860_s7 + $0x48] sm:$0xff]  }
 0x44b   : > { %4008 = vmatpush3.bf16.msra.mxu1 %v4062_v0  ;;  %4009 = vmatprep.mubr.msk.bf16.mxu1 %vm4204_vm6, %v4203_v57  ;;  %v2388_v6 = vmul.f32 %v4155_v1, %v4137_v42  ;;  %v4065_v57 = vld [vmem:[%s4860_s7 + $0x38] sm:$0xff]   ;;  %v4086_v42 = vld [vmem:[%s4860_s7 + $0x90] sm:$0xff]  }
 0x44c   : > { %v2392_v5 = vpack.c.bf16 %v2387_v3, %v2386_v2  ;;  %3921 = vmatprep.subr.bf16.mxu1 %v4064_v13 }
 0x44d   : > { %v4157_v4 = vpop.eup %4156 }
 0x44e   : > { %v2389_v7 = vmul.f32 %v4157_v4, %v4141_v18  ;;  %4004 = vmatmul.mubr.msk.bf16.vlgmr.msra.gmra.mxu0 %vm2300_vm7, %v2392_v5  ;;  %v4090_v18 = vld [vmem:[%s4860_s7 + $0x88] sm:$0xff]  }
 0x44f   : > { %3900 = vmatpush3.bf16.msra.mxu0 %v4065_v57 }
 0x450   : > { %v2393_v11 = vpack.c.bf16 %v2389_v7, %v2388_v6  ;;  %3901 = vmatprep.subr.bf16.mxu0 %v4067_v16 }
 0x452   : > { %4010 = vmatmul.mubr.msk.bf16.vlgmr.msra.gmra.mxu1 %vm2300_vm7, %v2393_v11 }
 0x453   : > { %3922 = vmatpush3.bf16.msra.mxu1 %v4066_v15  ;;  %3902 = vmatpush3.bf16.msra.mxu0 %v4069_v20 }
 0x454   : > { %3923 = vmatprep.subr.bf16.mxu1 %v4068_v17  ;;  %3903 = vmatprep.subr.bf16.mxu0 %v4071_v24 }
 0x457   : > { %3924 = vmatpush3.bf16.msra.mxu1 %v4070_v10  ;;  %3904 = vmatpush3.bf16.msra.mxu0 %v4073_v27 }
 0x458   : > { %3925 = vmatprep.subr.bf16.mxu1 %v4072_v25  ;;  %3905 = vmatprep.subr.bf16.mxu0 %v4075_v54 }
 0x45b   : > { %3926 = vmatpush3.bf16.msra.mxu1 %v4074_v28  ;;  %3906 = vmatpush3.bf16.msra.mxu0 %v4077_v32 }
 0x45c   : > { %3927 = vmatprep.subr.bf16.mxu1 %v4076_v30  ;;  %3907 = vmatprep.subr.bf16.mxu0 %v4079_v36 }
 0x45f   : > { %3928 = vmatpush3.bf16.msra.mxu1 %v4078_v34  ;;  %3908 = vmatpush3.bf16.msra.mxu0 %v4081_v38 }
 0x460   : > { %3929 = vmatprep.subr.bf16.mxu1 %v4080_v37  ;;  %3909 = vmatprep.subr.bf16.mxu0 %v4083_v40 }
 0x463   : > { %3930 = vmatpush3.bf16.msra.mxu1 %v4082_v39  ;;  %3910 = vmatpush3.bf16.msra.mxu0 %v4085_v9 }
 0x464   : > { %3931 = vmatprep.subr.bf16.mxu1 %v4084_v41  ;;  %3911 = vmatprep.subr.bf16.mxu0 %v4087_v44 }
 0x467   : > { %3932 = vmatpush3.bf16.msra.mxu1 %v4086_v42  ;;  %3912 = vmatpush3.bf16.msra.mxu0 %v4089_v46 }
 0x468   : > { %3933 = vmatprep.subr.bf16.mxu1 %v4088_v45  ;;  %3913 = vmatprep.subr.bf16.mxu0 %v4091_v47 }
 0x46b   : > { %3934 = vmatpush3.bf16.msra.mxu1 %v4090_v18  ;;  %3914 = vmatpush3.bf16.msra.mxu0 %v4093_v31 }
 0x46c   : > { %3935 = vmatprep.subr.bf16.mxu1 %v4092_v48 }
 0x46f   : > { %3936 = vmatpush3.bf16.msra.mxu1 %v4094_v29 }
 0x506   : > { %v2445_v19 = vpop.f32.mrf.mxu0 }
 0x508   : > { %v3993_v33 = vpop.f32.mrf.mxu0 }
 0x50a   : > { %v2448_v23 = vpop.f32.mrf.mxu0  ;;  %v2495_v49 = vpop.f32.mrf.mxu1 }
 0x50b   : > { %v2602_v53 = vpack.c.bf16 %v2448_v23, %v2445_v19 }
 0x50c   : > { %v3994_v43 = vpop.f32.mrf.mxu0  ;;  %v3999_v50 = vpop.f32.mrf.mxu1 }
 0x50d   : > { %v2612_v63 = vrot.slane %v2602_v53, %v4468_v58 }
 0x50e   : > { %v2498_v51 = vpop.f32.mrf.mxu1  ;;  %v2545_v52 = vpop.f32.mrf.mxu0 }
 0x50f   : > { %v2603_v1 = vpack.c.bf16 %v2498_v51, %v2495_v49 }
 0x510   : > { %v4000_v21 = vpop.f32.mrf.mxu1  ;;  %v4005_v35 = vpop.f32.mrf.mxu0 }
 0x511   : > { %v2655_v57 = vrot.slane %v2603_v1, %v4468_v58 }
 0x512   : > { %v2548_v55 = vpop.f32.mrf.mxu0  ;;  %v2595_v56 = vpop.f32.mrf.mxu1 }
 0x513   : > { %v2604_v59 = vpack.c.bf16 %v2548_v55, %v2545_v52  ;;  %v3813_v60 = vpack.c.bf16 %v2548_v55, %v2448_v23 }
 0x514   : > { %v4006_v61 = vpop.f32.mrf.mxu0  ;;  %v4011_v62 = vpop.f32.mrf.mxu1 }
 0x515   : > { %v2620_v0 = vrot.slane %v2604_v59, %v4468_v58  ;;  %v2645_v2 = vrot.slane %v3813_v60, %v4477_v8 }
 0x516   : > { %v2598_v3 = vpop.f32.mrf.mxu1 }
 0x517   : > { %v2622_v4 = vcombine.low %v2612_v63, %v2620_v0  ;;  %v2623_v5 = vcombine.high %v2612_v63, %v2620_v0  ;;  %v2605_v6 = vpack.c.bf16 %v2598_v3, %v2595_v56  ;;  %v3814_v7 = vpack.c.bf16 %v2598_v3, %v2498_v51 }
 0x518   : > { %v4012_v11 = vpop.f32.mrf.mxu1  ;;  %v2648_v15 = vcombine.high %v2645_v2, %v4200_v26  ;;  %v2727_v23 = vshrl.u32 %v2645_v2, 16 }
 0x519   : > { %v2630_v12 = vrot.slane %v2622_v4, %v4477_v8  ;;  %v2637_v13 = vrot.slane %v2623_v5, %v4477_v8  ;;  %v2663_v16 = vrot.slane %v2605_v6, %v4468_v58  ;;  %v2688_v17 = vrot.slane %v3814_v7, %v4477_v8 }
 0x51a   : > { %v2733_v28 = vshrl.u32 %v2648_v15, 16 }
 0x51b   : > { %v2646_v20 = vcombine.high %v2630_v12, %v4200_v26  ;;  %v2647_v10 = vcombine.high %v2637_v13, %v4200_v26  ;;  %v2665_v24 = vcombine.low %v2655_v57, %v2663_v16  ;;  %v2666_v25 = vcombine.high %v2655_v57, %v2663_v16 }
 0x51c   : > { %v2691_v27 = vcombine.high %v2688_v17, %v4200_v26  ;;  %v2696_v32 = vshrl.u32 %v2630_v12, 16  ;;  %v2712_v36 = vshrl.u32 %v2637_v13, 16  ;;  %v2728_v44 = vshrl.u32 %v2688_v17, 16 }
 0x51d   : > { %v2673_v54 = vrot.slane %v2665_v24, %v4477_v8  ;;  %v2680_v30 = vrot.slane %v2666_v25, %v4477_v8  ;;  %v2704_v34 = vshrl.u32 %v2646_v20, 16  ;;  %v2720_v37 = vshrl.u32 %v2647_v10, 16  ;;  %v3815_v24 = vld [vmem:[%s4861_s8] ss:$0 sm:$0xff] }
 0x51e   : > { %v2734_v45 = vshrl.u32 %v2691_v27, 16  ;;  %v2732_v19 = vpack.i.b16 %v2691_v27, %v2648_v15  ;;  %v2726_v51 = vpack.i.b16 %v2688_v17, %v2645_v2  ;;  %v2729_v55 = vpack.i.b16 %v2728_v44, %v2727_v23 }
 0x51f   : > { %v2689_v38 = vcombine.high %v2673_v54, %v4200_v26  ;;  %v2690_v39 = vcombine.high %v2680_v30, %v4200_v26  ;;  %v2694_v40 = vpack.i.b16 %v2673_v54, %v2630_v12  ;;  %v2697_v41 = vshrl.u32 %v2673_v54, 16 }
 0x520   : > { %v2710_v9 = vpack.i.b16 %v2680_v30, %v2637_v13  ;;  %v2713_v42 = vshrl.u32 %v2680_v30, 16  ;;  %v2735_v52 = vpack.i.b16 %v2734_v45, %v2733_v28  ;;  %v2762_v56 = vcombine.low %v2726_v51, %v2732_v19  ;;  %v4175_v45 = vld [vmem:[%s4322_s19 + $0x8] sm:$0xf]  ;;  %v4095_v51 = vld [vmem:[%s4864_s11 + $0x10] ss:$8 sps:$4 sm:$0xff]  }
 0x521   : > { %v2698_v46 = vpack.i.b16 %v2697_v41, %v2696_v32  ;;  %v2702_v18 = vpack.i.b16 %v2689_v38, %v2646_v20  ;;  %v2705_v47 = vshrl.u32 %v2689_v38, 16  ;;  %v2718_v48 = vpack.i.b16 %v2690_v39, %v2647_v10 }
 0x522   : > { %v2714_v31 = vpack.i.b16 %v2713_v42, %v2712_v36  ;;  %v2721_v29 = vshrl.u32 %v2690_v39, 16  ;;  %v2736_v33 = vcombine.low %v2694_v40, %v2710_v9  ;;  %v2798_v63 = vcombine.low %v2729_v55, %v2735_v52  ;;  %v4174_v40 = vld [vmem:[%s4322_s19] sm:$0xff]  ;;  %v4097_v52 = vld [vmem:[%s4864_s11 + $0x14] ss:$8 sps:$4 sm:$0xff]  }
 0x523   : > { %v2706_v49 = vpack.i.b16 %v2705_v47, %v2704_v34  ;;  %v2744_v43 = vcombine.low %v2702_v18, %v2718_v48  ;;  %v2769_v1 = vrot.slane %v2762_v56, %v4477_v8  ;;  %3301 = vmatprep.subr.bf16.mxu0 %v4097_v52 }
 0x524   : > { %v2722_v50 = vpack.i.b16 %v2721_v29, %v2720_v37  ;;  %v2772_v21 = vcombine.low %v2698_v46, %v2714_v31  ;;  %v2743_v35 = vrot.slane %v2736_v33, %v4468_v58  ;;  %v2805_v5 = vrot.slane %v2798_v63, %v4477_v8 }
 0x525   : > { %v2751_v53 = vrot.slane %v2744_v43, %v4468_v58 }
 0x526   : > { %v2780_v59 = vcombine.low %v2706_v49, %v2722_v50  ;;  %v2779_v61 = vrot.slane %v2772_v21, %v4468_v58  ;;  %v4100_v21 = vld [vmem:[%s4864_s11 + $0x4] ss:$8 sps:$4 sm:$0xff]  }
 0x527   : > { %v2754_v60 = vcombine.low %v2743_v35, %v2751_v53  ;;  %v4098_v35 = vld [vmem:[%s4864_s11] ss:$8 sps:$4 sm:$0xff]  }
 0x528   : > { %v2787_v62 = vrot.slane %v2780_v59, %v4468_v58 }
 0x529   : > { %v2761_v0 = vrot.slane %v2754_v60, %v4477_v8 }
 0x52a   : > { %v2790_v2 = vcombine.low %v2779_v61, %v2787_v62 }
 0x52b   : > { %v2770_v3 = vcombine.low %v2761_v0, %v2769_v1  ;;  %v2771_v6 = vcombine.high %v2761_v0, %v2769_v1 }
 0x52c   : > { %v2797_v4 = vrot.slane %v2790_v2, %v4477_v8 }
 0x52d   : > { %v2812_v12 = vshrl.u32 %v2770_v3, 16  ;;  %v2820_v57 = vshrl.u32 %v2771_v6, 16 }
 0x52e   : > { %v2806_v7 = vcombine.low %v2797_v4, %v2805_v5  ;;  %v2807_v11 = vcombine.high %v2797_v4, %v2805_v5 }
 0x530   : > { %v2813_v13 = vshrl.u32 %v2806_v7, 16  ;;  %v2821_v15 = vshrl.u32 %v2807_v11, 16  ;;  %v2810_v17 = vpack.i.b16 %v2806_v7, %v2770_v3  ;;  %v2818_v20 = vpack.i.b16 %v2807_v11, %v2771_v6 }
 0x532   : > { %v2814_v16 = vpack.i.b16 %v2813_v13, %v2812_v12  ;;  %v2822_v58 = vpack.i.b16 %v2821_v15, %v2820_v57  ;;  %v3848_v12 = vld [vmem:[%s4868_s15] ss:$0 sm:$0xff] }
 0x533   : > { %v3849_v57 = vld [vmem:[%s4869_s16] ss:$0 sm:$0xff] }
 0x534   : > { %3119 = vmatprep.mubr.bf16.mxu0 %v2814_v16  ;;  %3160 = vmatprep.mubr.bf16.mxu1 %v2822_v58 }
 0x535   : > { %3120 = vmatmul.mubr.bf16.vlgmr.msra.gmra.mxu0 %v2810_v17  ;;  %3161 = vmatmul.mubr.bf16.vlgmr.msra.gmra.mxu1 %v2818_v20 }
 0x536   : > { %3321 = vmatprep.mubr.bf16.mxu0 %v4200_v26  ;;  %3302 = vmatpush1.bf16.msra.mxu0 %v4095_v51 }
 0x537   : > { %3303 = vmatprep.subr.bf16.mxu0 %v4100_v21 }
 0x53a   : > { %3304 = vmatpush1.bf16.msra.mxu0 %v4098_v35 }
 0x5f5   : > { %v3915_v10 = vpop.f32.mrf.mxu0  ;;  %v3937_v8 = vpop.f32.mrf.mxu1 }
 0x5f7   : > { %v3916_v25 = vpop.f32.mrf.mxu0  ;;  %v3938_v27 = vpop.f32.mrf.mxu1 }
 0x5f8   : > { %v3917_v28 = vadd.f32 %v3916_v25, %v3915_v10  ;;  %v3939_v34 = vadd.f32 %v3938_v27, %v3937_v8  ;;  %v4102_v27 = vld [vmem:[%s4866_s13 + $0x78] sm:$0xff]  }
 0x5f9   : > { %v3918_v54 = vpop.f32.mrf.mxu0  ;;  %v3940_v30 = vpop.f32.mrf.mxu1  ;;  %3943 = vmatprep.subr.bf16.mxu1 %v4102_v27 }
 0x5fa   : > { %v3122_v32 = vadd.f32 %v3917_v28, %v3815_v24  ;;  %v4103_v28 = vld [vmem:[%s4866_s13 + $0x38] sm:$0xff]  }
 0x5fb   : > { %v3919_v36 = vpop.f32.mrf.mxu0  ;;  %v3941_v37 = vpop.f32.mrf.mxu1  ;;  %3944 = vmatpush3.bf16.msra.mxu1 %v4103_v28 }
 0x5fc   : > { %v3163_v38 = vadd.f32 %v3939_v34, %v3122_v32  ;;  %v3920_v39 = vadd.f32 %v3919_v36, %v3918_v54  ;;  %v3942_v9 = vadd.f32 %v3941_v37, %v3940_v30  ;;  %v4104_v54 = vld [vmem:[%s4866_s13 + $0x70] sm:$0xff]   ;;  %v4106_v32 = vld [vmem:[%s4866_s13 + $0x68] sm:$0xff]   ;;  %v4108_v36 = vld [vmem:[%s4866_s13 + $0x60] sm:$0xff]  }
 0x5fd   : > { %v4105_v30 = vld [vmem:[%s4866_s13 + $0x30] sm:$0xff]   ;;  %3945 = vmatprep.subr.bf16.mxu1 %v4104_v54  ;;  %v4107_v34 = vld [vmem:[%s4866_s13 + $0x28] sm:$0xff]   ;;  %v4109_v37 = vld [vmem:[%s4866_s13 + $0x20] sm:$0xff]  }
 0x5fe   : > { %v3169_v26 = vadd.f32 %v4174_v40, %v3163_v38  ;;  %v3125_v41 = vadd.f32 %v3920_v39, %v3815_v24  ;;  %v4110_v38 = vld [vmem:[%s4866_s13 + $0x58] sm:$0xff]   ;;  %v4112_v40 = vld [vmem:[%s4866_s13 + $0x50] sm:$0xff]  }
 0x5ff   : > { %3946 = vmatpush3.bf16.msra.mxu1 %v4105_v30  ;;  %v4111_v39 = vld [vmem:[%s4866_s13 + $0x18] sm:$0xff]  }
 0x600   : > { %3171 = vst.msk [vmem:[#allocation5] sm:$0xff] %vm866_vm0, %v3169_v26  ;;  %v3166_v42 = vadd.f32 %v3942_v9, %v3125_v41  ;;  %v3175_v44 = vsel %vm866_vm0, %v3169_v26, 0.0  ;;  %3947 = vmatprep.subr.bf16.mxu1 %v4106_v32  ;;  %v4114_v41 = vld [vmem:[%s4866_s13 + $0x48] sm:$0xff]  }
 0x601   : > { %3176 = vadd.xlane.f32.xlu0 %v3175_v44  ;;  %v4115_v9 = vld [vmem:[%s4866_s13 + $0x8] sm:$0xff]   ;;  %v4117_v44 = vld [vmem:[%s4866_s13] sm:$0xff]  }
 0x602   : > { %v3170_v46 = vadd.f32 %v4175_v45, %v3166_v42  ;;  %v4116_v42 = vld [vmem:[%s4866_s13 + $0x40] sm:$0xff]  }
 0x603   : > { %3948 = vmatpush3.bf16.msra.mxu1 %v4107_v34  ;;  %v3248_v45 = vld [vmem:[%s4865_s12] sm:$0x3] }
 0x604   : > { %3172 = vst.msk [vmem:[#allocation5 + $0x8] sm:$0xf] %vm1659_vm1, %v3170_v46  ;;  %v3178_v18 = vsel %vm1659_vm1, %v3170_v46, 0.0  ;;  %3949 = vmatprep.subr.bf16.mxu1 %v4108_v36 }
 0x605   : > { %3179 = vadd.xlane.f32.xlu1 %v3178_v18  ;;  %v3257_v18 = vrot.slane %v3248_v45, %v4444_v14 }
 0x607   : > { %3950 = vmatpush3.bf16.msra.mxu1 %v4109_v37  ;;  %v3368_v32 = vld [vmem:[#allocation5] sm:$0xff] }
 0x608   : > { %3951 = vmatprep.subr.bf16.mxu1 %v4110_v38 }
 0x60b   : > { %3952 = vmatpush3.bf16.msra.mxu1 %v4111_v39  ;;  %v3369_v39 = vld [vmem:[#allocation5 + $0x8] sm:$0xf] }
 0x60c   : > { %3953 = vmatprep.subr.bf16.mxu1 %v4112_v40 }
 0x68a   : > { %v3177_v47 = vpop.xlane.xlu0 %3176 }
 0x68b   : > { %v3181_v48 = vmul.f32 0.03125, %v3177_v47 }
 0x68d   : > { %v3183_v31 = vsub.f32 %v3169_v26, %v3181_v48  ;;  %v4113_v26 = vld [vmem:[%s4866_s13 + $0x10] sm:$0xff]  }
 0x68e   : > { %v3180_v29 = vpop.xlane.xlu1 %3179  ;;  %3954 = vmatpush3.bf16.msra.mxu1 %v4113_v26  ;;  %v3874_v26 = vld [vmem:[%s4867_s14] ss:$0 sm:$0xff] }
 0x68f   : > { %v3182_v19 = vmul.f32 0.03125, %v3180_v29  ;;  %v3185_v33 = vmul.f32 %v3183_v31, %v3183_v31  ;;  %3955 = vmatprep.subr.bf16.mxu1 %v4114_v41 }
 0x691   : > { %v3184_v23 = vsub.f32 %v3170_v46, %v3182_v19  ;;  %v3187_v49 = vsel %vm866_vm0, %v3185_v33, 0.0  ;;  %v3253_v46 = vrot.slane %v3248_v45, %v4441_v22 }
 0x692   : > { %3188 = vadd.xlane.f32.xlu0 %v3187_v49  ;;  %3956 = vmatpush3.bf16.msra.mxu1 %v4115_v9 }
 0x693   : > { %v3186_v43 = vmul.f32 %v3184_v23, %v3184_v23  ;;  %3957 = vmatprep.subr.bf16.mxu1 %v4116_v42 }
 0x695   : > { %v3190_v50 = vsel %vm1659_vm1, %v3186_v43, 0.0 }
 0x696   : > { %3191 = vadd.xlane.f32.xlu1 %v3190_v50  ;;  %3958 = vmatpush3.bf16.msra.mxu1 %v4117_v44 }
 0x71b   : > { %v3189_v53 = vpop.xlane.xlu0 %3188 }
 0x71c   : > { %v3193_v55 = vmul.f32 0.032258064, %v3189_v53 }
 0x71e   : > { %4158 = vrsqrt.f32 %v3193_v55  ;;  %vm3197_vm9 = vcmp.eq.f32.partialorder %v3193_v55, inf  ;;  %v3200_v62 = vand.u32 2147483648, %v3193_v55  ;;  %vm3199_vm10 = vcmp.eq.f32.partialorder %v3193_v55, 0.0 }
 0x71f   : > { %v3192_v56 = vpop.xlane.xlu1 %3191 }
 0x720   : > { %v3194_v59 = vmul.f32 0.032258064, %v3192_v56 }
 0x722   : > { %4160 = vrsqrt.f32 %v3194_v59  ;;  %vm3204_vm11 = vcmp.eq.f32.partialorder %v3194_v59, inf  ;;  %v3207_v4 = vand.u32 2147483648, %v3194_v59  ;;  %vm3206_vm12 = vcmp.eq.f32.partialorder %v3194_v59, 0.0 }
 0x72b   : > { %v4159_v60 = vpop.eup %4158 }
 0x72c   : > { %v3196_v61 = vmul.f32 %v4159_v60, %v3193_v55 }
 0x72e   : > { %v3198_v63 = vsel %vm3197_vm9, %v3193_v55, %v3196_v61 }
 0x72f   : > { %v4161_v0 = vpop.eup %4160  ;;  %v3201_v1 = vsel %vm3199_vm10, %v3200_v62, %v3198_v63 }
 0x730   : > { %v3209_v2 = vadd.f32 1e-06, %v3201_v1  ;;  %v3203_v3 = vmul.f32 %v4161_v0, %v3194_v59 }
 0x732   : > { %4162 = vrcp.f32 %v3209_v2  ;;  %v3205_v5 = vsel %vm3204_vm11, %v3194_v59, %v3203_v3 }
 0x733   : > { %v3208_v6 = vsel %vm3206_vm12, %v3207_v4, %v3205_v5 }
 0x734   : > { %v3210_v7 = vadd.f32 1e-06, %v3208_v6 }
 0x736   : > { %4164 = vrcp.f32 %v3210_v7 }
 0x73f   : > { %v4163_v11 = vpop.eup %4162 }
 0x740   : > { %v3213_v13 = vmul.f32 %v4163_v11, %v3183_v31 }
 0x742   : > { %v3221_v15 = vmul.f32 %v3848_v12, %v3213_v13 }
 0x743   : > { %v4165_v16 = vpop.eup %4164 }
 0x744   : > { %v3229_v58 = vadd.f32 %v3849_v57, %v3221_v15  ;;  %v3214_v17 = vmul.f32 %v4165_v16, %v3184_v23 }
 0x746   : > { %v3881_v20 = vpack.c.bf16 %v3229_v58, %v3229_v58  ;;  %v3222_v10 = vmul.f32 %v3848_v12, %v3214_v17 }
 0x748   : > { %3239 = vst.msk [vmem:[#allocation4] sm:$0xf] %vm1659_vm1, %v3881_v20  ;;  %v3230_v8 = vadd.f32 %v3849_v57, %v3222_v10 }
 0x74a   : > { %v3882_v24 = vpack.c.bf16 %v3230_v8, %v3230_v8 }
 0x74c   : > { %3241 = vst.msk [vmem:[#allocation4 + $0x4] sm:$0x3] %vm3240_vm13, %v3882_v24 }
 0x753   : > { %v4101_v25 = vld [vmem:[#allocation4] sm:$0x3f]  }
 0x754   : > { %3857 = vmatmul.mubr.msk.bf16.vlgmr.msra.gmra.mxu0 %vm866_vm0, %v4101_v25 }
 0x814   : > { %v3323_v47 = vpop.f32.mrf.mxu0 }
 0x815   : > { %v3324_v48 = vadd.f32 %v3323_v47, %v3253_v46 }
 0x816   : > { %v3325_v31 = vpop.f32.mrf.mxu0 }
 0x817   : > { %v3336_v29 = vmul.f32 0.044715, %v3324_v48  ;;  %v3326_v19 = vadd.f32 %v3325_v31, %v3257_v18  ;;  %v3332_v17 = vmul.f32 0.5, %v3324_v48 }
 0x818   : > { %v3327_v33 = vpop.f32.mrf.mxu0 }
 0x819   : > { %v3340_v23 = vmul.f32 %v3336_v29, %v3324_v48  ;;  %v3337_v49 = vmul.f32 0.044715, %v3326_v19  ;;  %v3328_v43 = vadd.f32 %v3327_v33, %v3253_v46  ;;  %v3333_v15 = vmul.f32 0.5, %v3326_v19 }
 0x81a   : > { %v3329_v50 = vpop.f32.mrf.mxu0 }
 0x81b   : > { %v3344_v51 = vmul.f32 %v3340_v23, %v3324_v48  ;;  %v3341_v52 = vmul.f32 %v3337_v49, %v3326_v19  ;;  %v3338_v21 = vmul.f32 0.044715, %v3328_v43  ;;  %v3330_v35 = vadd.f32 %v3329_v50, %v3257_v18 }
 0x81c   : > { %v3334_v13 = vmul.f32 0.5, %v3328_v43 }
 0x81d   : > { %v3348_v53 = vadd.f32 %v3344_v51, %v3324_v48  ;;  %v3345_v55 = vmul.f32 %v3341_v52, %v3326_v19  ;;  %v3342_v56 = vmul.f32 %v3338_v21, %v3328_v43  ;;  %v3339_v22 = vmul.f32 0.044715, %v3330_v35 }
 0x81e   : > { %v3335_v16 = vmul.f32 0.5, %v3330_v35 }
 0x81f   : > { %v3346_v59 = vmul.f32 %v3342_v56, %v3328_v43  ;;  %v3343_v14 = vmul.f32 %v3339_v22, %v3330_v35  ;;  %v3349_v60 = vadd.f32 %v3345_v55, %v3326_v19  ;;  %v3352_v61 = vmul.f32 0.7978846, %v3348_v53 }
 0x821   : > { %v3350_v62 = vadd.f32 %v3346_v59, %v3328_v43  ;;  %v3347_v63 = vmul.f32 %v3343_v14, %v3330_v35  ;;  %v3353_v0 = vmul.f32 0.7978846, %v3349_v60 }
 0x823   : > { %v3354_v1 = vmul.f32 0.7978846, %v3350_v62  ;;  %v3351_v2 = vadd.f32 %v3347_v63, %v3330_v35  ;;  %4166 = vtanh.f32 %v3353_v0 }
 0x824   : > { %4168 = vtanh.f32 %v3352_v61 }
 0x825   : > { %4170 = vtanh.f32 %v3354_v1  ;;  %v3355_v3 = vmul.f32 0.7978846, %v3351_v2 }
 0x827   : > { %4172 = vtanh.f32 %v3355_v3 }
 0x830   : > { %v4167_v4 = vpop.eup %4166 }
 0x831   : > { %v4169_v5 = vpop.eup %4168  ;;  %v3361_v7 = vadd.f32 1.0, %v4167_v4 }
 0x832   : > { %v4171_v6 = vpop.eup %4170  ;;  %v3360_v57 = vadd.f32 1.0, %v4169_v5 }
 0x833   : > { %v3362_v11 = vadd.f32 1.0, %v4171_v6  ;;  %v3365_v10 = vmul.f32 %v3361_v7, %v3333_v15 }
 0x834   : > { %v4173_v12 = vpop.eup %4172  ;;  %v3364_v24 = vmul.f32 %v3360_v57, %v3332_v17 }
 0x835   : > { %v3363_v58 = vadd.f32 1.0, %v4173_v12  ;;  %v3366_v20 = vmul.f32 %v3362_v11, %v3334_v13 }
 0x837   : > { %v3367_v8 = vmul.f32 %v3363_v58, %v3335_v16  ;;  %v3370_v27 = vpack.c.bf16 %v3366_v20, %v3364_v24 }
 0x839   : > { %v3371_v25 = vpack.c.bf16 %v3367_v8, %v3365_v10 }
 0x83b   : > { %3532 = vmatprep.mubr.bf16.mxu1 %v3371_v25 }
 0x83c   : > { %3533 = vmatmul.mubr.bf16.vlgmr.msra.gmra.mxu1 %v3370_v27 }
 0x8fc   : > { %v3959_v28 = vpop.f32.mrf.mxu1 }
 0x8fe   : > { %v3960_v54 = vpop.f32.mrf.mxu1 }
 0x8ff   : > { %v3961_v30 = vadd.f32 %v3960_v54, %v3959_v28 }
 0x900   : > { %v3962_v34 = vpop.f32.mrf.mxu1 }
 0x901   : > { %v3541_v36 = vadd.f32 %v3961_v30, %v3368_v32 }
 0x902   : > { %v3963_v37 = vpop.f32.mrf.mxu1 }
 0x903   : > { %3543 = vst.msk [vmem:[#allocation5] sm:$0xff] %vm866_vm0, %v3541_v36  ;;  %v3964_v38 = vadd.f32 %v3963_v37, %v3962_v34 }
 0x905   : > { %v3542_v40 = vadd.f32 %v3964_v38, %v3369_v39 }
 0x907   : > { %3545 = vst.msk [vmem:[#allocation5 + $0x8] sm:$0xf] %vm1659_vm1, %v3542_v40 }
 0x90a   : > { %v3549_v41 = vld [vmem:[#allocation5] sm:$0xff] }
 0x90b   : > { %v3558_v9 = vadd.f32 %v3874_v26, %v3549_v41 }
 0x90d   : > { %3560 = vst.msk [vmem:[%s712_s21] sm:$0xff] %vm866_vm0, %v3558_v9 }
 0x90e   : > { %v3550_v42 = vld [vmem:[#allocation5 + $0x8] sm:$0xf] }
 0x90f   : > { %v3559_v44 = vadd.f32 %v3874_v26, %v3550_v42 }
 0x911   : > { %3561 = vst.msk [vmem:[%s712_s21 + $0x8] sm:$0xf] %vm1659_vm1, %v3559_v44 }
 0x912 PF: > { %s27_s26 = sadd.s32 1, %s4198_s26   ;;  %s4879_s24 = smov %s4194_s25 }
 0x913   : > { %p24_p5 = scmp.ge.s32.totalorder %s27_s26, 4   ;;  %s4880_s25 = smov %s4882_s27 }
 0x915   :  { %26 = sbr.rel (!%p24_p5) target bundleno = 3 (0x3), region = 145 }

</bundles_post_ra>
